<compile_context>
chip_gen: v6e
topology: v6e:2x2x1
jax: 0.10.0
libtpu: 0.0.40
codegen_flags: <defaults>
</compile_context>

<pallas_src>
import functools
import math

import jax
import jax.numpy as jnp
from jax.experimental import pallas as pl
from jax.experimental.pallas import tpu as pltpu


def _pml_kernel(proj_ref, part_ref, out_ref, *, weights, bg,
                bounded_proj, approx_recip):
    """Fused per-batch-tile loss kernel.

    proj_ref: (bb, 4, H, W)  rendered part projections (channels 1..4 of `proj`)
    part_ref: (bb, 5, H, W)  part segmentation logits
    out_ref : (bb, 8, 128)   per-batch partial sums, packed in sublane 0:
        lanes  0..11 : proj softmax, per channel [sum(p), sum(p*x), sum(p*y)]
        lanes 12..23 : part softmax, per channel [sum(p), sum(p*x), sum(p*y)]
        lane     24  : weighted squared-difference sum (eqv term)
    """
    bb = proj_ref.shape[0]
    H, W = proj_ref.shape[-2], proj_ref.shape[-1]

    # Coordinate vectors (SCOPS get_coordinate_tensors), kept as (H,1)/(1,W) so
    # the centroid reductions are separable (lane reduce + tiny dot).
    xs = (jax.lax.broadcasted_iota(jnp.int32, (H, 1), 0).astype(jnp.float32)
          - H * 0.5) * (2.0 / H)
    ys = (jax.lax.broadcasted_iota(jnp.int32, (1, W), 1).astype(jnp.float32)
          - W * 0.5) * (2.0 / W)
    lane = jax.lax.broadcasted_iota(jnp.int32, (1, 128), 1)
    sub8 = jax.lax.broadcasted_iota(jnp.int32, (8, 128), 0)

    def load(ref, n, c):
        v = ref[n, c]
        return v if v.dtype == jnp.float32 else v.astype(jnp.float32)

    def recip(x):
        return pl.reciprocal(x, approx=True) if approx_recip else 1.0 / x

    def centroid_sums(p):
        # p: (H, W) softmax map -> (sum p, sum p*x, sum p*y) via row/col sums.
        rs = jnp.sum(p, axis=1, keepdims=True)   # (H, 1)  lane reduce (XLU)
        cs = jnp.sum(p, axis=0, keepdims=True)   # (1, W)  vreg adds
        return jnp.sum(rs), jnp.sum(rs * xs), jnp.sum(cs * ys)

    for n in range(bb):     # static unroll over the (small) per-step batch block
        scalars = []

        # ---- proj channel softmax: [const bg, proj1..proj4], bg dropped -----
        pr = [load(proj_ref, n, c) for c in range(4)]
        if bounded_proj:
            # SoftRenderer projections are bounded in [0,1]; bg is a constant.
            exps = [jnp.exp(p) for p in pr]
            den = (exps[0] + exps[1]) + (exps[2] + exps[3]) + math.exp(bg)
        else:
            m = jnp.maximum(jnp.maximum(pr[0], pr[1]),
                            jnp.maximum(pr[2], pr[3]))
            m = jnp.maximum(m, bg)
            exps = [jnp.exp(p - m) for p in pr]
            den = (exps[0] + exps[1]) + (exps[2] + exps[3]) + jnp.exp(bg - m)
        inv = recip(den)
        for e in exps:
            scalars.extend(centroid_sums(e * inv))

        # ---- part_segs channel softmax (unbounded logits: keep stable) ------
        ps = [load(part_ref, n, c) for c in range(5)]
        m = ps[0]
        for q in ps[1:]:
            m = jnp.maximum(m, q)
        exps = [jnp.exp(q - m) for q in ps]
        den = (exps[0] + exps[1]) + (exps[2] + exps[3]) + exps[4]
        inv = recip(den)
        for e in exps[1:]:
            scalars.extend(centroid_sums(e * inv))

        # ---- weighted, max-normalised SSE (zero-weight channels skipped) ----
        eqv = jnp.float32(0.0)
        if weights[0] != 0.0:
            # proj channel 0 is the constant bg -> proj_norm == 1 everywhere.
            p0 = load(part_ref, n, 0)
            d = 1.0 - p0 * (1.0 / jnp.maximum(jnp.max(p0), 1e-5))
            eqv = eqv + weights[0] * jnp.sum(d * d)
        for c in range(4):
            wc = weights[c + 1]
            if wc == 0.0:
                continue
            prc = load(proj_ref, n, c)
            psc = load(part_ref, n, c + 1)
            inv_mp = 1.0 / jnp.maximum(jnp.max(prc), 1e-5)   # scalar recips,
            inv_ms = 1.0 / jnp.maximum(jnp.max(psc), 1e-5)   # per-pixel muls
            d = prc * inv_mp - psc * inv_ms
            eqv = eqv + wc * jnp.sum(d * d)
        scalars.append(eqv)

        # ---- lane-dense partial-sum tile (sublane 0, lanes 0..24) -----------
        row = jnp.zeros((1, 128), jnp.float32)
        for i, v in enumerate(scalars):
            row = row + jnp.where(lane == i, v, 0.0)
        out_ref[n] = jnp.where(sub8 == 0, row, 0.0)


def part_matching_loss_forward(proj_parts, part_segs,
                               weights=(0.0, 5.0, 0.0, 0.0, 5.0),
                               bg=0.1, eps=1e-3,
                               bounded_proj=True, approx_recip=True,
                               batch_block=None, stream_dtype=None,
                               vmem_limit_bytes=None):
    """proj_parts: (B, 4, H, W) rendered part projections (channel-means of the
    four SoftRenderer passes); part_segs: (B, 5, H, W) logits.
    Returns (total_loss, projs) matching the module's avg=True, 'mse' path."""
    B, CP, H, W = proj_parts.shape
    _, CS, _, _ = part_segs.shape
    assert CP == 4 and CS == 5

    projs = [proj_parts[:, c:c + 1] for c in range(CP)]

    if stream_dtype is not None:
        # Optional HBM-bandwidth saver for v5e/v6e (kernel upcasts per tile).
        proj_in = proj_parts.astype(stream_dtype)
        part_in = part_segs.astype(stream_dtype)
    else:
        proj_in, part_in = proj_parts, part_segs

    if batch_block is None:
        # Keep >= 2 grid steps so both v7x TensorCores get work; merge pairs of
        # batches per step once there is plenty of grid left (amortises the
        # ~0.35us per-grid-step overhead on v5e/v6e).
        batch_block = 2 if (B % 2 == 0 and B >= 4) else 1
    assert B % batch_block == 0

    kernel = functools.partial(
        _pml_kernel,
        weights=tuple(float(w) for w in weights),
        bg=float(bg),
        bounded_proj=bool(bounded_proj),
        approx_recip=bool(approx_recip),
    )

    itemsize = jnp.dtype(proj_in.dtype).itemsize
    est_vmem = (2 * batch_block * (CP + CS) * H * W * itemsize   # dbl-buffered inputs
                + 12 * H * W * 4)                                # live f32 temporaries
    if vmem_limit_bytes is None and est_vmem > (14 << 20):
        vmem_limit_bytes = min(est_vmem + (4 << 20), 64 << 20)   # v7x physical cap

    cp_kwargs = dict(dimension_semantics=("parallel",))
    if vmem_limit_bytes is not None:
        cp_kwargs["vmem_limit_bytes"] = int(vmem_limit_bytes)

    partials = pl.pallas_call(
        kernel,
        out_shape=jax.ShapeDtypeStruct((B, 8, 128), jnp.float32),
        grid_spec=pltpu.PrefetchScalarGridSpec(
            num_scalar_prefetch=0,
            grid=(B // batch_block,),
            in_specs=[
                # Last two block dims equal the full array dims -> (8,128) rule OK.
                pl.BlockSpec((batch_block, CP, H, W), lambda b: (b, 0, 0, 0)),
                pl.BlockSpec((batch_block, CS, H, W), lambda b: (b, 0, 0, 0)),
            ],
            out_specs=pl.BlockSpec((batch_block, 8, 128), lambda b: (b, 0, 0)),
        ),
        compiler_params=pltpu.CompilerParams(**cp_kwargs),
    )(proj_in, part_in)

    row = partials[:, 0, :]                       # (B, 128)
    proj_sums = row[:, 0:12].reshape(B, 4, 3)     # [sum p, sum p*x, sum p*y]
    part_sums = row[:, 12:24].reshape(B, 4, 3)
    eqv_sums = row[:, 24]

    # Fold the +eps from batch_get_centers into closed-form constants:
    #   center_x = (sum p*x + eps*sum(xmap)) / (sum p + eps*H*W)
    xs = (jnp.arange(H, dtype=jnp.float32) - H * 0.5) * (2.0 / H)
    ys = (jnp.arange(W, dtype=jnp.float32) - W * 0.5) * (2.0 / W)
    cx_const = float(W) * jnp.sum(xs)
    cy_const = float(H) * jnp.sum(ys)
    npix = float(H * W)

    def centers(s):                               # s: (B, 4, 3)
        k = s[..., 0] + eps * npix
        return jnp.stack([(s[..., 1] + eps * cx_const) / k,
                          (s[..., 2] + eps * cy_const) / k], axis=-1)

    loss_lmeqv = jnp.mean((centers(proj_sums) - centers(part_sums)) ** 2)
    loss_eqv = jnp.sum(eqv_sums) / (B * CS * H * W)
    total = (loss_eqv + loss_lmeqv) / 4.0
    return total, projs


def part_matching_loss_ref(proj_parts, part_segs,
                           weights=(0.0, 5.0, 0.0, 0.0, 5.0), bg=0.1, eps=1e-3):
    """Pure-JAX reference mirroring the PyTorch forward (avg=True, 'mse')."""
    B, _, H, W = proj_parts.shape
    proj = jnp.concatenate(
        [jnp.full((B, 1, H, W), bg, jnp.float32), proj_parts.astype(jnp.float32)], axis=1)
    part = part_segs.astype(jnp.float32)

    row = (jnp.arange(H, dtype=jnp.float32) - H * 0.5) / H * 2.0
    col = (jnp.arange(W, dtype=jnp.float32) - W * 0.5) / W * 2.0
    xmap = jnp.broadcast_to(row[:, None], (H, W))
    ymap = jnp.broadcast_to(col[None, :], (H, W))

    def batch_get_centers(soft_parts):            # (B, 4, H, W) -> (B, 4, 2)
        pm = soft_parts + eps
        k = jnp.sum(pm, axis=(2, 3))
        xc = jnp.sum(pm * xmap, axis=(2, 3)) / k
        yc = jnp.sum(pm * ymap, axis=(2, 3)) / k
        return jnp.stack([xc, yc], axis=-1)

    centers_proj = batch_get_centers(jax.nn.softmax(proj, axis=1)[:, 1:])
    centers_part = batch_get_centers(jax.nn.softmax(part, axis=1)[:, 1:])
    loss_lmeqv = jnp.mean((centers_proj - centers_part) ** 2)

    max_proj = jnp.maximum(jnp.max(proj.reshape(B, 5, -1), axis=2), 1e-5)
    max_part = jnp.maximum(jnp.max(part.reshape(B, 5, -1), axis=2), 1e-5)
    proj_norm = proj / max_proj[:, :, None, None]
    part_norm = part / max_part[:, :, None, None]
    w = jnp.array(weights, jnp.float32).reshape(1, 5, 1, 1)
    loss_eqv = jnp.mean((proj_norm - part_norm) ** 2 * w)
    return (loss_eqv + loss_lmeqv) / 4.0


if __name__ == "__main__":
    key = jax.random.PRNGKey(0)
    k1, k2 = jax.random.split(key)
    B, H, W = 2, 128, 128   # module uses im_size=256; 128 keeps the test small and lane-dense

    # TODO(synk): SoftRenderer soft-rasterisation of (verts, faces, cams, stex*) into the 4
    # part projection maps (and the grid_sample/one-hot texture construction in __init__) has
    # no clean Pallas equivalent; deterministic stand-in projection maps are used instead.
    proj_parts = jax.random.uniform(k1, (B, 4, H, W), dtype=jnp.float32)   # bounded [0,1]
    part_segs = jax.random.normal(k2, (B, 5, H, W), dtype=jnp.float32)

    loss, projs = part_matching_loss_forward(proj_parts, part_segs)
    loss = jax.block_until_ready(loss)

    ref = part_matching_loss_ref(proj_parts, part_segs)
    # approx reciprocal + unstable-but-bounded proj softmax perturb only the tiny
    # centroid term; loss_eqv is exact -> comfortably within this tolerance.
    assert jnp.allclose(loss, ref, rtol=1e-3, atol=1e-5), (loss, ref)
    assert len(projs) == 4 and projs[0].shape == (B, 1, H, W)
    print("KERNEL_OK")
</pallas_src>

<mosaic_0001>
module attributes {stable_mosaic.version = 11 : i64} {
  func.func @_pml_kernel(%arg0: i32, %arg1: memref<1x4x128x128xf32, #tpu.memory_space<vmem>>, %arg2: memref<1x5x128x128xf32, #tpu.memory_space<vmem>>, %arg3: memref<1x8x128xf32, #tpu.memory_space<vmem>>) attributes {dimension_semantics = [#tpu.dimension_semantics<parallel>], iteration_bounds = array<i64: 2>, scalar_prefetch = 0 : i64, scratch_operands = 0 : i64, tpu.core_type = #tpu.core_type<tc>, window_params = [{transform_indices = @transform_0, window_bounds = array<i64: 1, 4, 128, 128>}, {transform_indices = @transform_1, window_bounds = array<i64: 1, 5, 128, 128>}, {transform_indices = @transform_2, window_bounds = array<i64: 1, 8, 128>}]} {
    %0 = tpu.iota {dimensions = array<i32: 0>} : vector<128x1xi32>
    %1 = arith.sitofp %0 : vector<128x1xi32> to vector<128x1xf32>
    %cst = arith.constant 6.400000e+01 : f32
    %2 = vector.broadcast %cst : f32 to vector<128x1xf32>
    %3 = arith.subf %1, %2 : vector<128x1xf32>
    %cst_0 = arith.constant 1.562500e-02 : f32
    %4 = vector.broadcast %cst_0 : f32 to vector<128x1xf32>
    %5 = arith.mulf %3, %4 : vector<128x1xf32>
    %6 = tpu.iota {dimensions = array<i32: 1>} : vector<1x128xi32>
    %7 = arith.sitofp %6 : vector<1x128xi32> to vector<1x128xf32>
    %cst_1 = arith.constant 6.400000e+01 : f32
    %8 = vector.broadcast %cst_1 : f32 to vector<1x128xf32>
    %9 = arith.subf %7, %8 : vector<1x128xf32>
    %cst_2 = arith.constant 1.562500e-02 : f32
    %10 = vector.broadcast %cst_2 : f32 to vector<1x128xf32>
    %11 = arith.mulf %9, %10 : vector<1x128xf32>
    %12 = tpu.iota {dimensions = array<i32: 1>} : vector<1x128xi32>
    %13 = tpu.iota {dimensions = array<i32: 0>} : vector<8x128xi32>
    %c0 = arith.constant 0 : index
    %c0_3 = arith.constant 0 : index
    %c0_4 = arith.constant 0 : index
    %c0_5 = arith.constant 0 : index
    %14 = vector.load %arg1[%c0, %c0_3, %c0_4, %c0_5] : memref<1x4x128x128xf32, #tpu.memory_space<vmem>>, vector<1x1x128x128xf32>
    %15 = vector.shape_cast %14 : vector<1x1x128x128xf32> to vector<128x128xf32>
    %c0_6 = arith.constant 0 : index
    %c1 = arith.constant 1 : index
    %c0_7 = arith.constant 0 : index
    %c0_8 = arith.constant 0 : index
    %16 = vector.load %arg1[%c0_6, %c1, %c0_7, %c0_8] : memref<1x4x128x128xf32, #tpu.memory_space<vmem>>, vector<1x1x128x128xf32>
    %17 = vector.shape_cast %16 : vector<1x1x128x128xf32> to vector<128x128xf32>
    %c0_9 = arith.constant 0 : index
    %c2 = arith.constant 2 : index
    %c0_10 = arith.constant 0 : index
    %c0_11 = arith.constant 0 : index
    %18 = vector.load %arg1[%c0_9, %c2, %c0_10, %c0_11] : memref<1x4x128x128xf32, #tpu.memory_space<vmem>>, vector<1x1x128x128xf32>
    %19 = vector.shape_cast %18 : vector<1x1x128x128xf32> to vector<128x128xf32>
    %c0_12 = arith.constant 0 : index
    %c3 = arith.constant 3 : index
    %c0_13 = arith.constant 0 : index
    %c0_14 = arith.constant 0 : index
    %20 = vector.load %arg1[%c0_12, %c3, %c0_13, %c0_14] : memref<1x4x128x128xf32, #tpu.memory_space<vmem>>, vector<1x1x128x128xf32>
    %21 = vector.shape_cast %20 : vector<1x1x128x128xf32> to vector<128x128xf32>
    %22 = math.exp %15 : vector<128x128xf32>
    %23 = math.exp %17 : vector<128x128xf32>
    %24 = math.exp %19 : vector<128x128xf32>
    %25 = math.exp %21 : vector<128x128xf32>
    %26 = arith.addf %22, %23 : vector<128x128xf32>
    %27 = arith.addf %24, %25 : vector<128x128xf32>
    %28 = arith.addf %26, %27 : vector<128x128xf32>
    %cst_15 = arith.constant 1.10517097 : f32
    %29 = vector.broadcast %cst_15 : f32 to vector<128x128xf32>
    %30 = arith.addf %28, %29 : vector<128x128xf32>
    %31 = tpu.reciprocal %30 {approx = true} : vector<128x128xf32> -> vector<128x128xf32>
    %32 = arith.mulf %22, %31 : vector<128x128xf32>
    %cst_16 = arith.constant dense<0.000000e+00> : vector<128xf32>
    %33 = vector.multi_reduction <add>, %32, %cst_16 [1] : vector<128x128xf32> to vector<128xf32>
    %34 = vector.shape_cast %33 : vector<128xf32> to vector<128x1xf32>
    %cst_17 = arith.constant dense<0.000000e+00> : vector<128xf32>
    %35 = vector.multi_reduction <add>, %32, %cst_17 [0] : vector<128x128xf32> to vector<128xf32>
    %36 = vector.shape_cast %35 : vector<128xf32> to vector<1x128xf32>
    %37 = vector.shape_cast %34 : vector<128x1xf32> to vector<1x128x1xf32>
    %cst_18 = arith.constant dense<0.000000e+00> : vector<1xf32>
    %38 = vector.multi_reduction <add>, %37, %cst_18 [1, 2] : vector<1x128x1xf32> to vector<1xf32>
    %39 = vector.shape_cast %38 : vector<1xf32> to vector<1x1x1xf32>
    %40 = vector.extract %39[0, 0, 0] : f32 from vector<1x1x1xf32>
    %41 = arith.mulf %34, %5 : vector<128x1xf32>
    %42 = vector.shape_cast %41 : vector<128x1xf32> to vector<1x128x1xf32>
    %cst_19 = arith.constant dense<0.000000e+00> : vector<1xf32>
    %43 = vector.multi_reduction <add>, %42, %cst_19 [1, 2] : vector<1x128x1xf32> to vector<1xf32>
    %44 = vector.shape_cast %43 : vector<1xf32> to vector<1x1x1xf32>
    %45 = vector.extract %44[0, 0, 0] : f32 from vector<1x1x1xf32>
    %46 = arith.mulf %36, %11 : vector<1x128xf32>
    %47 = vector.shape_cast %46 : vector<1x128xf32> to vector<1x1x128xf32>
    %cst_20 = arith.constant dense<0.000000e+00> : vector<1xf32>
    %48 = vector.multi_reduction <add>, %47, %cst_20 [1, 2] : vector<1x1x128xf32> to vector<1xf32>
    %49 = vector.shape_cast %48 : vector<1xf32> to vector<1x1x1xf32>
    %50 = vector.extract %49[0, 0, 0] : f32 from vector<1x1x1xf32>
    %51 = arith.mulf %23, %31 : vector<128x128xf32>
    %cst_21 = arith.constant dense<0.000000e+00> : vector<128xf32>
    %52 = vector.multi_reduction <add>, %51, %cst_21 [1] : vector<128x128xf32> to vector<128xf32>
    %53 = vector.shape_cast %52 : vector<128xf32> to vector<128x1xf32>
    %cst_22 = arith.constant dense<0.000000e+00> : vector<128xf32>
    %54 = vector.multi_reduction <add>, %51, %cst_22 [0] : vector<128x128xf32> to vector<128xf32>
    %55 = vector.shape_cast %54 : vector<128xf32> to vector<1x128xf32>
    %56 = vector.shape_cast %53 : vector<128x1xf32> to vector<1x128x1xf32>
    %cst_23 = arith.constant dense<0.000000e+00> : vector<1xf32>
    %57 = vector.multi_reduction <add>, %56, %cst_23 [1, 2] : vector<1x128x1xf32> to vector<1xf32>
    %58 = vector.shape_cast %57 : vector<1xf32> to vector<1x1x1xf32>
    %59 = vector.extract %58[0, 0, 0] : f32 from vector<1x1x1xf32>
    %60 = arith.mulf %53, %5 : vector<128x1xf32>
    %61 = vector.shape_cast %60 : vector<128x1xf32> to vector<1x128x1xf32>
    %cst_24 = arith.constant dense<0.000000e+00> : vector<1xf32>
    %62 = vector.multi_reduction <add>, %61, %cst_24 [1, 2] : vector<1x128x1xf32> to vector<1xf32>
    %63 = vector.shape_cast %62 : vector<1xf32> to vector<1x1x1xf32>
    %64 = vector.extract %63[0, 0, 0] : f32 from vector<1x1x1xf32>
    %65 = arith.mulf %55, %11 : vector<1x128xf32>
    %66 = vector.shape_cast %65 : vector<1x128xf32> to vector<1x1x128xf32>
    %cst_25 = arith.constant dense<0.000000e+00> : vector<1xf32>
    %67 = vector.multi_reduction <add>, %66, %cst_25 [1, 2] : vector<1x1x128xf32> to vector<1xf32>
    %68 = vector.shape_cast %67 : vector<1xf32> to vector<1x1x1xf32>
    %69 = vector.extract %68[0, 0, 0] : f32 from vector<1x1x1xf32>
    %70 = arith.mulf %24, %31 : vector<128x128xf32>
    %cst_26 = arith.constant dense<0.000000e+00> : vector<128xf32>
    %71 = vector.multi_reduction <add>, %70, %cst_26 [1] : vector<128x128xf32> to vector<128xf32>
    %72 = vector.shape_cast %71 : vector<128xf32> to vector<128x1xf32>
    %cst_27 = arith.constant dense<0.000000e+00> : vector<128xf32>
    %73 = vector.multi_reduction <add>, %70, %cst_27 [0] : vector<128x128xf32> to vector<128xf32>
    %74 = vector.shape_cast %73 : vector<128xf32> to vector<1x128xf32>
    %75 = vector.shape_cast %72 : vector<128x1xf32> to vector<1x128x1xf32>
    %cst_28 = arith.constant dense<0.000000e+00> : vector<1xf32>
    %76 = vector.multi_reduction <add>, %75, %cst_28 [1, 2] : vector<1x128x1xf32> to vector<1xf32>
    %77 = vector.shape_cast %76 : vector<1xf32> to vector<1x1x1xf32>
    %78 = vector.extract %77[0, 0, 0] : f32 from vector<1x1x1xf32>
    %79 = arith.mulf %72, %5 : vector<128x1xf32>
    %80 = vector.shape_cast %79 : vector<128x1xf32> to vector<1x128x1xf32>
    %cst_29 = arith.constant dense<0.000000e+00> : vector<1xf32>
    %81 = vector.multi_reduction <add>, %80, %cst_29 [1, 2] : vector<1x128x1xf32> to vector<1xf32>
    %82 = vector.shape_cast %81 : vector<1xf32> to vector<1x1x1xf32>
    %83 = vector.extract %82[0, 0, 0] : f32 from vector<1x1x1xf32>
    %84 = arith.mulf %74, %11 : vector<1x128xf32>
    %85 = vector.shape_cast %84 : vector<1x128xf32> to vector<1x1x128xf32>
    %cst_30 = arith.constant dense<0.000000e+00> : vector<1xf32>
    %86 = vector.multi_reduction <add>, %85, %cst_30 [1, 2] : vector<1x1x128xf32> to vector<1xf32>
    %87 = vector.shape_cast %86 : vector<1xf32> to vector<1x1x1xf32>
    %88 = vector.extract %87[0, 0, 0] : f32 from vector<1x1x1xf32>
    %89 = arith.mulf %25, %31 : vector<128x128xf32>
    %cst_31 = arith.constant dense<0.000000e+00> : vector<128xf32>
    %90 = vector.multi_reduction <add>, %89, %cst_31 [1] : vector<128x128xf32> to vector<128xf32>
    %91 = vector.shape_cast %90 : vector<128xf32> to vector<128x1xf32>
    %cst_32 = arith.constant dense<0.000000e+00> : vector<128xf32>
    %92 = vector.multi_reduction <add>, %89, %cst_32 [0] : vector<128x128xf32> to vector<128xf32>
    %93 = vector.shape_cast %92 : vector<128xf32> to vector<1x128xf32>
    %94 = vector.shape_cast %91 : vector<128x1xf32> to vector<1x128x1xf32>
    %cst_33 = arith.constant dense<0.000000e+00> : vector<1xf32>
    %95 = vector.multi_reduction <add>, %94, %cst_33 [1, 2] : vector<1x128x1xf32> to vector<1xf32>
    %96 = vector.shape_cast %95 : vector<1xf32> to vector<1x1x1xf32>
    %97 = vector.extract %96[0, 0, 0] : f32 from vector<1x1x1xf32>
    %98 = arith.mulf %91, %5 : vector<128x1xf32>
    %99 = vector.shape_cast %98 : vector<128x1xf32> to vector<1x128x1xf32>
    %cst_34 = arith.constant dense<0.000000e+00> : vector<1xf32>
    %100 = vector.multi_reduction <add>, %99, %cst_34 [1, 2] : vector<1x128x1xf32> to vector<1xf32>
    %101 = vector.shape_cast %100 : vector<1xf32> to vector<1x1x1xf32>
    %102 = vector.extract %101[0, 0, 0] : f32 from vector<1x1x1xf32>
    %103 = arith.mulf %93, %11 : vector<1x128xf32>
    %104 = vector.shape_cast %103 : vector<1x128xf32> to vector<1x1x128xf32>
    %cst_35 = arith.constant dense<0.000000e+00> : vector<1xf32>
    %105 = vector.multi_reduction <add>, %104, %cst_35 [1, 2] : vector<1x1x128xf32> to vector<1xf32>
    %106 = vector.shape_cast %105 : vector<1xf32> to vector<1x1x1xf32>
    %107 = vector.extract %106[0, 0, 0] : f32 from vector<1x1x1xf32>
    %c0_36 = arith.constant 0 : index
    %c0_37 = arith.constant 0 : index
    %c0_38 = arith.constant 0 : index
    %c0_39 = arith.constant 0 : index
    %108 = vector.load %arg2[%c0_36, %c0_37, %c0_38, %c0_39] : memref<1x5x128x128xf32, #tpu.memory_space<vmem>>, vector<1x1x128x128xf32>
    %109 = vector.shape_cast %108 : vector<1x1x128x128xf32> to vector<128x128xf32>
    %c0_40 = arith.constant 0 : index
    %c1_41 = arith.constant 1 : index
    %c0_42 = arith.constant 0 : index
    %c0_43 = arith.constant 0 : index
    %110 = vector.load %arg2[%c0_40, %c1_41, %c0_42, %c0_43] : memref<1x5x128x128xf32, #tpu.memory_space<vmem>>, vector<1x1x128x128xf32>
    %111 = vector.shape_cast %110 : vector<1x1x128x128xf32> to vector<128x128xf32>
    %c0_44 = arith.constant 0 : index
    %c2_45 = arith.constant 2 : index
    %c0_46 = arith.constant 0 : index
    %c0_47 = arith.constant 0 : index
    %112 = vector.load %arg2[%c0_44, %c2_45, %c0_46, %c0_47] : memref<1x5x128x128xf32, #tpu.memory_space<vmem>>, vector<1x1x128x128xf32>
    %113 = vector.shape_cast %112 : vector<1x1x128x128xf32> to vector<128x128xf32>
    %c0_48 = arith.constant 0 : index
    %c3_49 = arith.constant 3 : index
    %c0_50 = arith.constant 0 : index
    %c0_51 = arith.constant 0 : index
    %114 = vector.load %arg2[%c0_48, %c3_49, %c0_50, %c0_51] : memref<1x5x128x128xf32, #tpu.memory_space<vmem>>, vector<1x1x128x128xf32>
    %115 = vector.shape_cast %114 : vector<1x1x128x128xf32> to vector<128x128xf32>
    %c0_52 = arith.constant 0 : index
    %c4 = arith.constant 4 : index
    %c0_53 = arith.constant 0 : index
    %c0_54 = arith.constant 0 : index
    %116 = vector.load %arg2[%c0_52, %c4, %c0_53, %c0_54] : memref<1x5x128x128xf32, #tpu.memory_space<vmem>>, vector<1x1x128x128xf32>
    %117 = vector.shape_cast %116 : vector<1x1x128x128xf32> to vector<128x128xf32>
    %118 = arith.maximumf %109, %111 : vector<128x128xf32>
    %119 = arith.maximumf %118, %113 : vector<128x128xf32>
    %120 = arith.maximumf %119, %115 : vector<128x128xf32>
    %121 = arith.maximumf %120, %117 : vector<128x128xf32>
    %122 = arith.subf %109, %121 : vector<128x128xf32>
    %123 = math.exp %122 : vector<128x128xf32>
    %124 = arith.subf %111, %121 : vector<128x128xf32>
    %125 = math.exp %124 : vector<128x128xf32>
    %126 = arith.subf %113, %121 : vector<128x128xf32>
    %127 = math.exp %126 : vector<128x128xf32>
    %128 = arith.subf %115, %121 : vector<128x128xf32>
    %129 = math.exp %128 : vector<128x128xf32>
    %130 = arith.subf %117, %121 : vector<128x128xf32>
    %131 = math.exp %130 : vector<128x128xf32>
    %132 = arith.addf %123, %125 : vector<128x128xf32>
    %133 = arith.addf %127, %129 : vector<128x128xf32>
    %134 = arith.addf %132, %133 : vector<128x128xf32>
    %135 = arith.addf %134, %131 : vector<128x128xf32>
    %136 = tpu.reciprocal %135 {approx = true} : vector<128x128xf32> -> vector<128x128xf32>
    %137 = arith.mulf %125, %136 : vector<128x128xf32>
    %cst_55 = arith.constant dense<0.000000e+00> : vector<128xf32>
    %138 = vector.multi_reduction <add>, %137, %cst_55 [1] : vector<128x128xf32> to vector<128xf32>
    %139 = vector.shape_cast %138 : vector<128xf32> to vector<128x1xf32>
    %cst_56 = arith.constant dense<0.000000e+00> : vector<128xf32>
    %140 = vector.multi_reduction <add>, %137, %cst_56 [0] : vector<128x128xf32> to vector<128xf32>
    %141 = vector.shape_cast %140 : vector<128xf32> to vector<1x128xf32>
    %142 = vector.shape_cast %139 : vector<128x1xf32> to vector<1x128x1xf32>
    %cst_57 = arith.constant dense<0.000000e+00> : vector<1xf32>
    %143 = vector.multi_reduction <add>, %142, %cst_57 [1, 2] : vector<1x128x1xf32> to vector<1xf32>
    %144 = vector.shape_cast %143 : vector<1xf32> to vector<1x1x1xf32>
    %145 = vector.extract %144[0, 0, 0] : f32 from vector<1x1x1xf32>
    %146 = arith.mulf %139, %5 : vector<128x1xf32>
    %147 = vector.shape_cast %146 : vector<128x1xf32> to vector<1x128x1xf32>
    %cst_58 = arith.constant dense<0.000000e+00> : vector<1xf32>
    %148 = vector.multi_reduction <add>, %147, %cst_58 [1, 2] : vector<1x128x1xf32> to vector<1xf32>
    %149 = vector.shape_cast %148 : vector<1xf32> to vector<1x1x1xf32>
    %150 = vector.extract %149[0, 0, 0] : f32 from vector<1x1x1xf32>
    %151 = arith.mulf %141, %11 : vector<1x128xf32>
    %152 = vector.shape_cast %151 : vector<1x128xf32> to vector<1x1x128xf32>
    %cst_59 = arith.constant dense<0.000000e+00> : vector<1xf32>
    %153 = vector.multi_reduction <add>, %152, %cst_59 [1, 2] : vector<1x1x128xf32> to vector<1xf32>
    %154 = vector.shape_cast %153 : vector<1xf32> to vector<1x1x1xf32>
    %155 = vector.extract %154[0, 0, 0] : f32 from vector<1x1x1xf32>
    %156 = arith.mulf %127, %136 : vector<128x128xf32>
    %cst_60 = arith.constant dense<0.000000e+00> : vector<128xf32>
    %157 = vector.multi_reduction <add>, %156, %cst_60 [1] : vector<128x128xf32> to vector<128xf32>
    %158 = vector.shape_cast %157 : vector<128xf32> to vector<128x1xf32>
    %cst_61 = arith.constant dense<0.000000e+00> : vector<128xf32>
    %159 = vector.multi_reduction <add>, %156, %cst_61 [0] : vector<128x128xf32> to vector<128xf32>
    %160 = vector.shape_cast %159 : vector<128xf32> to vector<1x128xf32>
    %161 = vector.shape_cast %158 : vector<128x1xf32> to vector<1x128x1xf32>
    %cst_62 = arith.constant dense<0.000000e+00> : vector<1xf32>
    %162 = vector.multi_reduction <add>, %161, %cst_62 [1, 2] : vector<1x128x1xf32> to vector<1xf32>
    %163 = vector.shape_cast %162 : vector<1xf32> to vector<1x1x1xf32>
    %164 = vector.extract %163[0, 0, 0] : f32 from vector<1x1x1xf32>
    %165 = arith.mulf %158, %5 : vector<128x1xf32>
    %166 = vector.shape_cast %165 : vector<128x1xf32> to vector<1x128x1xf32>
    %cst_63 = arith.constant dense<0.000000e+00> : vector<1xf32>
    %167 = vector.multi_reduction <add>, %166, %cst_63 [1, 2] : vector<1x128x1xf32> to vector<1xf32>
    %168 = vector.shape_cast %167 : vector<1xf32> to vector<1x1x1xf32>
    %169 = vector.extract %168[0, 0, 0] : f32 from vector<1x1x1xf32>
    %170 = arith.mulf %160, %11 : vector<1x128xf32>
    %171 = vector.shape_cast %170 : vector<1x128xf32> to vector<1x1x128xf32>
    %cst_64 = arith.constant dense<0.000000e+00> : vector<1xf32>
    %172 = vector.multi_reduction <add>, %171, %cst_64 [1, 2] : vector<1x1x128xf32> to vector<1xf32>
    %173 = vector.shape_cast %172 : vector<1xf32> to vector<1x1x1xf32>
    %174 = vector.extract %173[0, 0, 0] : f32 from vector<1x1x1xf32>
    %175 = arith.mulf %129, %136 : vector<128x128xf32>
    %cst_65 = arith.constant dense<0.000000e+00> : vector<128xf32>
    %176 = vector.multi_reduction <add>, %175, %cst_65 [1] : vector<128x128xf32> to vector<128xf32>
    %177 = vector.shape_cast %176 : vector<128xf32> to vector<128x1xf32>
    %cst_66 = arith.constant dense<0.000000e+00> : vector<128xf32>
    %178 = vector.multi_reduction <add>, %175, %cst_66 [0] : vector<128x128xf32> to vector<128xf32>
    %179 = vector.shape_cast %178 : vector<128xf32> to vector<1x128xf32>
    %180 = vector.shape_cast %177 : vector<128x1xf32> to vector<1x128x1xf32>
    %cst_67 = arith.constant dense<0.000000e+00> : vector<1xf32>
    %181 = vector.multi_reduction <add>, %180, %cst_67 [1, 2] : vector<1x128x1xf32> to vector<1xf32>
    %182 = vector.shape_cast %181 : vector<1xf32> to vector<1x1x1xf32>
    %183 = vector.extract %182[0, 0, 0] : f32 from vector<1x1x1xf32>
    %184 = arith.mulf %177, %5 : vector<128x1xf32>
    %185 = vector.shape_cast %184 : vector<128x1xf32> to vector<1x128x1xf32>
    %cst_68 = arith.constant dense<0.000000e+00> : vector<1xf32>
    %186 = vector.multi_reduction <add>, %185, %cst_68 [1, 2] : vector<1x128x1xf32> to vector<1xf32>
    %187 = vector.shape_cast %186 : vector<1xf32> to vector<1x1x1xf32>
    %188 = vector.extract %187[0, 0, 0] : f32 from vector<1x1x1xf32>
    %189 = arith.mulf %179, %11 : vector<1x128xf32>
    %190 = vector.shape_cast %189 : vector<1x128xf32> to vector<1x1x128xf32>
    %cst_69 = arith.constant dense<0.000000e+00> : vector<1xf32>
    %191 = vector.multi_reduction <add>, %190, %cst_69 [1, 2] : vector<1x1x128xf32> to vector<1xf32>
    %192 = vector.shape_cast %191 : vector<1xf32> to vector<1x1x1xf32>
    %193 = vector.extract %192[0, 0, 0] : f32 from vector<1x1x1xf32>
    %194 = arith.mulf %131, %136 : vector<128x128xf32>
    %cst_70 = arith.constant dense<0.000000e+00> : vector<128xf32>
    %195 = vector.multi_reduction <add>, %194, %cst_70 [1] : vector<128x128xf32> to vector<128xf32>
    %196 = vector.shape_cast %195 : vector<128xf32> to vector<128x1xf32>
    %cst_71 = arith.constant dense<0.000000e+00> : vector<128xf32>
    %197 = vector.multi_reduction <add>, %194, %cst_71 [0] : vector<128x128xf32> to vector<128xf32>
    %198 = vector.shape_cast %197 : vector<128xf32> to vector<1x128xf32>
    %199 = vector.shape_cast %196 : vector<128x1xf32> to vector<1x128x1xf32>
    %cst_72 = arith.constant dense<0.000000e+00> : vector<1xf32>
    %200 = vector.multi_reduction <add>, %199, %cst_72 [1, 2] : vector<1x128x1xf32> to vector<1xf32>
    %201 = vector.shape_cast %200 : vector<1xf32> to vector<1x1x1xf32>
    %202 = vector.extract %201[0, 0, 0] : f32 from vector<1x1x1xf32>
    %203 = arith.mulf %196, %5 : vector<128x1xf32>
    %204 = vector.shape_cast %203 : vector<128x1xf32> to vector<1x128x1xf32>
    %cst_73 = arith.constant dense<0.000000e+00> : vector<1xf32>
    %205 = vector.multi_reduction <add>, %204, %cst_73 [1, 2] : vector<1x128x1xf32> to vector<1xf32>
    %206 = vector.shape_cast %205 : vector<1xf32> to vector<1x1x1xf32>
    %207 = vector.extract %206[0, 0, 0] : f32 from vector<1x1x1xf32>
    %208 = arith.mulf %198, %11 : vector<1x128xf32>
    %209 = vector.shape_cast %208 : vector<1x128xf32> to vector<1x1x128xf32>
    %cst_74 = arith.constant dense<0.000000e+00> : vector<1xf32>
    %210 = vector.multi_reduction <add>, %209, %cst_74 [1, 2] : vector<1x1x128xf32> to vector<1xf32>
    %211 = vector.shape_cast %210 : vector<1xf32> to vector<1x1x1xf32>
    %212 = vector.extract %211[0, 0, 0] : f32 from vector<1x1x1xf32>
    %c0_75 = arith.constant 0 : index
    %c0_76 = arith.constant 0 : index
    %c0_77 = arith.constant 0 : index
    %c0_78 = arith.constant 0 : index
    %213 = vector.load %arg1[%c0_75, %c0_76, %c0_77, %c0_78] : memref<1x4x128x128xf32, #tpu.memory_space<vmem>>, vector<1x1x128x128xf32>
    %214 = vector.shape_cast %213 : vector<1x1x128x128xf32> to vector<128x128xf32>
    %c0_79 = arith.constant 0 : index
    %c1_80 = arith.constant 1 : index
    %c0_81 = arith.constant 0 : index
    %c0_82 = arith.constant 0 : index
    %215 = vector.load %arg2[%c0_79, %c1_80, %c0_81, %c0_82] : memref<1x5x128x128xf32, #tpu.memory_space<vmem>>, vector<1x1x128x128xf32>
    %216 = vector.shape_cast %215 : vector<1x1x128x128xf32> to vector<128x128xf32>
    %217 = vector.shape_cast %214 : vector<128x128xf32> to vector<1x128x128xf32>
    %cst_83 = arith.constant dense<0xFF800000> : vector<1xf32>
    %218 = vector.multi_reduction <maximumf>, %217, %cst_83 [1, 2] : vector<1x128x128xf32> to vector<1xf32>
    %219 = vector.shape_cast %218 : vector<1xf32> to vector<1x1x1xf32>
    %220 = vector.extract %219[0, 0, 0] : f32 from vector<1x1x1xf32>
    %cst_84 = arith.constant 9.99999974E-6 : f32
    %221 = arith.maximumf %220, %cst_84 : f32
    %cst_85 = arith.constant 1.000000e+00 : f32
    %222 = arith.divf %cst_85, %221 : f32
    %223 = vector.shape_cast %216 : vector<128x128xf32> to vector<1x128x128xf32>
    %cst_86 = arith.constant dense<0xFF800000> : vector<1xf32>
    %224 = vector.multi_reduction <maximumf>, %223, %cst_86 [1, 2] : vector<1x128x128xf32> to vector<1xf32>
    %225 = vector.shape_cast %224 : vector<1xf32> to vector<1x1x1xf32>
    %226 = vector.extract %225[0, 0, 0] : f32 from vector<1x1x1xf32>
    %cst_87 = arith.constant 9.99999974E-6 : f32
    %227 = arith.maximumf %226, %cst_87 : f32
    %cst_88 = arith.constant 1.000000e+00 : f32
    %228 = arith.divf %cst_88, %227 : f32
    %229 = vector.broadcast %222 : f32 to vector<128x128xf32>
    %230 = arith.mulf %214, %229 : vector<128x128xf32>
    %231 = vector.broadcast %228 : f32 to vector<128x128xf32>
    %232 = arith.mulf %216, %231 : vector<128x128xf32>
    %233 = arith.subf %230, %232 : vector<128x128xf32>
    %234 = arith.mulf %233, %233 : vector<128x128xf32>
    %235 = vector.shape_cast %234 : vector<128x128xf32> to vector<1x128x128xf32>
    %cst_89 = arith.constant dense<0.000000e+00> : vector<1xf32>
    %236 = vector.multi_reduction <add>, %235, %cst_89 [1, 2] : vector<1x128x128xf32> to vector<1xf32>
    %237 = vector.shape_cast %236 : vector<1xf32> to vector<1x1x1xf32>
    %238 = vector.extract %237[0, 0, 0] : f32 from vector<1x1x1xf32>
    %cst_90 = arith.constant 5.000000e+00 : f32
    %239 = arith.mulf %cst_90, %238 : f32
    %cst_91 = arith.constant 0.000000e+00 : f32
    %240 = arith.addf %cst_91, %239 : f32
    %c0_92 = arith.constant 0 : index
    %c3_93 = arith.constant 3 : index
    %c0_94 = arith.constant 0 : index
    %c0_95 = arith.constant 0 : index
    %241 = vector.load %arg1[%c0_92, %c3_93, %c0_94, %c0_95] : memref<1x4x128x128xf32, #tpu.memory_space<vmem>>, vector<1x1x128x128xf32>
    %242 = vector.shape_cast %241 : vector<1x1x128x128xf32> to vector<128x128xf32>
    %c0_96 = arith.constant 0 : index
    %c4_97 = arith.constant 4 : index
    %c0_98 = arith.constant 0 : index
    %c0_99 = arith.constant 0 : index
    %243 = vector.load %arg2[%c0_96, %c4_97, %c0_98, %c0_99] : memref<1x5x128x128xf32, #tpu.memory_space<vmem>>, vector<1x1x128x128xf32>
    %244 = vector.shape_cast %243 : vector<1x1x128x128xf32> to vector<128x128xf32>
    %245 = vector.shape_cast %242 : vector<128x128xf32> to vector<1x128x128xf32>
    %cst_100 = arith.constant dense<0xFF800000> : vector<1xf32>
    %246 = vector.multi_reduction <maximumf>, %245, %cst_100 [1, 2] : vector<1x128x128xf32> to vector<1xf32>
    %247 = vector.shape_cast %246 : vector<1xf32> to vector<1x1x1xf32>
    %248 = vector.extract %247[0, 0, 0] : f32 from vector<1x1x1xf32>
    %cst_101 = arith.constant 9.99999974E-6 : f32
    %249 = arith.maximumf %248, %cst_101 : f32
    %cst_102 = arith.constant 1.000000e+00 : f32
    %250 = arith.divf %cst_102, %249 : f32
    %251 = vector.shape_cast %244 : vector<128x128xf32> to vector<1x128x128xf32>
    %cst_103 = arith.constant dense<0xFF800000> : vector<1xf32>
    %252 = vector.multi_reduction <maximumf>, %251, %cst_103 [1, 2] : vector<1x128x128xf32> to vector<1xf32>
    %253 = vector.shape_cast %252 : vector<1xf32> to vector<1x1x1xf32>
    %254 = vector.extract %253[0, 0, 0] : f32 from vector<1x1x1xf32>
    %cst_104 = arith.constant 9.99999974E-6 : f32
    %255 = arith.maximumf %254, %cst_104 : f32
    %cst_105 = arith.constant 1.000000e+00 : f32
    %256 = arith.divf %cst_105, %255 : f32
    %257 = vector.broadcast %250 : f32 to vector<128x128xf32>
    %258 = arith.mulf %242, %257 : vector<128x128xf32>
    %259 = vector.broadcast %256 : f32 to vector<128x128xf32>
    %260 = arith.mulf %244, %259 : vector<128x128xf32>
    %261 = arith.subf %258, %260 : vector<128x128xf32>
    %262 = arith.mulf %261, %261 : vector<128x128xf32>
    %263 = vector.shape_cast %262 : vector<128x128xf32> to vector<1x128x128xf32>
    %cst_106 = arith.constant dense<0.000000e+00> : vector<1xf32>
    %264 = vector.multi_reduction <add>, %263, %cst_106 [1, 2] : vector<1x128x128xf32> to vector<1xf32>
    %265 = vector.shape_cast %264 : vector<1xf32> to vector<1x1x1xf32>
    %266 = vector.extract %265[0, 0, 0] : f32 from vector<1x1x1xf32>
    %cst_107 = arith.constant 5.000000e+00 : f32
    %267 = arith.mulf %cst_107, %266 : f32
    %268 = arith.addf %240, %267 : f32
    %cst_108 = arith.constant 0.000000e+00 : f32
    %269 = vector.broadcast %cst_108 : f32 to vector<1x128xf32>
    %c0_i32 = arith.constant 0 : i32
    %270 = vector.broadcast %c0_i32 : i32 to vector<1x128xi32>
    %271 = arith.cmpi eq, %12, %270 : vector<1x128xi32>
    %cst_109 = arith.constant 0.000000e+00 : f32
    %272 = vector.broadcast %40 : f32 to vector<1x128xf32>
    %273 = vector.broadcast %cst_109 : f32 to vector<1x128xf32>
    %274 = arith.select %271, %272, %273 : vector<1x128xi1>, vector<1x128xf32>
    %275 = arith.addf %269, %274 : vector<1x128xf32>
    %c1_i32 = arith.constant 1 : i32
    %276 = vector.broadcast %c1_i32 : i32 to vector<1x128xi32>
    %277 = arith.cmpi eq, %12, %276 : vector<1x128xi32>
    %cst_110 = arith.constant 0.000000e+00 : f32
    %278 = vector.broadcast %45 : f32 to vector<1x128xf32>
    %279 = vector.broadcast %cst_110 : f32 to vector<1x128xf32>
    %280 = arith.select %277, %278, %279 : vector<1x128xi1>, vector<1x128xf32>
    %281 = arith.addf %275, %280 : vector<1x128xf32>
    %c2_i32 = arith.constant 2 : i32
    %282 = vector.broadcast %c2_i32 : i32 to vector<1x128xi32>
    %283 = arith.cmpi eq, %12, %282 : vector<1x128xi32>
    %cst_111 = arith.constant 0.000000e+00 : f32
    %284 = vector.broadcast %50 : f32 to vector<1x128xf32>
    %285 = vector.broadcast %cst_111 : f32 to vector<1x128xf32>
    %286 = arith.select %283, %284, %285 : vector<1x128xi1>, vector<1x128xf32>
    %287 = arith.addf %281, %286 : vector<1x128xf32>
    %c3_i32 = arith.constant 3 : i32
    %288 = vector.broadcast %c3_i32 : i32 to vector<1x128xi32>
    %289 = arith.cmpi eq, %12, %288 : vector<1x128xi32>
    %cst_112 = arith.constant 0.000000e+00 : f32
    %290 = vector.broadcast %59 : f32 to vector<1x128xf32>
    %291 = vector.broadcast %cst_112 : f32 to vector<1x128xf32>
    %292 = arith.select %289, %290, %291 : vector<1x128xi1>, vector<1x128xf32>
    %293 = arith.addf %287, %292 : vector<1x128xf32>
    %c4_i32 = arith.constant 4 : i32
    %294 = vector.broadcast %c4_i32 : i32 to vector<1x128xi32>
    %295 = arith.cmpi eq, %12, %294 : vector<1x128xi32>
    %cst_113 = arith.constant 0.000000e+00 : f32
    %296 = vector.broadcast %64 : f32 to vector<1x128xf32>
    %297 = vector.broadcast %cst_113 : f32 to vector<1x128xf32>
    %298 = arith.select %295, %296, %297 : vector<1x128xi1>, vector<1x128xf32>
    %299 = arith.addf %293, %298 : vector<1x128xf32>
    %c5_i32 = arith.constant 5 : i32
    %300 = vector.broadcast %c5_i32 : i32 to vector<1x128xi32>
    %301 = arith.cmpi eq, %12, %300 : vector<1x128xi32>
    %cst_114 = arith.constant 0.000000e+00 : f32
    %302 = vector.broadcast %69 : f32 to vector<1x128xf32>
    %303 = vector.broadcast %cst_114 : f32 to vector<1x128xf32>
    %304 = arith.select %301, %302, %303 : vector<1x128xi1>, vector<1x128xf32>
    %305 = arith.addf %299, %304 : vector<1x128xf32>
    %c6_i32 = arith.constant 6 : i32
    %306 = vector.broadcast %c6_i32 : i32 to vector<1x128xi32>
    %307 = arith.cmpi eq, %12, %306 : vector<1x128xi32>
    %cst_115 = arith.constant 0.000000e+00 : f32
    %308 = vector.broadcast %78 : f32 to vector<1x128xf32>
    %309 = vector.broadcast %cst_115 : f32 to vector<1x128xf32>
    %310 = arith.select %307, %308, %309 : vector<1x128xi1>, vector<1x128xf32>
    %311 = arith.addf %305, %310 : vector<1x128xf32>
    %c7_i32 = arith.constant 7 : i32
    %312 = vector.broadcast %c7_i32 : i32 to vector<1x128xi32>
    %313 = arith.cmpi eq, %12, %312 : vector<1x128xi32>
    %cst_116 = arith.constant 0.000000e+00 : f32
    %314 = vector.broadcast %83 : f32 to vector<1x128xf32>
    %315 = vector.broadcast %cst_116 : f32 to vector<1x128xf32>
    %316 = arith.select %313, %314, %315 : vector<1x128xi1>, vector<1x128xf32>
    %317 = arith.addf %311, %316 : vector<1x128xf32>
    %c8_i32 = arith.constant 8 : i32
    %318 = vector.broadcast %c8_i32 : i32 to vector<1x128xi32>
    %319 = arith.cmpi eq, %12, %318 : vector<1x128xi32>
    %cst_117 = arith.constant 0.000000e+00 : f32
    %320 = vector.broadcast %88 : f32 to vector<1x128xf32>
    %321 = vector.broadcast %cst_117 : f32 to vector<1x128xf32>
    %322 = arith.select %319, %320, %321 : vector<1x128xi1>, vector<1x128xf32>
    %323 = arith.addf %317, %322 : vector<1x128xf32>
    %c9_i32 = arith.constant 9 : i32
    %324 = vector.broadcast %c9_i32 : i32 to vector<1x128xi32>
    %325 = arith.cmpi eq, %12, %324 : vector<1x128xi32>
    %cst_118 = arith.constant 0.000000e+00 : f32
    %326 = vector.broadcast %97 : f32 to vector<1x128xf32>
    %327 = vector.broadcast %cst_118 : f32 to vector<1x128xf32>
    %328 = arith.select %325, %326, %327 : vector<1x128xi1>, vector<1x128xf32>
    %329 = arith.addf %323, %328 : vector<1x128xf32>
    %c10_i32 = arith.constant 10 : i32
    %330 = vector.broadcast %c10_i32 : i32 to vector<1x128xi32>
    %331 = arith.cmpi eq, %12, %330 : vector<1x128xi32>
    %cst_119 = arith.constant 0.000000e+00 : f32
    %332 = vector.broadcast %102 : f32 to vector<1x128xf32>
    %333 = vector.broadcast %cst_119 : f32 to vector<1x128xf32>
    %334 = arith.select %331, %332, %333 : vector<1x128xi1>, vector<1x128xf32>
    %335 = arith.addf %329, %334 : vector<1x128xf32>
    %c11_i32 = arith.constant 11 : i32
    %336 = vector.broadcast %c11_i32 : i32 to vector<1x128xi32>
    %337 = arith.cmpi eq, %12, %336 : vector<1x128xi32>
    %cst_120 = arith.constant 0.000000e+00 : f32
    %338 = vector.broadcast %107 : f32 to vector<1x128xf32>
    %339 = vector.broadcast %cst_120 : f32 to vector<1x128xf32>
    %340 = arith.select %337, %338, %339 : vector<1x128xi1>, vector<1x128xf32>
    %341 = arith.addf %335, %340 : vector<1x128xf32>
    %c12_i32 = arith.constant 12 : i32
    %342 = vector.broadcast %c12_i32 : i32 to vector<1x128xi32>
    %343 = arith.cmpi eq, %12, %342 : vector<1x128xi32>
    %cst_121 = arith.constant 0.000000e+00 : f32
    %344 = vector.broadcast %145 : f32 to vector<1x128xf32>
    %345 = vector.broadcast %cst_121 : f32 to vector<1x128xf32>
    %346 = arith.select %343, %344, %345 : vector<1x128xi1>, vector<1x128xf32>
    %347 = arith.addf %341, %346 : vector<1x128xf32>
    %c13_i32 = arith.constant 13 : i32
    %348 = vector.broadcast %c13_i32 : i32 to vector<1x128xi32>
    %349 = arith.cmpi eq, %12, %348 : vector<1x128xi32>
    %cst_122 = arith.constant 0.000000e+00 : f32
    %350 = vector.broadcast %150 : f32 to vector<1x128xf32>
    %351 = vector.broadcast %cst_122 : f32 to vector<1x128xf32>
    %352 = arith.select %349, %350, %351 : vector<1x128xi1>, vector<1x128xf32>
    %353 = arith.addf %347, %352 : vector<1x128xf32>
    %c14_i32 = arith.constant 14 : i32
    %354 = vector.broadcast %c14_i32 : i32 to vector<1x128xi32>
    %355 = arith.cmpi eq, %12, %354 : vector<1x128xi32>
    %cst_123 = arith.constant 0.000000e+00 : f32
    %356 = vector.broadcast %155 : f32 to vector<1x128xf32>
    %357 = vector.broadcast %cst_123 : f32 to vector<1x128xf32>
    %358 = arith.select %355, %356, %357 : vector<1x128xi1>, vector<1x128xf32>
    %359 = arith.addf %353, %358 : vector<1x128xf32>
    %c15_i32 = arith.constant 15 : i32
    %360 = vector.broadcast %c15_i32 : i32 to vector<1x128xi32>
    %361 = arith.cmpi eq, %12, %360 : vector<1x128xi32>
    %cst_124 = arith.constant 0.000000e+00 : f32
    %362 = vector.broadcast %164 : f32 to vector<1x128xf32>
    %363 = vector.broadcast %cst_124 : f32 to vector<1x128xf32>
    %364 = arith.select %361, %362, %363 : vector<1x128xi1>, vector<1x128xf32>
    %365 = arith.addf %359, %364 : vector<1x128xf32>
    %c16_i32 = arith.constant 16 : i32
    %366 = vector.broadcast %c16_i32 : i32 to vector<1x128xi32>
    %367 = arith.cmpi eq, %12, %366 : vector<1x128xi32>
    %cst_125 = arith.constant 0.000000e+00 : f32
    %368 = vector.broadcast %169 : f32 to vector<1x128xf32>
    %369 = vector.broadcast %cst_125 : f32 to vector<1x128xf32>
    %370 = arith.select %367, %368, %369 : vector<1x128xi1>, vector<1x128xf32>
    %371 = arith.addf %365, %370 : vector<1x128xf32>
    %c17_i32 = arith.constant 17 : i32
    %372 = vector.broadcast %c17_i32 : i32 to vector<1x128xi32>
    %373 = arith.cmpi eq, %12, %372 : vector<1x128xi32>
    %cst_126 = arith.constant 0.000000e+00 : f32
    %374 = vector.broadcast %174 : f32 to vector<1x128xf32>
    %375 = vector.broadcast %cst_126 : f32 to vector<1x128xf32>
    %376 = arith.select %373, %374, %375 : vector<1x128xi1>, vector<1x128xf32>
    %377 = arith.addf %371, %376 : vector<1x128xf32>
    %c18_i32 = arith.constant 18 : i32
    %378 = vector.broadcast %c18_i32 : i32 to vector<1x128xi32>
    %379 = arith.cmpi eq, %12, %378 : vector<1x128xi32>
    %cst_127 = arith.constant 0.000000e+00 : f32
    %380 = vector.broadcast %183 : f32 to vector<1x128xf32>
    %381 = vector.broadcast %cst_127 : f32 to vector<1x128xf32>
    %382 = arith.select %379, %380, %381 : vector<1x128xi1>, vector<1x128xf32>
    %383 = arith.addf %377, %382 : vector<1x128xf32>
    %c19_i32 = arith.constant 19 : i32
    %384 = vector.broadcast %c19_i32 : i32 to vector<1x128xi32>
    %385 = arith.cmpi eq, %12, %384 : vector<1x128xi32>
    %cst_128 = arith.constant 0.000000e+00 : f32
    %386 = vector.broadcast %188 : f32 to vector<1x128xf32>
    %387 = vector.broadcast %cst_128 : f32 to vector<1x128xf32>
    %388 = arith.select %385, %386, %387 : vector<1x128xi1>, vector<1x128xf32>
    %389 = arith.addf %383, %388 : vector<1x128xf32>
    %c20_i32 = arith.constant 20 : i32
    %390 = vector.broadcast %c20_i32 : i32 to vector<1x128xi32>
    %391 = arith.cmpi eq, %12, %390 : vector<1x128xi32>
    %cst_129 = arith.constant 0.000000e+00 : f32
    %392 = vector.broadcast %193 : f32 to vector<1x128xf32>
    %393 = vector.broadcast %cst_129 : f32 to vector<1x128xf32>
    %394 = arith.select %391, %392, %393 : vector<1x128xi1>, vector<1x128xf32>
    %395 = arith.addf %389, %394 : vector<1x128xf32>
    %c21_i32 = arith.constant 21 : i32
    %396 = vector.broadcast %c21_i32 : i32 to vector<1x128xi32>
    %397 = arith.cmpi eq, %12, %396 : vector<1x128xi32>
    %cst_130 = arith.constant 0.000000e+00 : f32
    %398 = vector.broadcast %202 : f32 to vector<1x128xf32>
    %399 = vector.broadcast %cst_130 : f32 to vector<1x128xf32>
    %400 = arith.select %397, %398, %399 : vector<1x128xi1>, vector<1x128xf32>
    %401 = arith.addf %395, %400 : vector<1x128xf32>
    %c22_i32 = arith.constant 22 : i32
    %402 = vector.broadcast %c22_i32 : i32 to vector<1x128xi32>
    %403 = arith.cmpi eq, %12, %402 : vector<1x128xi32>
    %cst_131 = arith.constant 0.000000e+00 : f32
    %404 = vector.broadcast %207 : f32 to vector<1x128xf32>
    %405 = vector.broadcast %cst_131 : f32 to vector<1x128xf32>
    %406 = arith.select %403, %404, %405 : vector<1x128xi1>, vector<1x128xf32>
    %407 = arith.addf %401, %406 : vector<1x128xf32>
    %c23_i32 = arith.constant 23 : i32
    %408 = vector.broadcast %c23_i32 : i32 to vector<1x128xi32>
    %409 = arith.cmpi eq, %12, %408 : vector<1x128xi32>
    %cst_132 = arith.constant 0.000000e+00 : f32
    %410 = vector.broadcast %212 : f32 to vector<1x128xf32>
    %411 = vector.broadcast %cst_132 : f32 to vector<1x128xf32>
    %412 = arith.select %409, %410, %411 : vector<1x128xi1>, vector<1x128xf32>
    %413 = arith.addf %407, %412 : vector<1x128xf32>
    %c24_i32 = arith.constant 24 : i32
    %414 = vector.broadcast %c24_i32 : i32 to vector<1x128xi32>
    %415 = arith.cmpi eq, %12, %414 : vector<1x128xi32>
    %cst_133 = arith.constant 0.000000e+00 : f32
    %416 = vector.broadcast %268 : f32 to vector<1x128xf32>
    %417 = vector.broadcast %cst_133 : f32 to vector<1x128xf32>
    %418 = arith.select %415, %416, %417 : vector<1x128xi1>, vector<1x128xf32>
    %419 = arith.addf %413, %418 : vector<1x128xf32>
    %c0_i32_134 = arith.constant 0 : i32
    %420 = vector.broadcast %c0_i32_134 : i32 to vector<8x128xi32>
    %421 = arith.cmpi eq, %13, %420 : vector<8x128xi32>
    %cst_135 = arith.constant 0.000000e+00 : f32
    %422 = vector.shape_cast %419 : vector<1x128xf32> to vector<1x128xf32>
    %423 = vector.broadcast %422 : vector<1x128xf32> to vector<8x128xf32>
    %424 = vector.broadcast %cst_135 : f32 to vector<8x128xf32>
    %425 = arith.select %421, %423, %424 : vector<8x128xi1>, vector<8x128xf32>
    %c0_136 = arith.constant 0 : index
    %c0_137 = arith.constant 0 : index
    %c0_138 = arith.constant 0 : index
    %426 = vector.load %arg3[%c0_136, %c0_137, %c0_138] : memref<1x8x128xf32, #tpu.memory_space<vmem>>, vector<1x8x128xf32>
    %427 = vector.shape_cast %426 : vector<1x8x128xf32> to vector<8x128xf32>
    %428 = vector.shape_cast %425 : vector<8x128xf32> to vector<1x8x128xf32>
    tpu.vector_store %arg3[%c0_136, %c0_137, %c0_138], %428 {strides = array<i32>} : memref<1x8x128xf32, #tpu.memory_space<vmem>>, vector<1x8x128xf32>,
    return
  }
  func.func @transform_0(%arg0: i32) -> (i32, i32, i32, i32) {
    %c0_i32 = arith.constant 0 : i32
    %c0_i32_0 = arith.constant 0 : i32
    %c0_i32_1 = arith.constant 0 : i32
    %c0_i32_2 = arith.constant 0 : i32
    return %arg0, %c0_i32, %c0_i32_0, %c0_i32_1 : i32, i32, i32, i32
  }
  func.func @transform_1(%arg0: i32) -> (i32, i32, i32, i32) {
    %c0_i32 = arith.constant 0 : i32
    %c0_i32_0 = arith.constant 0 : i32
    %c0_i32_1 = arith.constant 0 : i32
    %c0_i32_2 = arith.constant 0 : i32
    return %arg0, %c0_i32, %c0_i32_0, %c0_i32_1 : i32, i32, i32, i32
  }
  func.func @transform_2(%arg0: i32) -> (i32, i32, i32) {
    %c0_i32 = arith.constant 0 : i32
    %c0_i32_0 = arith.constant 0 : i32
    %c0_i32_1 = arith.constant 0 : i32
    return %arg0, %c0_i32, %c0_i32_0 : i32, i32, i32
  }
}

</mosaic_0001>

<bundles_post_ra>
// kernel: tpu_custom_call.1
= control target key start
LH: loop header
LB: loop body
LE: loop exit
PB: predicated region body
PF: predicated region fallthrough
CT: control target
= control target key end

     0   :  { %7 = vsyncpa [#allocation3], 0  ;;  %s6959_s0 = inlined_call_operand.hbm [shape: f32[2,4,128,128], index: 0, kind: input, shape index: {}]   ;;  %s6960_s1 = inlined_call_operand.hbm [shape: f32[2,5,128,128], index: 1, kind: input, shape index: {}]   ;;  %s6961_s2 = inlined_call_operand.hbm [shape: f32[2,8,128], index: 2, kind: output, shape index: {}]  }
   0x1   :  { %9 = vsyncpa [#allocation3 + $0x1], 0 }
   0x2   :  { %10 = vsyncpa [#allocation6], 0 }
   0x3   :  { %12 = vsyncpa [#allocation6 + $0x1], 0 }
   0x4   :  { %13 = vsyncpa [#allocation4], 0 }
   0x5   :  { %15 = vsyncpa [#allocation4 + $0x1], 0  ;;  %s3808_s9 = smov 0   ;;  %s3810_s10 = smov 0  }
   0x6   :  { %s3812_s11 = smov 0   ;;  %s3814_s12 = smov 0  }
   0x7 LB: > { %s3829_s13 = sadd.s32 4294967295, %s3785_s12   ;;  %s2931_s14 = sadd.s32 4294967294, %s3785_s12   ;;  %s3785_s12 = sphi %s3814_s12, %s7058_s12   ;;  %s3781_s11 = sphi %s3812_s11, %s7057_s11   ;;  %s3777_s10 = sphi %s3810_s10, %s7056_s10   ;;  %s3773_s9 = sphi %s3808_s9, %s7055_s9  }
   0x8   : > { %s3833_s15 = sadd.s32 1, %s3785_s12   ;;  %s28_s16 = sadd.s32 1, %s3781_s11 }
   0x9   : > { %s25_s17 = ssub.s32 %s3785_s12, %s3833_s15  ;;  %p35_p0 = scmp.ne.s32.totalorder %s3781_s11, %s3777_s10 }
   0xa   : > { %p26_p1 = scmp.eq.s32.totalorder %s25_s17, 0  ;;  %p36_p2 = scmp.eq.s32.totalorder %s3785_s12, 0 }
   0xb   : > { %p41_p3 = scmp.ne.s32.totalorder %s3777_s10, %s3773_s9  ;;  %p42_p4 = scmp.eq.s32.totalorder %s3829_s13, 0 }
   0xc   : > { %s3845_s18 = scalar_select %p26_p1, %s3781_s11, %s28_s16  }
   0xd   : > { %p3847_p5 = por %p36_p2, %p35_p0  ;;  %p3851_p6 = por %p42_p4, %p41_p3 }
   0xe   : > { %p91_p7 = scmp.eq.s32.totalorder %s3829_s13, 1  ;;  %p97_p8 = scmp.eq.s32.totalorder %s2931_s14, 1 }
   0xf   : > { %s6985_s20 = scalar_select %p3851_p6, 1, 0 }
  0x10   : > { %p3163_p10 = scmp.lt.s32.totalorder %s3785_s12, 2  ;;  %p3858_p11 = por %p91_p7, %p35_p0 }
  0x11   : > { %p3862_p12 = por %p97_p8, %p41_p3  ;;  %s3867_s23 = sand.u32 1, %s3781_s11  }
  0x12   : > { %s6986_s21 = scalar_select %p3858_p11, 1, 0 }
  0x13   : > { %s6987_s22 = scalar_select %p3862_p12, 1, 0 }
  0x14   : > { %s3074_s24 = sshll.u32 %s3785_s12, 13  ;;  %s2934_s25 = sshll.u32 %s3867_s23, 9 }
  0x15   : > { %s3874_s28 = scalar_lea.hbm %s6959_s0, %s3074_s24  ;;  %s121_s29 = scalar_lea.vmem [#allocation2], %s2934_s25 }
  0x16   : > { %s128_s30 = sshll.u32 %s121_s29, 4  ;;  %p3878_p13 = pnand %p3163_p10, %p3847_p5  ;;  %s3882_s30 = int_to_ptr.vmem [resolvable:$true] %s128_s30 }
  0x17   : > { %s118_s4 = scalar_lea.sflag [#allocation3], %s3867_s23  ;;  %s3661_s5 = scalar_lea.hbm %s3874_s28, 8192 }
  0x18   : > { %p3662_p0 = scmp.ne.s32.totalorder %s3874_s28, %s3661_s5  ;;  %p3663_p1 = pneg %p3878_p13 }
  0x19   : > { %s3666_s8 = scalar_lea.hbm %s6959_s0, 16384  ;;  %p3667_p4 = scmp.lt.s32.totalorder %s3874_s28, %s6959_s0 }
  0x1a   : > { %p3664_p2 = pnand %p3663_p1, %p3662_p0  ;;  %p3668_p5 = scmp.lt.s32.totalorder %s3666_s8, %s3661_s5 }
  0x1c   : > { %p3665_p3 = pneg %p3664_p2  ;;  %p3669_p7 = por %p3668_p5, %p3667_p4 }
  0x1e   : > { %p3670_p8 = pnand %p3669_p7, %p3665_p3 }
  0x20   : > { %3673 = shalt.err (!%p3670_p8)
}
  0x21   : > { %s3674_s17 = scalar_lea.vmem %s3882_s30, 8192  ;;  %s3787_s19 = smov [#allocation2]  }
  0x22   : > { %p3675_p10 = scmp.ne.s32.totalorder %s3882_s30, %s3674_s17  ;;  %s3679_s24 = sshll.u32 %s3787_s19, 4  ;;  %s3680_s24 = int_to_ptr.vmem [resolvable:$false] %s3679_s24 }
  0x23   : > { %s3681_s25 = scalar_lea.vmem %s3680_s24, 16384  ;;  %p3682_p9 = scmp.lt.s32.totalorder %s3882_s30, %s3680_s24 }
  0x24   : > { %p3677_p0 = pnand %p3675_p10, %p3663_p1  ;;  %p3683_p12 = scmp.lt.s32.totalorder %s3681_s25, %s3674_s17 }
  0x26   : > { %p3678_p2 = pneg %p3677_p0  ;;  %p3684_p11 = por %p3683_p12, %p3682_p9 }
  0x28   : > { %p3685_p4 = pnand %p3684_p11, %p3678_p2 }
  0x2a   : > { %3688 = shalt.err (!%p3685_p4)
}
  0x2b   : > { %s3788_s26 = smov 128   ;;  %s3789_s27 = smov 8  }
  0x2c   : > { %3155 = dma.hbm_to_vmem [thread:$0]  (!%p3878_p13), %s3874_s28, 8192, %s3882_s30, %s118_s4, %s3788_s26, %s3788_s26, %s3789_s27  }
  0x2d   : > { %p2938_p9 = scmp.ge.s32.totalorder %s3785_s12, 1  ;;  %p157_p11 = scmp.lt.s32.totalorder %s3785_s12, 3 }
  0x2e   : > { %s3075_s29 = smul.u32 640, %s3867_s23  ;;  %s139_s28 = scalar_lea.sflag [#allocation6], %s3867_s23 }
  0x2f   : > { %p3917_p12 = pnand %p2938_p9, %p157_p11  ;;  %s3076_s6 = smul.u32 10240, %s3785_s12 }
  0x30   : > { %s142_s16 = scalar_lea.vmem [#allocation5], %s3075_s29  ;;  %s3694_s24 = scalar_lea.hbm %s6960_s1, 20480 }
  0x31   : > { %s3925_s14 = scalar_lea.hbm %s6960_s1, %s3076_s6  ;;  %s149_s17 = sshll.u32 %s142_s16, 4  ;;  %s3927_s17 = int_to_ptr.vmem [resolvable:$true] %s149_s17 }
  0x32   : > { %s3689_s30 = scalar_lea.hbm %s3925_s14, 10240  ;;  %p3695_p8 = scmp.lt.s32.totalorder %s3925_s14, %s6960_s1 }
  0x33   : > { %p3690_p3 = scmp.ne.s32.totalorder %s3925_s14, %s3689_s30  ;;  %p3696_p10 = scmp.lt.s32.totalorder %s3694_s24, %s3689_s30 }
  0x35   : > { %p3692_p5 = pnand %p3690_p3, %p3663_p1  ;;  %p3697_p0 = por %p3696_p10, %p3695_p8 }
  0x37   : > { %p3693_p7 = pneg %p3692_p5 }
  0x39   : > { %p3698_p2 = pnand %p3697_p0, %p3693_p7 }
  0x3b   : > { %3701 = shalt.err (!%p3698_p2)
}
  0x3c   : > { %s3702_s23 = scalar_lea.vmem %s3927_s17, 10240  ;;  %s3790_s29 = smov [#allocation5]  }
  0x3d   : > { %p3703_p4 = scmp.ne.s32.totalorder %s3927_s17, %s3702_s23  ;;  %s3707_s7 = sshll.u32 %s3790_s29, 4  ;;  %s3708_s7 = int_to_ptr.vmem [resolvable:$false] %s3707_s7 }
  0x3e   : > { %s3709_s8 = scalar_lea.vmem %s3708_s7, 20480  ;;  %p3710_p3 = scmp.lt.s32.totalorder %s3927_s17, %s3708_s7 }
  0x3f   : > { %p3705_p9 = pnand %p3703_p4, %p3663_p1  ;;  %p3711_p5 = scmp.lt.s32.totalorder %s3709_s8, %s3702_s23 }
  0x41   : > { %p3706_p11 = pneg %p3705_p9  ;;  %p3712_p6 = por %p3711_p5, %p3710_p3 }
  0x43   : > { %p3713_p8 = pnand %p3712_p6, %p3706_p11 }
  0x45   : > { %3716 = shalt.err (!%p3713_p8)
}
  0x46   : > { %3158 = dma.hbm_to_vmem [thread:$0]  (!%p3878_p13), %s3925_s14, 10240, %s3927_s17, %s139_s28, %s3788_s26, %s3788_s26, %s3789_s27  }
  0x47   : > { %161 = sbr.rel (%p3917_p12) target bundleno = 1556 (0x614), region = 28 }
  0x4c   : > { %s3958_s16 = sand.u32 1, %s3777_s10   ;;  %p6990_p6 = scmp.ne.s32.totalorder %s6985_s20, 0 }
  0x4d   : > { %s2939_s30 = sshll.u32 %s3958_s16, 9  ;;  %s164_s4 = scalar_lea.sflag [#allocation3], %s3958_s16 }
  0x4e   : > { %s3962_s19 = scalar_lea.vmem [#allocation2], %s2939_s30 }
  0x4f   : > { %3760 = dma.done.wait (%p6990_p6), %s164_s4, 8192  }
  0x50   : > { %3762 = vsyncadd (%p6990_p6), %s164_s4, 4294959104  ;;  %s3077_s3 = smul.u32 640, %s3958_s16  ;;  %s173_s26 = scalar_lea.sflag [#allocation6], %s3958_s16 }
  0x52   : > { %s3970_s27 = scalar_lea.vmem [#allocation5], %s3077_s3 }
  0x53   : > { %3764 = dma.done.wait (%p6990_p6), %s173_s26, 10240  }
  0x54   : > { %3766 = vsyncadd (%p6990_p6), %s173_s26, 4294957056  ;;  %v272_v0 = vld [vmem:[%s3962_s19] sm:$0xff]  ;;  %v273_v6 = vld [vmem:[%s3962_s19 + $0x8] sm:$0xff]  ;;  %vm616_vm0 = vcmask 7168   ;;  %vm714_vm1 = vcmask 1040384   ;;  %p7052_p1 = scmp.ne.s32.totalorder %s6986_s21, 0 }
  0x55   : > { %v2958_v1 = vld [vmem:[%s3962_s19 + $0x80] sm:$0xff]  ;;  %v339_v4 = vmul.f32 1.442695, %v272_v0  ;;  %v2959_v9 = vld [vmem:[%s3962_s19 + $0x88] sm:$0xff]  ;;  %v341_v12 = vmul.f32 1.442695, %v273_v6 }
  0x56   : > { %v2974_v2 = vld [vmem:[%s3962_s19 + $0x100] sm:$0xff]  ;;  %v371_v5 = vmul.f32 1.442695, %v2958_v1  ;;  %v2975_v10 = vld [vmem:[%s3962_s19 + $0x108] sm:$0xff]  ;;  %v373_v13 = vmul.f32 1.442695, %v2959_v9 }
  0x57   : > { %v2990_v3 = vld [vmem:[%s3962_s19 + $0x180] sm:$0xff]  ;;  %v403_v7 = vmul.f32 1.442695, %v2974_v2  ;;  %3200 = vpow2.f32 %v339_v4  ;;  %v2991_v11 = vld [vmem:[%s3962_s19 + $0x188] sm:$0xff]  ;;  %v274_v14 = vld [vmem:[%s3962_s19 + $0x10] sm:$0xff] }
  0x58   : > { %v435_v8 = vmul.f32 1.442695, %v2990_v3  ;;  %3202 = vpow2.f32 %v371_v5  ;;  %v405_v15 = vmul.f32 1.442695, %v2975_v10  ;;  %v2960_v16 = vld [vmem:[%s3962_s19 + $0x90] sm:$0xff]  ;;  %v1254_v21 = vld [vmem:[%s3970_s27 + $0x8] sm:$0xff] }
  0x59   : > { %3204 = vpow2.f32 %v403_v7  ;;  %v437_v17 = vmul.f32 1.442695, %v2991_v11  ;;  %v2976_v18 = vld [vmem:[%s3962_s19 + $0x110] sm:$0xff]  ;;  %v343_v20 = vmul.f32 1.442695, %v274_v14  ;;  %v275_v23 = vld [vmem:[%s3962_s19 + $0x18] sm:$0xff] }
  0x5a   : > { %3206 = vpow2.f32 %v435_v8  ;;  %v2992_v19 = vld [vmem:[%s3962_s19 + $0x190] sm:$0xff]  ;;  %v375_v22 = vmul.f32 1.442695, %v2960_v16  ;;  %v3007_v24 = vld [vmem:[%s3970_s27 + $0x88] sm:$0xff]  ;;  %v407_v26 = vmul.f32 1.442695, %v2976_v18 }
  0x5b   : > { %3208 = vpow2.f32 %v341_v12  ;;  %v3023_v25 = vld [vmem:[%s3970_s27 + $0x108] sm:$0xff]  ;;  %v2961_v27 = vld [vmem:[%s3962_s19 + $0x98] sm:$0xff]  ;;  %v1338_v29 = vmax.f32 %v1254_v21, %v3007_v24  ;;  %v3995_v30 = vld [vmem:[%s3970_s27] sm:$0xff]  ;;  %v439_v31 = vmul.f32 1.442695, %v2992_v19 }
  0x5c   : > { %3210 = vpow2.f32 %v373_v13  ;;  %v2977_v28 = vld [vmem:[%s3962_s19 + $0x118] sm:$0xff]  ;;  %v3039_v32 = vld [vmem:[%s3970_s27 + $0x188] sm:$0xff]  ;;  %v3999_v33 = vld [vmem:[%s3970_s27 + $0x80] sm:$0xff]  ;;  %v345_v36 = vmul.f32 1.442695, %v275_v23 }
  0x5d   : > { %3212 = vpow2.f32 %v405_v15  ;;  %v4002_v34 = vld [vmem:[%s3970_s27 + $0x100] sm:$0xff]  ;;  %v2993_v35 = vld [vmem:[%s3962_s19 + $0x198] sm:$0xff]  ;;  %v1354_v37 = vmax.f32 %v1338_v29, %v3023_v25  ;;  %v1337_v38 = vmax.f32 %v3995_v30, %v3999_v33  ;;  %v4008_v39 = vld [vmem:[%s3970_s27 + $0x10] sm:$0xff]  ;;  %v377_v41 = vmul.f32 1.442695, %v2961_v27 }
  0x5e   : > { %3214 = vpow2.f32 %v437_v17  ;;  %v4011_v40 = vld [vmem:[%s3970_s27 + $0x90] sm:$0xff]  ;;  %v3055_v42 = vld [vmem:[%s3970_s27 + $0x208] sm:$0xff]  ;;  %v4015_v43 = vld [vmem:[%s3970_s27 + $0x180] sm:$0xff]  ;;  %v409_v46 = vmul.f32 1.442695, %v2977_v28 }
  0x5f   : > { %3216 = vpow2.f32 %v343_v20  ;;  %v4018_v44 = vld [vmem:[%s3970_s27 + $0x110] sm:$0xff]  ;;  %v1339_v45 = vmax.f32 %v4008_v39, %v4011_v40  ;;  %v1370_v47 = vmax.f32 %v1354_v37, %v3039_v32  ;;  %v1353_v48 = vmax.f32 %v1337_v38, %v4002_v34  ;;  %v4027_v50 = vld [vmem:[%s3970_s27 + $0x18] sm:$0xff]  ;;  %v4037_v57 = vld [vmem:[%s3970_s27 + $0x200] sm:$0xff] }
  0x60   : > { %3218 = vpow2.f32 %v375_v22  ;;  %v4024_v49 = vld [vmem:[%s3970_s27 + $0x190] sm:$0xff]  ;;  %v4030_v51 = vld [vmem:[%s3970_s27 + $0x98] sm:$0xff]  ;;  %v441_v52 = vmul.f32 1.442695, %v2993_v35 }
  0x61   : > { %3220 = vpow2.f32 %v407_v26  ;;  %v1355_v53 = vmax.f32 %v1339_v45, %v4018_v44  ;;  %v1386_v54 = vmax.f32 %v1370_v47, %v3055_v42  ;;  %v1369_v55 = vmax.f32 %v1353_v48, %v4015_v43  ;;  %v4045_v0 = vld [vmem:[%s3970_s27 + $0x210] sm:$0xff]  ;;  %v4062_v15 = vld [vmem:[%s3970_s27 + $0x118] sm:$0xff] }
  0x62   : > { %3222 = vpow2.f32 %v439_v31  ;;  %v1340_v59 = vmax.f32 %v4027_v50, %v4030_v51  ;;  %v3041_v38 = vld [vmem:[%s3970_s27 + $0x198] sm:$0xff] }
  0x63   : > { %3224 = vpow2.f32 %v345_v36  ;;  %v1371_v58 = vmax.f32 %v1355_v53, %v4024_v49  ;;  %v1402_v61 = vsub.f32 %v1254_v21, %v1386_v54  ;;  %v1450_v62 = vsub.f32 %v3007_v24, %v1386_v54 }
  0x64   : > { %v4034_v56 = vpop.eup %3200  ;;  %3226 = vpow2.f32 %v377_v41  ;;  %v1498_v63 = vsub.f32 %v3023_v25, %v1386_v54  ;;  %v1546_v3 = vsub.f32 %v3039_v32, %v1386_v54  ;;  %v1594_v4 = vsub.f32 %v3055_v42, %v1386_v54 }
  0x65   : > { %v4042_v60 = vpop.eup %3202  ;;  %3228 = vpow2.f32 %v409_v46  ;;  %v1419_v6 = vmul.f32 1.442695, %v1402_v61  ;;  %v1467_v7 = vmul.f32 1.442695, %v1450_v62  ;;  %v1385_v9 = vmax.f32 %v1369_v55, %v4037_v57 }
  0x66   : > { %v4047_v1 = vpop.eup %3204  ;;  %v467_v2 = vadd.f32 %v4042_v60, %v4034_v56  ;;  %3230 = vpow2.f32 %v441_v52  ;;  %v1515_v8 = vmul.f32 1.442695, %v1498_v63  ;;  %v1563_v12 = vmul.f32 1.442695, %v1546_v3  ;;  %v3057_v52 = vld [vmem:[%s3970_s27 + $0x218] sm:$0xff] }
  0x67   : > { %v4051_v5 = vpop.eup %3206  ;;  %v1611_v13 = vmul.f32 1.442695, %v1594_v4  ;;  %v4059_v14 = vmax.f32 %v1371_v58, %v4045_v0  ;;  %3232 = vpow2.f32 %v1419_v6  ;;  %v1401_v17 = vsub.f32 %v3995_v30, %v1385_v9 }
  0x68   : > { %v4054_v10 = vpop.eup %3208  ;;  %v483_v11 = vadd.f32 %v4051_v5, %v4047_v1  ;;  %v1449_v18 = vsub.f32 %v3999_v33, %v1385_v9  ;;  %v1497_v19 = vsub.f32 %v4002_v34, %v1385_v9  ;;  %3234 = vpow2.f32 %v1467_v7 }
  0x69   : > { %v4064_v16 = vpop.eup %3210  ;;  %3236 = vpow2.f32 %v1515_v8  ;;  %v1417_v24 = vmul.f32 1.442695, %v1401_v17  ;;  %v1545_v25 = vsub.f32 %v4015_v43, %v1385_v9  ;;  %v1356_v26 = vmax.f32 %v1340_v59, %v4062_v15 }
  0x6a   : > { %v4069_v20 = vpop.eup %3212  ;;  %v499_v21 = vadd.f32 %v483_v11, %v467_v2  ;;  %v468_v22 = vadd.f32 %v4064_v16, %v4054_v10  ;;  %3238 = vpow2.f32 %v1563_v12  ;;  %v1465_v30 = vmul.f32 1.442695, %v1449_v18  ;;  %v4124_v18 = vld [vmem:[%s3970_s27 + $0x20] sm:$0xff] }
  0x6b   : > { %v4073_v23 = vpop.eup %3214  ;;  %3240 = vpow2.f32 %v1611_v13  ;;  %v1513_v32 = vmul.f32 1.442695, %v1497_v19  ;;  %v1593_v33 = vsub.f32 %v4037_v57, %v1385_v9  ;;  %v1403_v34 = vsub.f32 %v4008_v39, %v4059_v14  ;;  %v4127_v19 = vld [vmem:[%s3970_s27 + $0xa0] sm:$0xff] }
  0x6c   : > { %v4077_v27 = vpop.eup %3216  ;;  %v515_v28 = vadd.f32 1.105171, %v499_v21  ;;  %v484_v29 = vadd.f32 %v4073_v23, %v4069_v20  ;;  %v1561_v42 = vmul.f32 1.442695, %v1545_v25  ;;  %v1451_v43 = vsub.f32 %v4011_v40, %v4059_v14 }
  0x6d   : > { %v4081_v31 = vpop.eup %3218  ;;  %v1499_v45 = vsub.f32 %v4018_v44, %v4059_v14  ;;  %v1609_v48 = vmul.f32 1.442695, %v1593_v33  ;;  %v1421_v54 = vmul.f32 1.442695, %v1403_v34  ;;  %v1547_v55 = vsub.f32 %v4024_v49, %v4059_v14  ;;  %v2978_v34 = vld [vmem:[%s3962_s19 + $0x120] sm:$0xff] }
  0x6e   : > { %v4086_v35 = vpop.eup %3220  ;;  %3242 = vrcp.f32 %v515_v28  ;;  %v500_v36 = vadd.f32 %v484_v29, %v468_v22  ;;  %v469_v37 = vadd.f32 %v4081_v31, %v4077_v27  ;;  %v1372_v40 = vmax.f32 %v1356_v26, %v3041_v38  ;;  %v276_v22 = vld [vmem:[%s3962_s19 + $0x20] sm:$0xff] }
  0x6f   : > { %v4091_v41 = vpop.eup %3222  ;;  %3244 = vpow2.f32 %v1417_v24  ;;  %v1469_v61 = vmul.f32 1.442695, %v1451_v43  ;;  %v1595_v62 = vsub.f32 %v4045_v0, %v4059_v14  ;;  %v1517_v3 = vmul.f32 1.442695, %v1499_v45  ;;  %v2962_v28 = vld [vmem:[%s3962_s19 + $0xa0] sm:$0xff] }
  0x70   : > { %v4097_v39 = vpop.eup %3224  ;;  %v516_v46 = vadd.f32 1.105171, %v500_v36  ;;  %v485_v47 = vadd.f32 %v4091_v41, %v4086_v35  ;;  %3246 = vpow2.f32 %v1465_v30  ;;  %v1388_v63 = vmax.f32 %v1372_v40, %v3057_v52  ;;  %v4139_v29 = vld [vmem:[%s3970_s27 + $0x120] sm:$0xff] }
  0x71   : > { %v4102_v53 = vpop.eup %3226  ;;  %3248 = vpow2.f32 %v1513_v32  ;;  %v1565_v4 = vmul.f32 1.442695, %v1547_v55  ;;  %v1613_v11 = vmul.f32 1.442695, %v1595_v62  ;;  %v2994_v36 = vld [vmem:[%s3962_s19 + $0x1a0] sm:$0xff] }
  0x72   : > { %v4106_v57 = vpop.eup %3228  ;;  %3250 = vrcp.f32 %v516_v46  ;;  %v501_v44 = vadd.f32 %v485_v47, %v469_v37  ;;  %v470_v58 = vadd.f32 %v4102_v53, %v4097_v39  ;;  %v1404_v6 = vsub.f32 %v4027_v50, %v1388_v63  ;;  %v4148_v47 = vld [vmem:[%s3970_s27 + $0x1a0] sm:$0xff] }
  0x73   : > { %v4110_v59 = vpop.eup %3230  ;;  %3252 = vpow2.f32 %v1561_v42  ;;  %v1452_v9 = vsub.f32 %v4030_v51, %v1388_v63  ;;  %v1500_v12 = vsub.f32 %v4062_v15, %v1388_v63  ;;  %v1548_v13 = vsub.f32 %v3041_v38, %v1388_v63 }
  0x74   : > { %v517_v2 = vadd.f32 1.105171, %v501_v44  ;;  %v486_v49 = vadd.f32 %v4110_v59, %v4106_v57  ;;  %3254 = vpow2.f32 %v1609_v48  ;;  %v3233_v7 = vpop.eup %3232  ;;  %v1596_v50 = vsub.f32 %v3057_v52, %v1388_v63 }
  0x75   : > { %3256 = vpow2.f32 %v1421_v54  ;;  %v4118_v0 = vpop.eup %3234  ;;  %v1423_v15 = vmul.f32 1.442695, %v1404_v6  ;;  %v1471_v26 = vmul.f32 1.442695, %v1452_v9  ;;  %v1519_v32 = vmul.f32 1.442695, %v1500_v12 }
  0x76   : > { %3258 = vrcp.f32 %v517_v2  ;;  %v502_v8 = vadd.f32 %v486_v49, %v470_v58  ;;  %v4121_v14 = vpop.eup %3236  ;;  %v1642_v21 = vadd.f32 %v4118_v0, %v3233_v7  ;;  %v1567_v33 = vmul.f32 1.442695, %v1548_v13  ;;  %v4159_v58 = vld [vmem:[%s3970_s27 + $0x220] sm:$0xff] }
  0x77   : > { %3260 = vpow2.f32 %v1469_v61  ;;  %v4129_v51 = vpop.eup %3238  ;;  %v1341_v37 = vmax.f32 %v4124_v18, %v4127_v19  ;;  %v1615_v45 = vmul.f32 1.442695, %v1596_v50  ;;  %v347_v46 = vmul.f32 1.442695, %v276_v22 }
  0x78   : > { %v518_v17 = vadd.f32 1.105171, %v502_v8  ;;  %3262 = vpow2.f32 %v1517_v3  ;;  %v4133_v24 = vpop.eup %3240  ;;  %v1658_v25 = vadd.f32 %v4129_v51, %v4121_v14  ;;  %v379_v54 = vmul.f32 1.442695, %v2962_v28 }
  0x79   : > { %3264 = vpow2.f32 %v1565_v4  ;;  %v1357_v55 = vmax.f32 %v1341_v37, %v4139_v29  ;;  %v4156_v44 = vmul.f32 1.442695, %v2994_v36 }
  0x7a   : > { %3266 = vrcp.f32 %v518_v17  ;;  %v1674_v52 = vadd.f32 %v1658_v25, %v1642_v21 }
  0x7b   : > { %v3243_v30 = vpop.eup %3242  ;;  %3268 = vpow2.f32 %v1613_v11  ;;  %v1373_v49 = vmax.f32 %v1357_v55, %v4148_v47 }
  0x7c   : > { %v3245_v38 = vpop.eup %3244  ;;  %v725_v42 = vmul.f32 %v3243_v30, %v4042_v60  ;;  %v547_v43 = vmul.f32 %v3243_v30, %v4034_v56  ;;  %3270 = vpow2.f32 %v1423_v15  ;;  %v901_v60 = vmul.f32 %v3243_v30, %v4047_v1 }
  0x7d   : > { %v4150_v48 = vpop.eup %3246  ;;  %3272 = vpow2.f32 %v1471_v26  ;;  %v411_v56 = vmul.f32 1.442695, %v2978_v34  ;;  %v1077_v62 = vmul.f32 %v3243_v30, %v4051_v5  ;;  %v1690_v63 = vadd.f32 %v4133_v24, %v1674_v52 }
  0x7e   : > { %v4153_v40 = vpop.eup %3248  ;;  %741 = vadd.xlane.f32.xlu1 %v725_v42  ;;  %563 = vadd.xlane.f32.xlu0 %v547_v43  ;;  %v1641_v2 = vadd.f32 %v4150_v48, %v3245_v38  ;;  %3274 = vpow2.f32 %v1519_v32  ;;  %v4176_v9 = vmax.f32 %v1373_v49, %v4159_v58 }
  0x7f   : > { %v3251_v61 = vpop.eup %3250  ;;  %3276 = vrcp.f32 %v1690_v63 }
  0x80   : > { %v4165_v3 = vpop.eup %3252  ;;  %v726_v4 = vmul.f32 %v3251_v61, %v4064_v16  ;;  %v548_v1 = vmul.f32 %v3251_v61, %v4054_v10  ;;  %v902_v6 = vmul.f32 %v3251_v61, %v4069_v20  ;;  %v1078_v8 = vmul.f32 %v3251_v61, %v4073_v23  ;;  %v4236_v61 = vld [vmem:[%s3970_s27 + $0x28] sm:$0xff] }
  0x81   : > { %v4170_v7 = vpop.eup %3254  ;;  %v1657_v5 = vadd.f32 %v4165_v3, %v4153_v40  ;;  %3278 = vpow2.f32 %v1567_v33  ;;  %v1405_v23 = vsub.f32 %v4124_v18, %v4176_v9  ;;  %v1453_v36 = vsub.f32 %v4127_v19, %v4176_v9 }
  0x82   : > { %v3257_v11 = vpop.eup %3256  ;;  %743 = vadd.xlane.f32.xlu1 %v726_v4  ;;  %v773_v12 = vadd.f32 %v726_v4, %v725_v42  ;;  %565 = vadd.xlane.f32.xlu0 %v548_v1  ;;  %v595_v16 = vadd.f32 %v548_v1, %v547_v43  ;;  %v949_v10 = vadd.f32 %v902_v6, %v901_v60  ;;  %3280 = vpow2.f32 %v1615_v45  ;;  %v2979_v1 = vld [vmem:[%s3962_s19 + $0x128] sm:$0xff] }
  0x83   : > { %v3259_v20 = vpop.eup %3258  ;;  %v1125_v13 = vadd.f32 %v1078_v8, %v1077_v62  ;;  %v1673_v17 = vadd.f32 %v1657_v5, %v1641_v2  ;;  %3282 = vpow2.f32 %v347_v46  ;;  %v1425_v18 = vmul.f32 1.442695, %v1405_v23  ;;  %v2963_v2 = vld [vmem:[%s3962_s19 + $0xa8] sm:$0xff] }
  0x84   : > { %v4180_v50 = vpop.eup %3260  ;;  %v727_v21 = vmul.f32 %v3259_v20, %v4081_v31  ;;  %v549_v15 = vmul.f32 %v3259_v20, %v4077_v27  ;;  %v4185_v22 = vmul.f32 %v3259_v20, %v4091_v41  ;;  %v4188_v25 = vmul.f32 %v3259_v20, %v4086_v35 }
  0x85   : > { %v4190_v26 = vpop.eup %3262  ;;  %v1689_v28 = vadd.f32 %v4170_v7, %v1673_v17  ;;  %v1643_v30 = vadd.f32 %v4180_v50, %v3257_v11  ;;  %3284 = vpow2.f32 %v379_v54  ;;  %v1473_v52 = vmul.f32 1.442695, %v1453_v36 }
  0x86   : > { %v4194_v32 = vpop.eup %3264  ;;  %919 = vadd.xlane.f32.xlu1 %v902_v6  ;;  %917 = vadd.xlane.f32.xlu0 %v901_v60  ;;  %v774_v31 = vadd.f32 %v773_v12, %v727_v21  ;;  %v596_v27 = vadd.f32 %v595_v16, %v549_v15  ;;  %v1126_v41 = vadd.f32 %v1125_v13, %v4185_v22  ;;  %v381_v16 = vmul.f32 1.442695, %v2963_v2 }
  0x87   : > { %v3267_v33 = vpop.eup %3266  ;;  %v950_v35 = vadd.f32 %v949_v10, %v4188_v25  ;;  %3286 = vrcp.f32 %v1689_v28  ;;  %v1659_v34 = vadd.f32 %v4194_v32, %v4190_v26  ;;  %v1501_v19 = vsub.f32 %v4139_v29, %v4176_v9  ;;  %v4259_v10 = vld [vmem:[%s3970_s27 + $0x1a8] sm:$0xff] }
  0x88   : > { %v4202_v37 = vpop.eup %3268  ;;  %v4205_v38 = vmul.f32 %v3267_v33, %v4102_v53  ;;  %v4208_v42 = vmul.f32 %v3267_v33, %v4097_v39  ;;  %v4211_v43 = vmul.f32 %v3267_v33, %v4110_v59  ;;  %v4214_v45 = vmul.f32 %v3267_v33, %v4106_v57  ;;  %v277_v59 = vld [vmem:[%s3962_s19 + $0x28] sm:$0xff] }
  0x89   : > { %v1675_v46 = vadd.f32 %v1659_v34, %v1643_v30  ;;  %3288 = vpow2.f32 %v411_v56  ;;  %v3271_v54 = vpop.eup %3270  ;;  %v1521_v56 = vmul.f32 1.442695, %v1501_v19  ;;  %v1597_v63 = vsub.f32 %v4159_v58, %v4176_v9  ;;  %v2995_v58 = vld [vmem:[%s3962_s19 + $0x1a8] sm:$0xff] }
  0x8a   : > { %1095 = vadd.xlane.f32.xlu1 %v1078_v8  ;;  %1093 = vadd.xlane.f32.xlu0 %v1077_v62  ;;  %v4219_v39 = vadd.f32 %v774_v31, %v4205_v38  ;;  %v4222_v53 = vadd.f32 %v596_v27, %v4208_v42  ;;  %v4225_v57 = vadd.f32 %v1126_v41, %v4211_v43  ;;  %3290 = vpow2.f32 %v4156_v44  ;;  %v4229_v55 = vpop.eup %3272  ;;  %v4239_v62 = vld [vmem:[%s3970_s27 + $0xa8] sm:$0xff] }
  0x8b   : > { %v4232_v29 = vadd.f32 %v950_v35, %v4214_v45  ;;  %v1691_v60 = vadd.f32 %v4202_v37, %v1675_v46  ;;  %3292 = vpow2.f32 %v1425_v18  ;;  %v1549_v44 = vsub.f32 %v4148_v47, %v4176_v9  ;;  %v4246_v49 = vpop.eup %3274  ;;  %v4251_v8 = vld [vmem:[%s3970_s27 + $0x128] sm:$0xff] }
  0x8c   : > { %3294 = vpow2.f32 %v1473_v52  ;;  %v1644_v4 = vadd.f32 %v4229_v55, %v3271_v54  ;;  %v349_v6 = vmul.f32 1.442695, %v277_v59  ;;  %v3277_v5 = vpop.eup %3276  ;;  %v1617_v11 = vmul.f32 1.442695, %v1597_v63  ;;  %v4271_v30 = vld [vmem:[%s3970_s27 + $0x228] sm:$0xff] }
  0x8d   : > { %3296 = vrcp.f32 %v1691_v60  ;;  %v1569_v47 = vmul.f32 1.442695, %v1549_v44  ;;  %v1342_v9 = vmax.f32 %v4236_v61, %v4239_v62  ;;  %v413_v17 = vmul.f32 1.442695, %v2979_v1 }
  0x8e   : > { %745 = vadd.xlane.f32.xlu1 %v727_v21  ;;  %567 = vadd.xlane.f32.xlu0 %v549_v15  ;;  %3298 = vpow2.f32 %v1521_v56  ;;  %v4256_v12 = vpop.eup %3278  ;;  %v278_v21 = vld [vmem:[%s3962_s19 + $0x30] sm:$0xff]  ;;  %v4268_v15 = vmul.f32 %v3277_v5, %v4118_v0  ;;  %v445_v28 = vmul.f32 1.442695, %v2995_v58  ;;  %v4278_v31 = vmul.f32 %v3277_v5, %v4121_v14 }
  0x8f   : > { %v4261_v20 = vpop.eup %3280  ;;  %v1660_v13 = vadd.f32 %v4256_v12, %v4246_v49  ;;  %3300 = vpow2.f32 %v1569_v47  ;;  %v1358_v23 = vmax.f32 %v1342_v9, %v4251_v8  ;;  %v4284_v0 = vmul.f32 %v3277_v5, %v4129_v51  ;;  %v4323_v56 = vld [vmem:[%s3970_s27 + $0xb0] sm:$0xff] }
  0x90   : > { %3302 = vpow2.f32 %v1617_v11  ;;  %v4273_v18 = vpop.eup %3282  ;;  %v4287_v35 = vmul.f32 %v3277_v5, %v4133_v24  ;;  %v351_v34 = vmul.f32 1.442695, %v278_v21 }
  0x91   : > { %v1676_v27 = vadd.f32 %v1660_v13, %v1644_v4  ;;  %3304 = vpow2.f32 %v349_v6  ;;  %v1374_v41 = vmax.f32 %v1358_v23, %v4259_v10  ;;  %v2980_v13 = vld [vmem:[%s3962_s19 + $0x130] sm:$0xff] }
  0x92   : > { %1097 = vadd.xlane.f32.xlu1 %v4185_v22  ;;  %921 = vadd.xlane.f32.xlu0 %v4188_v25  ;;  %v4281_v33 = vpop.eup %3284  ;;  %3306 = vpow2.f32 %v381_v16 }
  0x93   : > { %v1692_v25 = vadd.f32 %v4261_v20, %v1676_v27  ;;  %v471_v14 = vadd.f32 %v4281_v33, %v4273_v18  ;;  %3308 = vpow2.f32 %v413_v17  ;;  %v1390_v36 = vmax.f32 %v1374_v41, %v4271_v30  ;;  %v4353_v17 = vld [vmem:[%s3970_s27 + $0x130] sm:$0xff] }
  0x94   : > { %v3287_v22 = vpop.eup %3286  ;;  %v4362_v27 = vld [vmem:[%s3970_s27 + $0x1b0] sm:$0xff] }
  0x95   : > { %v1721_v46 = vmul.f32 %v3287_v22, %v4150_v48  ;;  %v4295_v51 = vmul.f32 %v3287_v22, %v4153_v40  ;;  %v4298_v24 = vmul.f32 %v3287_v22, %v4165_v3  ;;  %v4301_v52 = vmul.f32 %v3287_v22, %v4170_v7 }
  0x96   : > { %v4303_v19 = vpop.eup %3288  ;;  %747 = vadd.xlane.f32.xlu1 %v4205_v38  ;;  %569 = vadd.xlane.f32.xlu0 %v4208_v42  ;;  %3310 = vrcp.f32 %v1692_v25  ;;  %v1406_v48 = vsub.f32 %v4236_v61, %v1390_v36  ;;  %v1454_v54 = vsub.f32 %v4239_v62, %v1390_v36  ;;  %v1502_v40 = vsub.f32 %v4251_v8, %v1390_v36  ;;  %v4320_v42 = vld [vmem:[%s3970_s27 + $0x30] sm:$0xff] }
  0x97   : > { %v4310_v59 = vpop.eup %3290  ;;  %v1769_v3 = vadd.f32 %v4268_v15, %v1721_v46  ;;  %v1945_v7 = vadd.f32 %v4278_v31, %v4295_v51  ;;  %v2121_v60 = vadd.f32 %v4284_v0, %v4298_v24  ;;  %v2297_v38 = vadd.f32 %v4287_v35, %v4301_v52 }
  0x98   : > { %v3293_v61 = vpop.eup %3292  ;;  %v487_v62 = vadd.f32 %v4310_v59, %v4303_v19  ;;  %3312 = vpow2.f32 %v445_v28  ;;  %v1427_v44 = vmul.f32 1.442695, %v1406_v48  ;;  %v1475_v63 = vmul.f32 1.442695, %v1454_v54  ;;  %v4374_v54 = vld [vmem:[%s3970_s27 + $0x230] sm:$0xff] }
  0x99   : > { %v4327_v2 = vpop.eup %3294  ;;  %v1523_v4 = vmul.f32 1.442695, %v1502_v40  ;;  %v1550_v1 = vsub.f32 %v4259_v10, %v1390_v36  ;;  %v1598_v6 = vsub.f32 %v4271_v30, %v1390_v36  ;;  %3314 = vpow2.f32 %v351_v34  ;;  %v2964_v10 = vld [vmem:[%s3962_s19 + $0xb0] sm:$0xff] }
  0x9a   : > { %v3297_v8 = vpop.eup %3296  ;;  %1099 = vadd.xlane.f32.xlu1 %v4211_v43  ;;  %923 = vadd.xlane.f32.xlu0 %v4214_v45  ;;  %v503_v5 = vadd.f32 %v487_v62, %v471_v14  ;;  %v1645_v47 = vadd.f32 %v4327_v2, %v3293_v61  ;;  %3316 = vpow2.f32 %v1427_v44  ;;  %v1343_v11 = vmax.f32 %v4320_v42, %v4323_v56  ;;  %v2996_v36 = vld [vmem:[%s3962_s19 + $0x1b0] sm:$0xff] }
  0x9b   : > { %v4336_v58 = vpop.eup %3298  ;;  %v4339_v9 = vmul.f32 %v3297_v8, %v4190_v26  ;;  %v4342_v16 = vmul.f32 %v3297_v8, %v4180_v50  ;;  %v4345_v43 = vmul.f32 %v3297_v8, %v4202_v37  ;;  %v4348_v45 = vmul.f32 %v3297_v8, %v4194_v32 }
  0x9c   : > { %v519_v23 = vadd.f32 1.105171, %v503_v5  ;;  %3318 = vpow2.f32 %v1475_v63  ;;  %v1571_v21 = vmul.f32 1.442695, %v1550_v1  ;;  %v1619_v28 = vmul.f32 1.442695, %v1598_v6  ;;  %v4355_v26 = vpop.eup %3300 }
  0x9d   : > { %v1946_v50 = vadd.f32 %v1945_v7, %v4339_v9  ;;  %v1770_v37 = vadd.f32 %v1769_v3, %v4342_v16  ;;  %v2298_v30 = vadd.f32 %v2297_v38, %v4345_v43  ;;  %v2122_v32 = vadd.f32 %v2121_v60, %v4348_v45  ;;  %v4364_v41 = vpop.eup %3302  ;;  %v279_v3 = vld [vmem:[%s3962_s19 + $0x38] sm:$0xff] }
  0x9e   : > { %1739 = vadd.xlane.f32.xlu1 %v4268_v15  ;;  %1737 = vadd.xlane.f32.xlu0 %v1721_v46  ;;  %3320 = vrcp.f32 %v519_v23  ;;  %v1661_v34 = vadd.f32 %v4355_v26, %v4336_v58  ;;  %v383_v22 = vmul.f32 1.442695, %v2964_v10  ;;  %v1359_v25 = vmax.f32 %v1343_v11, %v4353_v17  ;;  %v4370_v14 = vpop.eup %3304  ;;  %v4381_v7 = vld [vmem:[%s3970_s27 + $0x38] sm:$0xff] }
  0x9f   : > { %3322 = vpow2.f32 %v1523_v4  ;;  %v415_v48 = vmul.f32 1.442695, %v2980_v13  ;;  %v4376_v40 = vpop.eup %3306  ;;  %v4384_v60 = vld [vmem:[%s3970_s27 + $0xb8] sm:$0xff]  ;;  %v447_v62 = vmul.f32 1.442695, %v2996_v36 }
  0xa0   : > { %v1677_v15 = vadd.f32 %v1661_v34, %v1645_v47  ;;  %3324 = vpow2.f32 %v1571_v21  ;;  %v1375_v46 = vmax.f32 %v1359_v25, %v4362_v27  ;;  %v4386_v38 = vpop.eup %3308  ;;  %v472_v4 = vadd.f32 %v4376_v40, %v4370_v14  ;;  %v4428_v13 = vld [vmem:[%s3970_s27 + $0x138] sm:$0xff] }
  0xa1   : > { %3326 = vpow2.f32 %v1619_v28  ;;  %v353_v1 = vmul.f32 1.442695, %v279_v3  ;;  %v1344_v6 = vmax.f32 %v4381_v7, %v4384_v60  ;;  %v2981_v28 = vld [vmem:[%s3962_s19 + $0x138] sm:$0xff] }
  0xa2   : > { %1915 = vadd.xlane.f32.xlu1 %v4278_v31  ;;  %1913 = vadd.xlane.f32.xlu0 %v4295_v51  ;;  %v1693_v61 = vadd.f32 %v4364_v41, %v1677_v15  ;;  %3328 = vpow2.f32 %v383_v22  ;;  %v1391_v44 = vmax.f32 %v1375_v46, %v4374_v54  ;;  %v4440_v22 = vld [vmem:[%s3970_s27 + $0x1b8] sm:$0xff] }
  0xa3   : > { %v3311_v63 = vpop.eup %3310  ;;  %3330 = vpow2.f32 %v415_v48  ;;  %v4445_v48 = vld [vmem:[%s3970_s27 + $0x238] sm:$0xff]  ;;  %v1360_v15 = vmax.f32 %v1344_v6, %v4428_v13 }
  0xa4   : > { %v4397_v8 = vmul.f32 %v3311_v63, %v4246_v49  ;;  %v4400_v31 = vmul.f32 %v3311_v63, %v4229_v55  ;;  %v4403_v51 = vmul.f32 %v3311_v63, %v4261_v20  ;;  %v4406_v5 = vmul.f32 %v3311_v63, %v4256_v12 }
  0xa5   : > { %v4408_v47 = vpop.eup %3312  ;;  %3332 = vrcp.f32 %v1693_v61  ;;  %v1407_v11 = vsub.f32 %v4320_v42, %v1391_v44  ;;  %v1455_v10 = vsub.f32 %v4323_v56, %v1391_v44  ;;  %v1503_v49 = vsub.f32 %v4353_v17, %v1391_v44  ;;  %v2965_v56 = vld [vmem:[%s3962_s19 + $0xb8] sm:$0xff] }
  0xa6   : > { %v4413_v55 = vpop.eup %3314  ;;  %2091 = vadd.xlane.f32.xlu1 %v4284_v0  ;;  %2089 = vadd.xlane.f32.xlu0 %v4298_v24  ;;  %v4418_v12 = vadd.f32 %v1946_v50, %v4397_v8  ;;  %v4421_v20 = vadd.f32 %v1770_v37, %v4400_v31  ;;  %v4424_v42 = vadd.f32 %v2298_v30, %v4403_v51  ;;  %3334 = vpow2.f32 %v447_v62  ;;  %v2997_v50 = vld [vmem:[%s3962_s19 + $0x1b8] sm:$0xff] }
  0xa7   : > { %v3317_v17 = vpop.eup %3316  ;;  %v4431_v0 = vadd.f32 %v2122_v32, %v4406_v5  ;;  %v488_v24 = vadd.f32 %v4408_v47, %v4386_v38  ;;  %v1429_v23 = vmul.f32 1.442695, %v1407_v11  ;;  %v1477_v21 = vmul.f32 1.442695, %v1455_v10 }
  0xa8   : > { %v1525_v37 = vmul.f32 1.442695, %v1503_v49  ;;  %v1551_v30 = vsub.f32 %v4362_v27, %v1391_v44  ;;  %v1599_v34 = vsub.f32 %v4374_v54, %v1391_v44  ;;  %v385_v32 = vmul.f32 1.442695, %v2965_v56 }
  0xa9   : > { %v4442_v25 = vpop.eup %3318  ;;  %v504_v36 = vadd.f32 %v488_v24, %v472_v4  ;;  %3336 = vpow2.f32 %v1429_v23  ;;  %v417_v27 = vmul.f32 1.442695, %v2981_v28  ;;  %v449_v3 = vmul.f32 1.442695, %v2997_v50 }
  0xaa   : > { %2267 = vadd.xlane.f32.xlu1 %v4287_v35  ;;  %2265 = vadd.xlane.f32.xlu0 %v4301_v52  ;;  %3338 = vpow2.f32 %v1477_v21  ;;  %v1573_v46 = vmul.f32 1.442695, %v1551_v30  ;;  %v1621_v62 = vmul.f32 1.442695, %v1599_v34  ;;  %v1376_v44 = vmax.f32 %v1360_v15, %v4440_v22  ;;  %v280_v15 = vld [vmem:[%s3962_s19 + $0x40] sm:$0xff] }
  0xab   : > { %v3321_v54 = vpop.eup %3320  ;;  %v520_v61 = vadd.f32 1.105171, %v504_v36  ;;  %3340 = vpow2.f32 %v353_v1  ;;  %v1646_v1 = vadd.f32 %v4442_v25, %v3317_v17 }
  0xac   : > { %v4451_v63 = vpop.eup %3322  ;;  %v4454_v4 = vmul.f32 %v3321_v54, %v4281_v33  ;;  %v4457_v6 = vmul.f32 %v3321_v54, %v4273_v18  ;;  %v4460_v35 = vmul.f32 %v3321_v54, %v4310_v59  ;;  %3342 = vpow2.f32 %v1525_v37 }
  0xad   : > { %v4462_v52 = vpop.eup %3324  ;;  %v4465_v11 = vmul.f32 %v3321_v54, %v4303_v19  ;;  %3344 = vrcp.f32 %v520_v61  ;;  %v1392_v10 = vmax.f32 %v1376_v44, %v4445_v48  ;;  %v2998_v61 = vld [vmem:[%s3962_s19 + $0x1c0] sm:$0xff] }
  0xae   : > { %v4469_v49 = vpop.eup %3326  ;;  %1917 = vadd.xlane.f32.xlu1 %v4339_v9  ;;  %1741 = vadd.xlane.f32.xlu0 %v4342_v16  ;;  %v4475_v18 = vadd.f32 %v4219_v39, %v4454_v4  ;;  %v4479_v33 = vadd.f32 %v4222_v53, %v4457_v6  ;;  %v4483_v19 = vadd.f32 %v4225_v57, %v4460_v35  ;;  %3346 = vpow2.f32 %v1573_v46  ;;  %v3046_v44 = vld [vmem:[%s3970_s27 + $0x1c0] sm:$0xff] }
  0xaf   : > { %v4485_v59 = vpop.eup %3328  ;;  %v4489_v9 = vadd.f32 %v4232_v29, %v4465_v11  ;;  %v1662_v16 = vadd.f32 %v4462_v52, %v4451_v63  ;;  %3348 = vpow2.f32 %v1621_v62  ;;  %v1408_v39 = vsub.f32 %v4381_v7, %v1392_v10 }
  0xb0   : > { %v4494_v56 = vpop.eup %3330  ;;  %v473_v53 = vadd.f32 %v4485_v59, %v4413_v55  ;;  %3350 = vpow2.f32 %v385_v32  ;;  %v1456_v57 = vsub.f32 %v4384_v60, %v1392_v10  ;;  %v1504_v17 = vsub.f32 %v4428_v13, %v1392_v10 }
  0xb1   : > { %v1678_v24 = vadd.f32 %v1662_v16, %v1646_v1  ;;  %3352 = vpow2.f32 %v417_v27  ;;  %v1431_v29 = vmul.f32 1.442695, %v1408_v39  ;;  %v1552_v23 = vsub.f32 %v4440_v22, %v1392_v10  ;;  %v2982_v27 = vld [vmem:[%s3962_s19 + $0x140] sm:$0xff] }
  0xb2   : > { %v3333_v21 = vpop.eup %3332  ;;  %2269 = vadd.xlane.f32.xlu1 %v4345_v43  ;;  %2093 = vadd.xlane.f32.xlu0 %v4348_v45  ;;  %3354 = vpow2.f32 %v449_v3  ;;  %v1479_v7 = vmul.f32 1.442695, %v1456_v57  ;;  %v1527_v28 = vmul.f32 1.442695, %v1504_v17  ;;  %v1600_v50 = vsub.f32 %v4445_v48, %v1392_v10 }
  0xb3   : > { %v4504_v60 = vpop.eup %3334  ;;  %v4507_v13 = vmul.f32 %v3333_v21, %v4336_v58  ;;  %v4510_v37 = vmul.f32 %v3333_v21, %v4327_v2  ;;  %v4513_v30 = vmul.f32 %v3333_v21, %v4364_v41  ;;  %v4516_v43 = vmul.f32 %v3333_v21, %v4355_v26  ;;  %v4522_v58 = vld [vmem:[%s3970_s27 + $0x40] sm:$0xff] }
  0xb4   : > { %v1694_v45 = vadd.f32 %v4469_v49, %v1678_v24  ;;  %v489_v34 = vadd.f32 %v4504_v60, %v4494_v56  ;;  %3356 = vpow2.f32 %v1431_v29  ;;  %v1575_v22 = vmul.f32 1.442695, %v1552_v23  ;;  %v4525_v2 = vld [vmem:[%s3970_s27 + $0xc0] sm:$0xff] }
  0xb5   : > { %v4529_v41 = vadd.f32 %v4418_v12, %v4507_v13  ;;  %v4533_v26 = vadd.f32 %v4421_v20, %v4510_v37  ;;  %v4537_v36 = vadd.f32 %v4424_v42, %v4513_v30  ;;  %v4541_v32 = vadd.f32 %v4431_v0, %v4516_v43  ;;  %v4547_v20 = vld [vmem:[%s3970_s27 + $0x140] sm:$0xff] }
  0xb6   : > { %v3337_v48 = vpop.eup %3336  ;;  %1919 = vadd.xlane.f32.xlu1 %v4397_v8  ;;  %1743 = vadd.xlane.f32.xlu0 %v4400_v31  ;;  %3358 = vrcp.f32 %v1694_v45  ;;  %v505_v12 = vadd.f32 %v489_v34, %v473_v53  ;;  %v2966_v42 = vld [vmem:[%s3962_s19 + $0xc0] sm:$0xff]  ;;  %v1345_v0 = vmax.f32 %v4522_v58, %v4525_v2  ;;  %v1623_v31 = vmul.f32 1.442695, %v1600_v50 }
  0xb7   : > { %v4549_v46 = vpop.eup %3338  ;;  %3360 = vpow2.f32 %v1479_v7  ;;  %v355_v62 = vmul.f32 1.442695, %v280_v15  ;;  %v387_v39 = vmul.f32 1.442695, %v2966_v42  ;;  %v419_v53 = vmul.f32 1.442695, %v2982_v27 }
  0xb8   : > { %v4555_v3 = vpop.eup %3340  ;;  %v521_v8 = vadd.f32 1.105171, %v505_v12  ;;  %3362 = vpow2.f32 %v1527_v28  ;;  %v1361_v1 = vmax.f32 %v1345_v0, %v4547_v20  ;;  %v1647_v16 = vadd.f32 %v4549_v46, %v3337_v48 }
  0xb9   : > { %v4557_v54 = vpop.eup %3342  ;;  %3364 = vpow2.f32 %v1575_v22  ;;  %v451_v7 = vmul.f32 1.442695, %v2998_v61 }
  0xba   : > { %v3345_v10 = vpop.eup %3344  ;;  %2271 = vadd.xlane.f32.xlu1 %v4403_v51  ;;  %2095 = vadd.xlane.f32.xlu0 %v4406_v5  ;;  %3366 = vrcp.f32 %v521_v8  ;;  %v3062_v5 = vld [vmem:[%s3970_s27 + $0x240] sm:$0xff]  ;;  %v1377_v28 = vmax.f32 %v1361_v1, %v3046_v44 }
  0xbb   : > { %v4565_v57 = vpop.eup %3346  ;;  %v4568_v17 = vmul.f32 %v3345_v10, %v4376_v40  ;;  %v4571_v24 = vmul.f32 %v3345_v10, %v4370_v14  ;;  %v4574_v29 = vmul.f32 %v3345_v10, %v4408_v47  ;;  %v4577_v51 = vmul.f32 %v3345_v10, %v4386_v38 }
  0xbc   : > { %v4580_v23 = vpop.eup %3348  ;;  %v1663_v21 = vadd.f32 %v4565_v57, %v4557_v54  ;;  %3368 = vpow2.f32 %v1623_v31 }
  0xbd   : > { %v4584_v40 = vpop.eup %3350  ;;  %v4588_v14 = vadd.f32 %v4475_v18, %v4568_v17  ;;  %v4592_v47 = vadd.f32 %v4479_v33, %v4571_v24  ;;  %v4596_v38 = vadd.f32 %v4483_v19, %v4574_v29  ;;  %v4600_v50 = vadd.f32 %v4489_v9, %v4577_v51 }
  0xbe   : > { %v4602_v45 = vpop.eup %3352  ;;  %749 = vadd.xlane.f32.xlu1 %v4454_v4  ;;  %571 = vadd.xlane.f32.xlu0 %v4457_v6  ;;  %v1679_v18 = vadd.f32 %v1663_v21, %v1647_v16  ;;  %v474_v34 = vadd.f32 %v4584_v40, %v4555_v3  ;;  %3370 = vpow2.f32 %v355_v62  ;;  %v1393_v33 = vmax.f32 %v1377_v28, %v3062_v5  ;;  %v281_v16 = vld [vmem:[%s3962_s19 + $0x48] sm:$0xff] }
  0xbf   : > { %v4608_v22 = vpop.eup %3354  ;;  %3372 = vpow2.f32 %v387_v39  ;;  %v2967_v39 = vld [vmem:[%s3962_s19 + $0xc8] sm:$0xff] }
  0xc0   : > { %v1695_v19 = vadd.f32 %v4580_v23, %v1679_v18  ;;  %v490_v9 = vadd.f32 %v4608_v22, %v4602_v45  ;;  %3374 = vpow2.f32 %v419_v53  ;;  %v1409_v48 = vsub.f32 %v4522_v58, %v1393_v33  ;;  %v2983_v21 = vld [vmem:[%s3962_s19 + $0x148] sm:$0xff] }
  0xc1   : > { %v3357_v4 = vpop.eup %3356  ;;  %3376 = vpow2.f32 %v451_v7  ;;  %v1457_v6 = vsub.f32 %v4525_v2, %v1393_v33  ;;  %v1505_v12 = vsub.f32 %v4547_v20, %v1393_v33  ;;  %v1553_v15 = vsub.f32 %v3046_v44, %v1393_v33 }
  0xc2   : > { %1101 = vadd.xlane.f32.xlu1 %v4460_v35  ;;  %925 = vadd.xlane.f32.xlu0 %v4465_v11  ;;  %3378 = vrcp.f32 %v1695_v19  ;;  %v506_v42 = vadd.f32 %v490_v9, %v474_v34  ;;  %v1433_v27 = vmul.f32 1.442695, %v1409_v48  ;;  %v1601_v61 = vsub.f32 %v3062_v5, %v1393_v33  ;;  %v4678_v33 = vld [vmem:[%s3970_s27 + $0xc8] sm:$0xff] }
  0xc3   : > { %v3359_v0 = vpop.eup %3358  ;;  %v1481_v8 = vmul.f32 1.442695, %v1457_v6  ;;  %v1529_v31 = vmul.f32 1.442695, %v1505_v12  ;;  %v1577_v11 = vmul.f32 1.442695, %v1553_v15 }
  0xc4   : > { %v4618_v58 = vpop.eup %3360  ;;  %v4621_v62 = vmul.f32 %v3359_v0, %v4451_v63  ;;  %v4624_v2 = vmul.f32 %v3359_v0, %v4442_v25  ;;  %v4627_v35 = vmul.f32 %v3359_v0, %v4469_v49  ;;  %v4632_v44 = vmul.f32 %v3359_v0, %v4462_v52  ;;  %v2999_v19 = vld [vmem:[%s3962_s19 + $0x1c8] sm:$0xff]  ;;  %v282_v12 = vld [vmem:[%s3962_s19 + $0x50] sm:$0xff] }
  0xc5   : > { %v4629_v20 = vpop.eup %3362  ;;  %v522_v1 = vadd.f32 1.105171, %v506_v42  ;;  %v1648_v10 = vadd.f32 %v4618_v58, %v3357_v4  ;;  %3380 = vpow2.f32 %v1433_v27  ;;  %v357_v7 = vmul.f32 1.442695, %v281_v16  ;;  %v4719_v42 = vld [vmem:[%s3970_s27 + $0x1c8] sm:$0xff] }
  0xc6   : > { %v4636_v63 = vpop.eup %3364  ;;  %1921 = vadd.xlane.f32.xlu1 %v4507_v13  ;;  %1745 = vadd.xlane.f32.xlu0 %v4510_v37  ;;  %v4642_v25 = vadd.f32 %v4529_v41, %v4621_v62  ;;  %v4646_v52 = vadd.f32 %v4533_v26, %v4624_v2  ;;  %v4650_v49 = vadd.f32 %v4537_v36, %v4627_v35  ;;  %3382 = vpow2.f32 %v1481_v8 }
  0xc7   : > { %v3367_v53 = vpop.eup %3366  ;;  %v4655_v13 = vadd.f32 %v4541_v32, %v4632_v44  ;;  %3384 = vrcp.f32 %v522_v1  ;;  %v1664_v37 = vadd.f32 %v4636_v63, %v4629_v20  ;;  %v1625_v41 = vmul.f32 1.442695, %v1601_v61 }
  0xc8   : > { %v4660_v26 = vmul.f32 %v3367_v53, %v4485_v59  ;;  %v4663_v36 = vmul.f32 %v3367_v53, %v4413_v55  ;;  %v4666_v5 = vmul.f32 %v3367_v53, %v4504_v60  ;;  %v4672_v32 = vmul.f32 %v3367_v53, %v4494_v56  ;;  %v4675_v59 = vld [vmem:[%s3970_s27 + $0x48] sm:$0xff]  ;;  %v2984_v53 = vld [vmem:[%s3962_s19 + $0x150] sm:$0xff] }
  0xc9   : > { %v4669_v28 = vpop.eup %3368  ;;  %v1680_v18 = vadd.f32 %v1664_v37, %v1648_v10  ;;  %3386 = vpow2.f32 %v1529_v31  ;;  %v389_v34 = vmul.f32 1.442695, %v2967_v39  ;;  %v453_v6 = vmul.f32 1.442695, %v2999_v19  ;;  %v2968_v39 = vld [vmem:[%s3962_s19 + $0xd0] sm:$0xff] }
  0xca   : > { %2273 = vadd.xlane.f32.xlu1 %v4513_v30  ;;  %2097 = vadd.xlane.f32.xlu0 %v4516_v43  ;;  %v4684_v55 = vadd.f32 %v4588_v14, %v4660_v26  ;;  %v4688_v56 = vadd.f32 %v4592_v47, %v4663_v36  ;;  %v4692_v60 = vadd.f32 %v4596_v38, %v4666_v5  ;;  %3388 = vpow2.f32 %v1577_v11  ;;  %v4703_v47 = vld [vmem:[%s3970_s27 + $0x148] sm:$0xff] }
  0xcb   : > { %v4695_v9 = vpop.eup %3370  ;;  %v4699_v30 = vadd.f32 %v4600_v50, %v4672_v32  ;;  %v1696_v43 = vadd.f32 %v4669_v28, %v1680_v18  ;;  %3390 = vpow2.f32 %v1625_v41  ;;  %v421_v14 = vmul.f32 1.442695, %v2983_v21 }
  0xcc   : > { %v4705_v48 = vpop.eup %3372  ;;  %3392 = vpow2.f32 %v357_v7  ;;  %v1346_v38 = vmax.f32 %v4675_v59, %v4678_v33  ;;  %v359_v11 = vmul.f32 1.442695, %v282_v12  ;;  %v6964_v7 = vlaneseq }
  0xcd   : > { %v4709_v4 = vpop.eup %3374  ;;  %3394 = vrcp.f32 %v1696_v43  ;;  %v475_v50 = vadd.f32 %v4705_v48, %v4695_v9 }
  0xce   : > { %v4714_v15 = vpop.eup %3376  ;;  %751 = vadd.xlane.f32.xlu1 %v4568_v17  ;;  %573 = vadd.xlane.f32.xlu0 %v4571_v24  ;;  %3396 = vpow2.f32 %v389_v34  ;;  %v1362_v27 = vmax.f32 %v1346_v38, %v4703_v47  ;;  %v4734_v24 = vld [vmem:[%s3970_s27 + $0x248] sm:$0xff]  ;;  %v423_v34 = vmul.f32 1.442695, %v2984_v53 }
  0xcf   : > { %v3379_v0 = vpop.eup %3378  ;;  %v491_v8 = vadd.f32 %v4714_v15, %v4709_v4  ;;  %3398 = vpow2.f32 %v421_v14 }
  0xd0   : > { %v4725_v31 = vmul.f32 %v3379_v0, %v4557_v54  ;;  %v4728_v61 = vmul.f32 %v3379_v0, %v4549_v46  ;;  %v4731_v17 = vmul.f32 %v3379_v0, %v4580_v23  ;;  %v4737_v1 = vmul.f32 %v3379_v0, %v4565_v57 }
  0xd1   : > { %v507_v10 = vadd.f32 %v491_v8, %v475_v50  ;;  %3400 = vpow2.f32 %v453_v6  ;;  %v1378_v16 = vmax.f32 %v1362_v27, %v4719_v42 }
  0xd2   : > { %v3381_v54 = vpop.eup %3380  ;;  %1103 = vadd.xlane.f32.xlu1 %v4574_v29  ;;  %927 = vadd.xlane.f32.xlu0 %v4577_v51  ;;  %v1950_v46 = vadd.f32 %v4642_v25, %v4725_v31  ;;  %v1774_v23 = vadd.f32 %v4646_v52, %v4728_v61  ;;  %v2302_v57 = vadd.f32 %v4650_v49, %v4731_v17  ;;  %3402 = vpow2.f32 %v359_v11 }
  0xd3   : > { %v4750_v37 = vpop.eup %3382  ;;  %v2126_v41 = vadd.f32 %v4655_v13, %v4737_v1  ;;  %v523_v21 = vadd.f32 1.105171, %v507_v10  ;;  %v1394_v29 = vmax.f32 %v1378_v16, %v4734_v24  ;;  %v391_v25 = vmul.f32 1.442695, %v2968_v39  ;;  %v4822_v10 = vld [vmem:[%s3970_s27 + $0x50] sm:$0xff] }
  0xd4   : > { %v3385_v18 = vpop.eup %3384  ;;  %v1649_v51 = vadd.f32 %v4750_v37, %v3381_v54 }
  0xd5   : > { %v4757_v52 = vmul.f32 %v3385_v18, %v4584_v40  ;;  %v4760_v49 = vmul.f32 %v3385_v18, %v4555_v3  ;;  %v4763_v19 = vmul.f32 %v3385_v18, %v4608_v22  ;;  %v4766_v13 = vmul.f32 %v3385_v18, %v4602_v45 }
  0xd6   : > { %v4768_v43 = vpop.eup %3386  ;;  %1923 = vadd.xlane.f32.xlu1 %v4621_v62  ;;  %1747 = vadd.xlane.f32.xlu0 %v4624_v2  ;;  %3404 = vrcp.f32 %v523_v21  ;;  %v1410_v14 = vsub.f32 %v4675_v59, %v1394_v29  ;;  %v1458_v40 = vsub.f32 %v4678_v33, %v1394_v29  ;;  %v1506_v3 = vsub.f32 %v4703_v47, %v1394_v29  ;;  %v4845_v21 = vld [vmem:[%s3970_s27 + $0x150] sm:$0xff] }
  0xd7   : > { %v4775_v38 = vpop.eup %3388  ;;  %v4779_v22 = vadd.f32 %v4684_v55, %v4757_v52  ;;  %v4783_v45 = vadd.f32 %v4688_v56, %v4760_v49  ;;  %v4787_v62 = vadd.f32 %v4692_v60, %v4763_v19  ;;  %v4791_v2 = vadd.f32 %v4699_v30, %v4766_v13 }
  0xd8   : > { %v4793_v59 = vpop.eup %3390  ;;  %v1665_v33 = vadd.f32 %v4775_v38, %v4768_v43  ;;  %v1435_v47 = vmul.f32 1.442695, %v1410_v14  ;;  %v1483_v55 = vmul.f32 1.442695, %v1458_v40  ;;  %3406 = vpow2.f32 %v391_v25  ;;  %v2969_v25 = vld [vmem:[%s3962_s19 + $0xd8] sm:$0xff] }
  0xd9   : > { %v4797_v50 = vpop.eup %3392  ;;  %v4800_v56 = vshrl.u32 %v6964_v7, 7  ;;  %v1554_v60 = vsub.f32 %v4719_v42, %v1394_v29  ;;  %3408 = vpow2.f32 %v423_v34  ;;  %v1531_v12 = vmul.f32 1.442695, %v1506_v3  ;;  %v3001_v3 = vld [vmem:[%s3962_s19 + $0x1d8] sm:$0xff] }
  0xda   : > { %v3395_v30 = vpop.eup %3394  ;;  %2275 = vadd.xlane.f32.xlu1 %v4627_v35  ;;  %2099 = vadd.xlane.f32.xlu0 %v4632_v44  ;;  %v1681_v6 = vadd.f32 %v1665_v33, %v1649_v51  ;;  %3410 = vpow2.f32 %v1435_v47  ;;  %v1602_v27 = vsub.f32 %v4734_v24, %v1394_v29  ;;  %v3000_v44 = vld [vmem:[%s3962_s19 + $0x1d0] sm:$0xff]  ;;  %v283_v29 = vld [vmem:[%s3962_s19 + $0x58] sm:$0xff] }
  0xdb   : > { %6991 = vst [vmem:[#allocation11_spill] sm:$0xff] %v4800_v56  ;;  %v4806_v0 = vpop.eup %3396  ;;  %v4809_v8 = vmul.f32 %v3395_v30, %v4629_v20  ;;  %v4812_v42 = vmul.f32 %v3395_v30, %v4618_v58  ;;  %v4815_v11 = vmul.f32 %v3395_v30, %v4669_v28  ;;  %v4818_v35 = vmul.f32 %v3395_v30, %v4636_v63  ;;  %v4825_v24 = vld [vmem:[%s3970_s27 + $0xd0] sm:$0xff]  ;;  %v4871_v30 = vld [vmem:[%s3970_s27 + $0x58] sm:$0xff] }
  0xdc   : > { %v4827_v16 = vpop.eup %3398  ;;  %v1697_v20 = vadd.f32 %v4793_v59, %v1681_v6  ;;  %v476_v58 = vadd.f32 %v4806_v0, %v4797_v50  ;;  %3412 = vpow2.f32 %v1483_v55  ;;  %v1579_v39 = vmul.f32 1.442695, %v1554_v60  ;;  %v4857_v51 = vld [vmem:[%s3970_s27 + $0x1d0] sm:$0xff]  ;;  %v4874_v6 = vld [vmem:[%s3970_s27 + $0xd8] sm:$0xff] }
  0xdd   : > { %v4833_v28 = vadd.f32 %v1950_v46, %v4809_v8  ;;  %v4836_v63 = vadd.f32 %v1774_v23, %v4812_v42  ;;  %v4839_v53 = vadd.f32 %v2302_v57, %v4815_v11  ;;  %v4842_v54 = vadd.f32 %v2126_v41, %v4818_v35  ;;  %v3064_v47 = vld [vmem:[%s3970_s27 + $0x250] sm:$0xff] }
  0xde   : > { %v4848_v18 = vpop.eup %3400  ;;  %753 = vadd.xlane.f32.xlu1 %v4660_v26  ;;  %575 = vadd.xlane.f32.xlu0 %v4663_v36  ;;  %3414 = vrcp.f32 %v1697_v20  ;;  %v1627_v46 = vmul.f32 1.442695, %v1602_v27  ;;  %v455_v23 = vmul.f32 1.442695, %v3000_v44  ;;  %v1347_v57 = vmax.f32 %v4822_v10, %v4825_v24  ;;  %v2985_v36 = vld [vmem:[%s3962_s19 + $0x158] sm:$0xff] }
  0xdf   : > { %v492_v41 = vadd.f32 %v4848_v18, %v4827_v16  ;;  %3416 = vpow2.f32 %v1531_v12  ;;  %v361_v34 = vmul.f32 1.442695, %v283_v29  ;;  %v4862_v14 = vpop.eup %3402  ;;  %v219_v33 = vcvt.s32.f32 %v4800_v56 }
  0xe0   : > { %3418 = vpow2.f32 %v1579_v39  ;;  %v1363_v26 = vmax.f32 %v1347_v57, %v4845_v21  ;;  %v393_v60 = vmul.f32 1.442695, %v2969_v25  ;;  %v4877_v27 = vadd.s32 8, %v4800_v56  ;;  %v4894_v57 = vld [vmem:[%s3970_s27 + $0x158] sm:$0xff] }
  0xe1   : > { %v508_v40 = vadd.f32 %v492_v41, %v476_v58  ;;  %3420 = vpow2.f32 %v1627_v46  ;;  %v457_v39 = vmul.f32 1.442695, %v3001_v3  ;;  %v5094_v7 = vadd.s32 32, %v4800_v56 }
  0xe2   : > { %1105 = vadd.xlane.f32.xlu1 %v4666_v5  ;;  %929 = vadd.xlane.f32.xlu0 %v4672_v32  ;;  %3422 = vpow2.f32 %v455_v23  ;;  %v1379_v55 = vmax.f32 %v1363_v26, %v4857_v51  ;;  %v425_v5 = vmul.f32 1.442695, %v2985_v36  ;;  %v4922_v36 = vld [vmem:[%s3970_s27 + $0x1d8] sm:$0xff] }
  0xe3   : > { %v3405_v12 = vpop.eup %3404  ;;  %v524_v44 = vadd.f32 1.105171, %v508_v40  ;;  %3424 = vpow2.f32 %v361_v34 }
  0xe4   : > { %v4880_v32 = vmul.f32 %v3405_v12, %v4705_v48  ;;  %v4883_v20 = vmul.f32 %v3405_v12, %v4695_v9  ;;  %v4886_v58 = vmul.f32 %v3405_v12, %v4714_v15  ;;  %v4891_v46 = vmul.f32 %v3405_v12, %v4709_v4 }
  0xe5   : > { %v4888_v29 = vpop.eup %3406  ;;  %3426 = vrcp.f32 %v524_v44  ;;  %v1395_v23 = vmax.f32 %v1379_v55, %v3064_v47  ;;  %v1348_v48 = vmax.f32 %v4871_v30, %v4874_v6  ;;  %v4934_v55 = vld [vmem:[%s3970_s27 + $0x258] sm:$0xff] }
  0xe6   : > { %v4898_v41 = vpop.eup %3408  ;;  %1925 = vadd.xlane.f32.xlu1 %v4725_v31  ;;  %1749 = vadd.xlane.f32.xlu0 %v4728_v61  ;;  %v4904_v9 = vadd.f32 %v4779_v22, %v4880_v32  ;;  %v4908_v4 = vadd.f32 %v4783_v45, %v4883_v20  ;;  %v4912_v15 = vadd.f32 %v4787_v62, %v4886_v58  ;;  %3428 = vpow2.f32 %v393_v60 }
  0xe7   : > { %v3411_v25 = vpop.eup %3410  ;;  %v4916_v26 = vadd.f32 %v4791_v2, %v4891_v46  ;;  %v1411_v31 = vsub.f32 %v4822_v10, %v1395_v23  ;;  %v1459_v61 = vsub.f32 %v4825_v24, %v1395_v23  ;;  %v1507_v22 = vsub.f32 %v4845_v21, %v1395_v23 }
  0xe8   : > { %v1555_v45 = vsub.f32 %v4857_v51, %v1395_v23  ;;  %v1603_v62 = vsub.f32 %v3064_v47, %v1395_v23  ;;  %3430 = vpow2.f32 %v425_v5  ;;  %v1364_v34 = vmax.f32 %v1348_v48, %v4894_v57  ;;  %v284_v47 = vld [vmem:[%s3962_s19 + $0x60] sm:$0xff] }
  0xe9   : > { %v4926_v40 = vpop.eup %3412  ;;  %v1437_v2 = vmul.f32 1.442695, %v1411_v31  ;;  %v1485_v3 = vmul.f32 1.442695, %v1459_v61  ;;  %3432 = vpow2.f32 %v457_v39  ;;  %v4930_v10 = vadd.f32 -64.0, %v219_v33 }
  0xea   : > { %2277 = vadd.xlane.f32.xlu1 %v4731_v17  ;;  %2101 = vadd.xlane.f32.xlu0 %v4737_v1  ;;  %v220_v24 = vcvt.s32.f32 %v4877_v27  ;;  %v1533_v21 = vmul.f32 1.442695, %v1507_v22  ;;  %v1380_v51 = vmax.f32 %v1364_v34, %v4922_v36  ;;  %v1650_v12 = vadd.f32 %v4926_v40, %v3411_v25 }
  0xeb   : > { %v3415_v60 = vpop.eup %3414  ;;  %v477_v44 = vadd.f32 %v4888_v29, %v4862_v14  ;;  %3434 = vpow2.f32 %v1437_v2  ;;  %v1581_v17 = vmul.f32 1.442695, %v1555_v45  ;;  %v1629_v23 = vmul.f32 1.442695, %v1603_v62 }
  0xec   : > { %v4941_v5 = vpop.eup %3416  ;;  %v4944_v1 = vmul.f32 %v3415_v60, %v4768_v43  ;;  %v4947_v33 = vmul.f32 %v3415_v60, %v4750_v37  ;;  %v4950_v39 = vmul.f32 %v3415_v60, %v4793_v59  ;;  %v4955_v25 = vmul.f32 %v3415_v60, %v4775_v38 }
  0xed   : > { %v4952_v48 = vpop.eup %3418  ;;  %3436 = vpow2.f32 %v1485_v3  ;;  %v4958_v31 = vmax.f32 %v1380_v51, %v4934_v55  ;;  %v363_v61 = vmul.f32 1.442695, %v284_v47  ;;  %v205_v45 = vadd.s32 16, %v4800_v56 }
  0xee   : > { %v4960_v22 = vpop.eup %3420  ;;  %755 = vadd.xlane.f32.xlu1 %v4757_v52  ;;  %577 = vadd.xlane.f32.xlu0 %v4760_v49  ;;  %v4966_v37 = vadd.f32 %v4833_v28, %v4944_v1  ;;  %v4970_v43 = vadd.f32 %v4836_v63, %v4947_v33  ;;  %v4974_v38 = vadd.f32 %v4839_v53, %v4950_v39  ;;  %3438 = vpow2.f32 %v1533_v21 }
  0xef   : > { %v4976_v59 = vpop.eup %3422  ;;  %v4980_v52 = vadd.f32 %v4842_v54, %v4955_v25  ;;  %v1666_v49 = vadd.f32 %v4952_v48, %v4941_v5  ;;  %3440 = vpow2.f32 %v1581_v17  ;;  %v1412_v28 = vsub.f32 %v4871_v30, %v4958_v31 }
  0xf0   : > { %v4986_v63 = vpop.eup %3424  ;;  %v493_v53 = vadd.f32 %v4976_v59, %v4898_v41  ;;  %v1460_v62 = vsub.f32 %v4874_v6, %v4958_v31  ;;  %v1508_v54 = vsub.f32 %v4894_v57, %v4958_v31  ;;  %3442 = vpow2.f32 %v1629_v23  ;;  %v2970_v23 = vld [vmem:[%s3962_s19 + $0xe0] sm:$0xff] }
  0xf1   : > { %v1682_v34 = vadd.f32 %v1666_v49, %v1650_v12  ;;  %v1439_v2 = vmul.f32 1.442695, %v1412_v28  ;;  %v1556_v3 = vsub.f32 %v4922_v36, %v4958_v31  ;;  %3444 = vpow2.f32 %v363_v61  ;;  %v5036_v61 = vld [vmem:[%s3970_s27 + $0x60] sm:$0xff] }
  0xf2   : > { %v3427_v30 = vpop.eup %3426  ;;  %1107 = vadd.xlane.f32.xlu1 %v4763_v19  ;;  %931 = vadd.xlane.f32.xlu0 %v4766_v13  ;;  %v509_v21 = vadd.f32 %v493_v53, %v477_v44  ;;  %v1487_v51 = vmul.f32 1.442695, %v1460_v62  ;;  %v1535_v47 = vmul.f32 1.442695, %v1508_v54  ;;  %v2986_v53 = vld [vmem:[%s3962_s19 + $0x160] sm:$0xff] }
  0xf3   : > { %v4999_v6 = vpop.eup %3428  ;;  %v5002_v57 = vmul.f32 %v3427_v30, %v4806_v0  ;;  %v5005_v60 = vmul.f32 %v3427_v30, %v4797_v50  ;;  %v5008_v36 = vmul.f32 %v3427_v30, %v4848_v18  ;;  %v5011_v19 = vmul.f32 %v3427_v30, %v4827_v16  ;;  %v5051_v62 = vld [vmem:[%s3970_s27 + $0x160] sm:$0xff] }
  0xf4   : > { %v1698_v13 = vadd.f32 %v4960_v22, %v1682_v34  ;;  %v525_v12 = vadd.f32 1.105171, %v509_v21  ;;  %v478_v44 = vadd.f32 %v4999_v6, %v4986_v63  ;;  %3446 = vpow2.f32 %v1439_v2  ;;  %v5062_v2 = vld [vmem:[%s3970_s27 + $0x1e0] sm:$0xff] }
  0xf5   : > { %v5016_v17 = vpop.eup %3430  ;;  %v5020_v0 = vadd.f32 %v4904_v9, %v5002_v57  ;;  %v5024_v50 = vadd.f32 %v4908_v4, %v5005_v60  ;;  %v5028_v16 = vadd.f32 %v4912_v15, %v5008_v36  ;;  %v5032_v18 = vadd.f32 %v4916_v26, %v5011_v19  ;;  %v5039_v9 = vld [vmem:[%s3970_s27 + $0xe0] sm:$0xff] }
  0xf6   : > { %v5041_v49 = vpop.eup %3432  ;;  %1927 = vadd.xlane.f32.xlu1 %v4809_v8  ;;  %1751 = vadd.xlane.f32.xlu0 %v4812_v42  ;;  %3448 = vrcp.f32 %v1698_v13  ;;  %v221_v4 = vcvt.s32.f32 %v205_v45  ;;  %v1583_v15 = vmul.f32 1.442695, %v1556_v3  ;;  %v2942_v26 = vadd.f32 -64.0, %v220_v24  ;;  %v3002_v42 = vld [vmem:[%s3962_s19 + $0x1e0] sm:$0xff] }
  0xf7   : > { %3450 = vrcp.f32 %v525_v12  ;;  %v494_v28 = vadd.f32 %v5041_v49, %v5016_v17  ;;  %v1604_v8 = vsub.f32 %v4934_v55, %v4958_v31  ;;  %v395_v45 = vmul.f32 1.442695, %v2970_v23  ;;  %v5065_v3 = vld [vmem:[%s3970_s27 + $0x260] sm:$0xff] }
  0xf8   : > { %v3435_v54 = vpop.eup %3434  ;;  %3452 = vpow2.f32 %v1487_v51  ;;  %v1349_v27 = vmax.f32 %v5036_v61, %v5039_v9  ;;  %v5059_v24 = vmul.f32 0.015625, %v4930_v10  ;;  %v2943_v55 = vadd.f32 -64.0, %v221_v4  ;;  %v285_v10 = vld [vmem:[%s3962_s19 + $0x68] sm:$0xff] }
  0xf9   : > { %v510_v34 = vadd.f32 %v494_v28, %v478_v44  ;;  %3454 = vpow2.f32 %v1535_v47  ;;  %v427_v31 = vmul.f32 1.442695, %v2986_v53  ;;  %v5074_v51 = vld [vmem:[%s3970_s27 + $0x68] sm:$0xff]  ;;  %v5082_v12 = vadd.s32 24, %v4800_v56 }
  0xfa   : > { %v5067_v30 = vpop.eup %3436  ;;  %2279 = vadd.xlane.f32.xlu1 %v4815_v11  ;;  %2103 = vadd.xlane.f32.xlu0 %v4818_v35  ;;  %3456 = vpow2.f32 %v1583_v15  ;;  %v1365_v21 = vmax.f32 %v1349_v27, %v5051_v62  ;;  %v5077_v47 = vld [vmem:[%s3970_s27 + $0xe8] sm:$0xff]  ;;  %v459_v23 = vmul.f32 1.442695, %v3002_v42  ;;  %v5088_v15 = vmul.f32 0.015625, %v2942_v26 }
  0xfb   : > { %6992 = vst [vmem:[#allocation12_spill] sm:$0xff] %v5077_v47  ;;  %v5079_v13 = vpop.eup %3438  ;;  %v1651_v44 = vadd.f32 %v5067_v30, %v3435_v54  ;;  %v526_v11 = vadd.f32 1.105171, %v510_v34  ;;  %v2971_v35 = vld [vmem:[%s3962_s19 + $0xe8] sm:$0xff]  ;;  %v1631_v28 = vmul.f32 1.442695, %v1604_v8  ;;  %3458 = vpow2.f32 %v395_v45 }
  0xfc   : > { %v5086_v4 = vpop.eup %3440  ;;  %v1381_v53 = vmax.f32 %v1365_v21, %v5062_v2  ;;  %v365_v54 = vmul.f32 1.442695, %v285_v10  ;;  %v397_v8 = vmul.f32 1.442695, %v2971_v35  ;;  %v5104_v45 = vld [vmem:[%s3970_s27 + $0x168] sm:$0xff]  ;;  %v1350_v34 = vmax.f32 %v5074_v51, %v5077_v47 }
  0xfd   : > { %v1667_v27 = vadd.f32 %v5086_v4, %v5079_v13  ;;  %3460 = vrcp.f32 %v526_v11  ;;  %v5096_v42 = vpop.eup %3442  ;;  %v5110_v10 = vmul.f32 0.015625, %v2943_v55  ;;  %v5121_v47 = vld [vmem:[%s3970_s27 + $0x1e8] sm:$0xff] }
  0xfe   : > { %757 = vadd.xlane.f32.xlu1 %v4880_v32  ;;  %579 = vadd.xlane.f32.xlu0 %v4883_v20  ;;  %3462 = vpow2.f32 %v427_v31  ;;  %v5101_v26 = vmax.f32 %v1381_v53, %v5065_v3  ;;  %v5108_v21 = vpop.eup %3444  ;;  %v2987_v20 = vld [vmem:[%s3962_s19 + $0x168] sm:$0xff] }
  0xff   : > { %6993 = vst [vmem:[#allocation13_spill] sm:$0xff] %v5108_v21  ;;  %v1683_v11 = vadd.f32 %v1667_v27, %v1651_v44  ;;  %3464 = vpow2.f32 %v459_v23  ;;  %v5126_v44 = vmax.f32 %v1350_v34, %v5104_v45 }
 0x100   : > { %3466 = vpow2.f32 %v1631_v28  ;;  %v1413_v31 = vsub.f32 %v5036_v61, %v5101_v26  ;;  %v1461_v35 = vsub.f32 %v5039_v9, %v5101_v26  ;;  %v1509_v53 = vsub.f32 %v5051_v62, %v5101_v26 }
 0x101   : > { %v3447_v56 = vpop.eup %3446  ;;  %v1699_v55 = vadd.f32 %v5096_v42, %v1683_v11  ;;  %3468 = vpow2.f32 %v365_v54  ;;  %v1557_v9 = vsub.f32 %v5062_v2, %v5101_v26  ;;  %v5132_v62 = vmul.f32 1.442695, %v2987_v20 }
 0x102   : > { %1109 = vadd.xlane.f32.xlu1 %v4886_v58  ;;  %933 = vadd.xlane.f32.xlu0 %v4891_v46  ;;  %v1441_v61 = vmul.f32 1.442695, %v1413_v31  ;;  %3470 = vpow2.f32 %v397_v8  ;;  %v1489_v28 = vmul.f32 1.442695, %v1461_v35  ;;  %v5134_v27 = vmul.f32 1.442695, %v1509_v53 }
 0x103   : > { %v3449_v23 = vpop.eup %3448  ;;  %3472 = vrcp.f32 %v1699_v55 }
 0x104   : > { %v3451_v34 = vpop.eup %3450  ;;  %v5139_v58 = vmul.f32 %v3449_v23, %v4941_v5  ;;  %v5142_v46 = vmul.f32 %v3449_v23, %v4926_v40  ;;  %v5145_v2 = vmul.f32 %v3449_v23, %v4960_v22  ;;  %v5148_v8 = vmul.f32 %v3449_v23, %v4952_v48 }
 0x105   : > { %v5150_v11 = vpop.eup %3452  ;;  %v5153_v20 = vmul.f32 %v3451_v34, %v4888_v29  ;;  %v5156_v31 = vmul.f32 %v3451_v34, %v4862_v14  ;;  %v5159_v5 = vmul.f32 %v3451_v34, %v4976_v59  ;;  %v5162_v40 = vmul.f32 %v3451_v34, %v4898_v41 }
 0x106   : > { %6994 = vst [vmem:[#allocation14_spill] sm:$0xff] %v5150_v11  ;;  %v5164_v35 = vpop.eup %3454  ;;  %1929 = vadd.xlane.f32.xlu1 %v4944_v1  ;;  %1753 = vadd.xlane.f32.xlu0 %v4947_v33  ;;  %v5170_v48 = vadd.f32 %v4966_v37, %v5139_v58  ;;  %v5174_v14 = vadd.f32 %v4970_v43, %v5142_v46  ;;  %v5180_v41 = vmul.f32 1.442695, %v1557_v9  ;;  %3474 = vpow2.f32 %v1441_v61 }
 0x107   : > { %6995 = vst [vmem:[#allocation15_spill] sm:$0xff] %v5164_v35  ;;  %v5178_v29 = vadd.f32 %v4974_v38, %v5145_v2  ;;  %v5182_v22 = vpop.eup %3456  ;;  %v742_v59 = vpop.xlane.xlu1 %741  ;;  %v5186_v33 = vadd.f32 %v4980_v52, %v5148_v8  ;;  %v782_v37 = vadd.f32 %v5020_v0, %v5153_v20  ;;  %v604_v43 = vadd.f32 %v5024_v50, %v5156_v31 }
 0x108   : > { %6996 = vst [vmem:[#allocation16_spill] sm:$0xff] %v5182_v22  ;;  %v564_v1 = vpop.xlane.xlu0 %563  ;;  %v1134_v38 = vadd.f32 %v5028_v16, %v5159_v5  ;;  %v794_v53 = vsel %vm616_vm0, %v742_v59, 0.0  ;;  %v834_v55 = vmul.f32 %v742_v59, %v5059_v24  ;;  %v5197_v23 = vpop.eup %3458  ;;  %v958_v0 = vadd.f32 %v5032_v18, %v5162_v40 }
 0x109   : > { %v657_v9 = vmul.f32 %v564_v1, %v5059_v24  ;;  %6997 = vst [vmem:[#allocation17_spill] sm:$0xff] %v5197_v23  ;;  %v617_v52 = vsel %vm616_vm0, %v564_v1, 0.0  ;;  %v1652_v34 = vadd.f32 %v5150_v11, %v3447_v56  ;;  %v1668_v50 = vadd.f32 %v5182_v22, %v5164_v35 }
 0x10a   : > { %v3461_v16 = vpop.eup %3460  ;;  %v850_v32 = vsel %vm616_vm0, %v834_v55, 0.0  ;;  %2281 = vadd.xlane.f32.xlu1 %v4950_v39  ;;  %2105 = vadd.xlane.f32.xlu0 %v4955_v25  ;;  %v5211_v61 = vadd.f32 %v5197_v23, %v5108_v21  ;;  %3476 = vpow2.f32 %v1489_v28 }
 0x10b   : > { %v673_v59 = vsel %vm616_vm0, %v657_v9, 0.0  ;;  %v5213_v18 = vpop.eup %3462  ;;  %v744_v56 = vpop.xlane.xlu1 %743  ;;  %v5216_v54 = vmul.f32 %v3461_v16, %v4999_v6  ;;  %v5219_v55 = vmul.f32 %v3461_v16, %v4986_v63  ;;  %v5222_v9 = vmul.f32 %v3461_v16, %v5041_v49 }
 0x10c   : > { %v566_v1 = vpop.xlane.xlu0 %565  ;;  %v5225_v39 = vmul.f32 %v3461_v16, %v5016_v17  ;;  %v5227_v25 = vpop.eup %3464  ;;  %v795_v28 = vsel %vm616_vm0, %v744_v56, 0.0  ;;  %v835_v21 = vmul.f32 %v744_v56, %v5088_v15 }
 0x10d   : > { %6998 = vst [vmem:[#allocation18_spill] sm:$0xff] %v5222_v9  ;;  %v618_v23 = vsel %vm616_vm0, %v566_v1, 0.0  ;;  %v658_v6 = vmul.f32 %v566_v1, %v5088_v15  ;;  %v5233_v22 = vpop.eup %3466  ;;  %v5235_v63 = vadd.f32 %v795_v28, %v794_v53  ;;  %v5240_v49 = vadd.f32 %v782_v37, %v5216_v54 }
 0x10e   : > { %6999 = vst [vmem:[#allocation19_spill] sm:$0xff] %v5225_v39  ;;  %v5237_v11 = vadd.f32 %v618_v23, %v617_v52  ;;  %v5243_v17 = vadd.f32 %v604_v43, %v5219_v55  ;;  %v5245_v16 = vpop.eup %3468  ;;  %v851_v56 = vsel %vm616_vm0, %v835_v21, 0.0  ;;  %759 = vadd.xlane.f32.xlu1 %v5002_v57  ;;  %581 = vadd.xlane.f32.xlu0 %v5005_v60 }
 0x10f   : > { %v674_v35 = vsel %vm616_vm0, %v658_v6, 0.0  ;;  %v5252_v53 = vadd.f32 %v1134_v38, %v5222_v9  ;;  %v5255_v23 = vadd.f32 %v958_v0, %v5225_v39  ;;  %v5257_v37 = vpop.eup %3470  ;;  %v5259_v43 = vadd.f32 %v851_v56, %v850_v32  ;;  %v920_v1 = vpop.xlane.xlu1 %919 }
 0x110   : > { %v5261_v52 = vadd.f32 %v674_v35, %v673_v59  ;;  %v918_v21 = vpop.xlane.xlu0 %917  ;;  %v1684_v28 = vadd.f32 %v1668_v50, %v1652_v34  ;;  %v495_v57 = vadd.f32 %v5227_v25, %v5213_v18  ;;  %v3473_v6 = vpop.eup %3472  ;;  %v971_v60 = vsel %vm616_vm0, %v920_v1, 0.0 }
 0x111   : > { %v1011_v38 = vmul.f32 %v920_v1, %v5088_v15  ;;  %v970_v0 = vsel %vm616_vm0, %v918_v21, 0.0  ;;  %v1010_v39 = vmul.f32 %v918_v21, %v5059_v24  ;;  %v5272_v32 = vmul.f32 %v3473_v6, %v5079_v13 }
 0x112   : > { %v5269_v9 = vadd.f32 %v971_v60, %v970_v0  ;;  %v5275_v35 = vmul.f32 %v3473_v6, %v5067_v30  ;;  %v5278_v34 = vmul.f32 %v3473_v6, %v5096_v42  ;;  %1111 = vadd.xlane.f32.xlu1 %v5008_v36  ;;  %935 = vadd.xlane.f32.xlu0 %v5011_v19  ;;  %v3003_v19 = vld [vmem:[%s3962_s19 + $0x1e8] sm:$0xff] }
 0x113   : > { %v1027_v50 = vsel %vm616_vm0, %v1011_v38, 0.0  ;;  %v1026_v59 = vsel %vm616_vm0, %v1010_v39, 0.0  ;;  %v5285_v56 = vmul.f32 %v3473_v6, %v5086_v4  ;;  %v1700_v13 = vadd.f32 %v5233_v22, %v1684_v28  ;;  %v1096_v30 = vpop.xlane.xlu1 %1095 }
 0x114   : > { %v5288_v1 = vadd.f32 %v1027_v50, %v1026_v59  ;;  %v1094_v21 = vpop.xlane.xlu0 %1093  ;;  %v5292_v42 = vadd.f32 %v5170_v48, %v5272_v32  ;;  %v5296_v39 = vadd.f32 %v5174_v14, %v5275_v35  ;;  %v5300_v36 = vadd.f32 %v5178_v29, %v5278_v34  ;;  %v3475_v48 = vpop.eup %3474 }
 0x115   : > { %v1147_v4 = vsel %vm616_vm0, %v1096_v30, 0.0  ;;  %v1187_v28 = vmul.f32 %v1096_v30, %v5088_v15  ;;  %v1146_v6 = vsel %vm616_vm0, %v1094_v21, 0.0  ;;  %v1186_v60 = vmul.f32 %v1094_v21, %v5059_v24  ;;  %v5318_v30 = vld [vmem:[%s3970_s27 + $0x268] sm:$0xff] }
 0x116   : > { %v1148_v38 = vadd.f32 %v1147_v4, %v1146_v6  ;;  %v5309_v14 = vadd.f32 %v5186_v33, %v5285_v56  ;;  %3478 = vrcp.f32 %v1700_v13  ;;  %v511_v29 = vadd.f32 %v495_v57, %v5211_v61  ;;  %1931 = vadd.xlane.f32.xlu1 %v5139_v58  ;;  %1755 = vadd.xlane.f32.xlu0 %v5142_v46 }
 0x117   : > { %v1203_v0 = vsel %vm616_vm0, %v1187_v28, 0.0  ;;  %v1202_v50 = vsel %vm616_vm0, %v1186_v60, 0.0  ;;  %3480 = vpow2.f32 %v5134_v27  ;;  %v461_v59 = vmul.f32 1.442695, %v3003_v19  ;;  %v5320_v21 = vpop.eup %3476  ;;  %v746_v13 = vpop.xlane.xlu1 %745 }
 0x118   : > { %v5322_v33 = vadd.f32 %v1203_v0, %v1202_v50  ;;  %v568_v4 = vpop.xlane.xlu0 %567  ;;  %v527_v61 = vadd.f32 1.105171, %v511_v29  ;;  %3482 = vpow2.f32 %v5180_v41  ;;  %v1605_v57 = vsub.f32 %v5065_v3, %v5101_v26 }
 0x119   : > { %v797_v58 = vsel %vm616_vm0, %v746_v13, 0.0  ;;  %v836_v46 = vmul.f32 %v746_v13, %v5110_v10  ;;  %v620_v27 = vsel %vm616_vm0, %v568_v4, 0.0  ;;  %v659_v19 = vmul.f32 %v568_v4, %v5110_v10 }
 0x11a   : > { %v798_v28 = vadd.f32 %v797_v58, %v5235_v63  ;;  %v621_v6 = vadd.f32 %v620_v27, %v5237_v11  ;;  %3484 = vrcp.f32 %v527_v61  ;;  %v7000_v41 = vmax.f32 %v5126_v44, %v5121_v47  ;;  %2283 = vadd.xlane.f32.xlu1 %v5145_v2  ;;  %2107 = vadd.xlane.f32.xlu0 %v5148_v8 }
 0x11b   : > { %v853_v3 = vsel %vm616_vm0, %v836_v46, 0.0  ;;  %v676_v26 = vsel %vm616_vm0, %v659_v19, 0.0  ;;  %3486 = vpow2.f32 %v5132_v62  ;;  %v1098_v29 = vpop.xlane.xlu1 %1097  ;;  %v1633_v0 = vmul.f32 1.442695, %v1605_v57  ;;  %v7003_v62 = vld [vmem:[#allocation11_spill] sm:$0xff] }
 0x11c   : > { %v5337_v60 = vmax.f32 %v7000_v41, %v5318_v30  ;;  %v5345_v63 = vadd.f32 %v853_v3, %v5259_v43  ;;  %v5348_v11 = vadd.f32 %v676_v26, %v5261_v52  ;;  %v922_v44 = vpop.xlane.xlu0 %921  ;;  %3488 = vpow2.f32 %v461_v59 }
 0x11d   : > { %v7001_v50 = vcvt.s32.f32 %v5082_v12  ;;  %v7002_v4 = vcvt.s32.f32 %v5094_v7  ;;  %v5357_v61 = vadd.s32 40, %v7003_v62  ;;  %v1149_v43 = vsel %vm616_vm0, %v1098_v29, 0.0  ;;  %v7004_v12 = vld [vmem:[#allocation12_spill] sm:$0xff] }
 0x11e   : > { %v1414_v8 = vsub.f32 %v5074_v51, %v5337_v60  ;;  %v1188_v52 = vmul.f32 %v1098_v29, %v5110_v10  ;;  %v1012_v58 = vmul.f32 %v922_v44, %v5110_v10  ;;  %761 = vadd.xlane.f32.xlu1 %v5153_v20  ;;  %583 = vadd.xlane.f32.xlu0 %v5156_v31  ;;  %3490 = vpow2.f32 %v1633_v0 }
 0x11f   : > { %v2944_v13 = vadd.f32 -64.0, %v7001_v50  ;;  %v2945_v2 = vadd.f32 -64.0, %v7002_v4  ;;  %v1462_v7 = vsub.f32 %v7004_v12, %v5337_v60  ;;  %v748_v59 = vpop.xlane.xlu1 %747  ;;  %v5369_v46 = vadd.f32 %v5320_v21, %v3475_v48 }
 0x120   : > { %v570_v57 = vpop.xlane.xlu0 %569  ;;  %v5375_v19 = vadd.f32 %v5257_v37, %v5245_v16  ;;  %v5377_v20 = vadd.f32 %v1149_v43, %v1148_v38  ;;  %v973_v31 = vsel %vm616_vm0, %v922_v44, 0.0  ;;  %v1443_v41 = vmul.f32 1.442695, %v1414_v8  ;;  %v7006_v8 = vld [vmem:[#allocation15_spill] sm:$0xff] }
 0x121   : > { %v5366_v51 = vmul.f32 0.015625, %v2944_v13  ;;  %v5371_v27 = vmul.f32 0.015625, %v2945_v2  ;;  %v1205_v29 = vsel %vm616_vm0, %v1188_v52, 0.0  ;;  %v1029_v0 = vsel %vm616_vm0, %v1012_v58, 0.0  ;;  %v7007_v52 = vld [vmem:[#allocation14_spill] sm:$0xff] }
 0x122   : > { %1113 = vadd.xlane.f32.xlu1 %v5159_v5  ;;  %937 = vadd.xlane.f32.xlu0 %v5162_v40  ;;  %v1491_v48 = vmul.f32 1.442695, %v1462_v7  ;;  %v1510_v50 = vsub.f32 %v5104_v45, %v5337_v60  ;;  %v799_v44 = vsel %vm616_vm0, %v748_v59, 0.0  ;;  %v622_v13 = vsel %vm616_vm0, %v570_v57, 0.0 }
 0x123   : > { %7005 = vst [vmem:[#allocation12_spill] sm:$0xff] %v5371_v27  ;;  %v3479_v26 = vpop.eup %3478  ;;  %v1100_v4 = vpop.xlane.xlu1 %1099  ;;  %v974_v40 = vadd.f32 %v973_v31, %v5269_v9  ;;  %v837_v45 = vmul.f32 %v748_v59, %v5366_v51  ;;  %v660_v12 = vmul.f32 %v570_v57, %v5366_v51  ;;  %v1558_v7 = vsub.f32 %v5121_v47, %v5337_v60  ;;  %v7008_v31 = vld [vmem:[#allocation16_spill] sm:$0xff] }
 0x124   : > { %v5387_v38 = vpop.eup %3480  ;;  %v924_v2 = vpop.xlane.xlu0 %923  ;;  %v5392_v43 = vmul.f32 %v3479_v26, %v7006_v8  ;;  %v5395_v58 = vmul.f32 %v3479_v26, %v7007_v52  ;;  %v1206_v3 = vadd.f32 %v1205_v29, %v5322_v33  ;;  %3492 = vpow2.f32 %v1443_v41 }
 0x125   : > { %v5397_v5 = vpop.eup %3482  ;;  %v5414_v9 = vadd.f32 %v1029_v0, %v5288_v1  ;;  %v5416_v59 = vadd.f32 %v799_v44, %v798_v28  ;;  %v5418_v57 = vadd.f32 %v622_v13, %v621_v6  ;;  %3494 = vpow2.f32 %v1491_v48  ;;  %v7009_v1 = vld [vmem:[#allocation17_spill] sm:$0xff] }
 0x126   : > { %v5407_v8 = vadd.f32 %v5292_v42, %v5392_v43  ;;  %v5411_v52 = vadd.f32 %v5296_v39, %v5395_v58  ;;  %1933 = vadd.xlane.f32.xlu1 %v5272_v32  ;;  %1757 = vadd.xlane.f32.xlu0 %v5275_v35  ;;  %v5425_v39 = vmul.f32 %v3479_v26, %v5233_v22  ;;  %v1539_v6 = vmul.f32 1.442695, %v1510_v50  ;;  %v7010_v48 = vld [vmem:[#allocation13_spill] sm:$0xff] }
 0x127   : > { %v3485_v27 = vpop.eup %3484  ;;  %v1740_v42 = vpop.xlane.xlu1 %1739  ;;  %v5428_v41 = vmul.f32 %v3479_v26, %v7008_v31  ;;  %v855_v32 = vsel %vm616_vm0, %v837_v45, 0.0  ;;  %v678_v35 = vsel %vm616_vm0, %v660_v12, 0.0  ;;  %v1189_v0 = vmul.f32 %v1100_v4, %v5366_v51 }
 0x128   : > { %v5422_v47 = vpop.eup %3486  ;;  %v1738_v33 = vpop.xlane.xlu0 %1737  ;;  %v5431_v28 = vmul.f32 %v3485_v27, %v7009_v1  ;;  %v5439_v44 = vmul.f32 %v3485_v27, %v7010_v48  ;;  %v5443_v22 = vadd.f32 %v5300_v36, %v5425_v39  ;;  %v1606_v13 = vsub.f32 %v5318_v30, %v5337_v60 }
 0x129   : > { %v5433_v29 = vpop.eup %3488  ;;  %v5447_v26 = vadd.f32 %v5309_v14, %v5428_v41  ;;  %v1151_v45 = vsel %vm616_vm0, %v1100_v4, 0.0  ;;  %v975_v12 = vsel %vm616_vm0, %v924_v2, 0.0  ;;  %v1013_v31 = vmul.f32 %v924_v2, %v5366_v51 }
 0x12a   : > { %v5451_v50 = vadd.f32 %v5240_v49, %v5431_v28  ;;  %2285 = vadd.xlane.f32.xlu1 %v5278_v34  ;;  %2109 = vadd.xlane.f32.xlu0 %v5285_v56  ;;  %v5462_v36 = vadd.f32 %v5243_v17, %v5439_v44  ;;  %v5465_v1 = vmul.f32 %v3485_v27, %v5227_v25  ;;  %v1207_v25 = vsel %vm616_vm0, %v1189_v0, 0.0 }
 0x12b   : > { %v1916_v14 = vpop.xlane.xlu1 %1915  ;;  %v5468_v30 = vmul.f32 %v3485_v27, %v5213_v18  ;;  %v1669_v60 = vadd.f32 %v5397_v5, %v5387_v38  ;;  %v496_v34 = vadd.f32 %v5433_v29, %v5422_v47  ;;  %v5474_v4 = vpop.eup %3490  ;;  %v5477_v56 = vadd.f32 %v855_v32, %v5345_v63 }
 0x12c   : > { %v1914_v49 = vpop.xlane.xlu0 %1913  ;;  %v5480_v17 = vadd.f32 %v678_v35, %v5348_v11  ;;  %v1831_v2 = vmul.f32 %v1740_v42, %v5088_v15  ;;  %v1830_v18 = vmul.f32 %v1738_v33, %v5059_v24  ;;  %v5487_v27 = vadd.f32 %v5252_v53, %v5465_v1 }
 0x12d   : > { %v5491_v48 = vadd.f32 %v5255_v23, %v5468_v30  ;;  %v1685_v63 = vadd.f32 %v1669_v60, %v5369_v46  ;;  %v5495_v32 = vadd.f32 %v1151_v45, %v5377_v20  ;;  %v5497_v11 = vadd.f32 %v975_v12, %v974_v40  ;;  %v286_v45 = vld [vmem:[%s3962_s19 + $0x70] sm:$0xff] }
 0x12e   : > { %7011 = vst [vmem:[#allocation15_spill] sm:$0xff] %v5480_v17  ;;  %763 = vadd.xlane.f32.xlu1 %v5216_v54  ;;  %585 = vadd.xlane.f32.xlu0 %v5219_v55  ;;  %v512_v35 = vadd.f32 %v496_v34, %v5375_v19  ;;  %v1587_v53 = vmul.f32 1.442695, %v1558_v7  ;;  %v5502_v0 = vadd.f32 %v1207_v25, %v1206_v3  ;;  %v1031_v23 = vsel %vm616_vm0, %v1013_v31, 0.0  ;;  %v2972_v25 = vld [vmem:[%s3962_s19 + $0xf0] sm:$0xff] }
 0x12f   : > { %7012 = vst [vmem:[#allocation14_spill] sm:$0xff] %v5497_v11  ;;  %v1791_v17 = vsel %vm616_vm0, %v1740_v42, 0.0  ;;  %v2092_v46 = vpop.xlane.xlu1 %2091  ;;  %v1701_v20 = vadd.f32 %v5474_v4, %v1685_v63  ;;  %v1847_v40 = vsel %vm616_vm0, %v1831_v2, 0.0  ;;  %v1790_v54 = vsel %vm616_vm0, %v1738_v33, 0.0  ;;  %v7015_v33 = vld [vmem:[#allocation18_spill] sm:$0xff] }
 0x130   : > { %7013 = vst [vmem:[#allocation16_spill] sm:$0xff] %v5502_v0  ;;  %v2090_v60 = vpop.xlane.xlu0 %2089  ;;  %v2007_v55 = vmul.f32 %v1916_v14, %v5088_v15  ;;  %3496 = vpow2.f32 %v1539_v6  ;;  %v1846_v19 = vsel %vm616_vm0, %v1830_v18, 0.0  ;;  %v2006_v3 = vmul.f32 %v1914_v49, %v5059_v24  ;;  %v7016_v6 = vld [vmem:[#allocation19_spill] sm:$0xff] }
 0x131   : > { %3498 = vrcp.f32 %v1701_v20  ;;  %v528_v7 = vadd.f32 1.105171, %v512_v35  ;;  %v3493_v42 = vpop.eup %3492  ;;  %v5514_v12 = vadd.f32 %v1031_v23, %v5414_v9  ;;  %v2183_v31 = vmul.f32 %v2092_v46, %v5088_v15 }
 0x132   : > { %v2182_v34 = vmul.f32 %v2090_v60, %v5059_v24  ;;  %1115 = vadd.xlane.f32.xlu1 %v7015_v33  ;;  %939 = vadd.xlane.f32.xlu0 %v7016_v6  ;;  %3500 = vpow2.f32 %v1587_v53  ;;  %v5521_v2 = vpop.eup %3494  ;;  %v5523_v18 = vadd.f32 %v1791_v17, %v1790_v54  ;;  %v1967_v63 = vsel %vm616_vm0, %v1916_v14, 0.0  ;;  %v3004_v6 = vld [vmem:[%s3962_s19 + $0x1f0] sm:$0xff] }
 0x133   : > { %7014 = vst [vmem:[#allocation17_spill] sm:$0xff] %v5514_v12  ;;  %v1966_v9 = vsel %vm616_vm0, %v1914_v49, 0.0  ;;  %v2268_v35 = vpop.xlane.xlu1 %2267  ;;  %v1635_v20 = vmul.f32 1.442695, %v1606_v13  ;;  %v2988_v12 = vld [vmem:[%s3962_s19 + $0x170] sm:$0xff]  ;;  %v5528_v0 = vadd.f32 %v1847_v40, %v1846_v19  ;;  %v2023_v33 = vsel %vm616_vm0, %v2007_v55, 0.0 }
 0x134   : > { %v2266_v23 = vpop.xlane.xlu0 %2265  ;;  %3502 = vrcp.f32 %v528_v7  ;;  %v367_v53 = vmul.f32 1.442695, %v286_v45  ;;  %v2022_v11 = vsel %vm616_vm0, %v2006_v3, 0.0  ;;  %v2143_v17 = vsel %vm616_vm0, %v2092_v46, 0.0 }
 0x135   : > { %v2142_v14 = vsel %vm616_vm0, %v2090_v60, 0.0  ;;  %v399_v49 = vmul.f32 1.442695, %v2972_v25  ;;  %v1968_v54 = vadd.f32 %v1967_v63, %v1966_v9  ;;  %v2199_v13 = vsel %vm616_vm0, %v2183_v31, 0.0  ;;  %v5542_v60 = vld [vmem:[%s3970_s27 + $0x70] sm:$0xff] }
 0x136   : > { %v2198_v40 = vsel %vm616_vm0, %v2182_v34, 0.0  ;;  %1935 = vadd.xlane.f32.xlu1 %v5392_v43  ;;  %1759 = vadd.xlane.f32.xlu0 %v5395_v58  ;;  %v431_v55 = vmul.f32 1.442695, %v2988_v12  ;;  %v2359_v19 = vmul.f32 %v2268_v35, %v5088_v15  ;;  %v2358_v3 = vmul.f32 %v2266_v23, %v5059_v24  ;;  %v5545_v25 = vld [vmem:[%s3970_s27 + $0xf0] sm:$0xff] }
 0x137   : > { %v1918_v7 = vpop.xlane.xlu1 %1917  ;;  %3504 = vpow2.f32 %v1635_v20  ;;  %v463_v45 = vmul.f32 1.442695, %v3004_v6  ;;  %v2024_v31 = vadd.f32 %v2023_v33, %v2022_v11  ;;  %v2144_v63 = vadd.f32 %v2143_v17, %v2142_v14  ;;  %v5562_v6 = vld [vmem:[%s3970_s27 + $0x170] sm:$0xff] }
 0x138   : > { %v1742_v46 = vpop.xlane.xlu0 %1741  ;;  %v2008_v34 = vmul.f32 %v1918_v7, %v5110_v10  ;;  %3506 = vpow2.f32 %v367_v53  ;;  %v2319_v43 = vsel %vm616_vm0, %v2268_v35, 0.0  ;;  %v2318_v15 = vsel %vm616_vm0, %v2266_v23, 0.0 }
 0x139   : > { %v1832_v24 = vmul.f32 %v1742_v46, %v5110_v10  ;;  %3508 = vpow2.f32 %v399_v49  ;;  %v2200_v58 = vadd.f32 %v2199_v13, %v2198_v40  ;;  %v5554_v12 = vadd.f32 %v5521_v2, %v3493_v42 }
 0x13a   : > { %2287 = vadd.xlane.f32.xlu1 %v5425_v39  ;;  %2111 = vadd.xlane.f32.xlu0 %v5428_v41  ;;  %3510 = vpow2.f32 %v431_v55  ;;  %v1351_v11 = vmax.f32 %v5542_v60, %v5545_v25  ;;  %v2375_v9 = vsel %vm616_vm0, %v2359_v19, 0.0  ;;  %v2374_v35 = vsel %vm616_vm0, %v2358_v3, 0.0 }
 0x13b   : > { %v1969_v23 = vsel %vm616_vm0, %v1918_v7, 0.0  ;;  %v2270_v20 = vpop.xlane.xlu1 %2269  ;;  %3512 = vpow2.f32 %v463_v45  ;;  %v2320_v39 = vadd.f32 %v2319_v43, %v2318_v15  ;;  %v2025_v41 = vsel %vm616_vm0, %v2008_v34, 0.0 }
 0x13c   : > { %v2094_v33 = vpop.xlane.xlu0 %2093  ;;  %v1793_v42 = vsel %vm616_vm0, %v1742_v46, 0.0  ;;  %v2360_v53 = vmul.f32 %v2270_v20, %v5110_v10  ;;  %v1849_v14 = vsel %vm616_vm0, %v1832_v24, 0.0  ;;  %v2321_v49 = vsel %vm616_vm0, %v2270_v20, 0.0 }
 0x13d   : > { %v5567_v17 = vpop.eup %3496  ;;  %v2145_v13 = vsel %vm616_vm0, %v2094_v33, 0.0  ;;  %v2184_v40 = vmul.f32 %v2094_v33, %v5110_v10  ;;  %v2376_v19 = vadd.f32 %v2375_v9, %v2374_v35  ;;  %v1970_v3 = vadd.f32 %v1969_v23, %v1968_v54  ;;  %v5587_v9 = vld [vmem:[%s3970_s27 + $0x1f0] sm:$0xff] }
 0x13e   : > { %v3499_v55 = vpop.eup %3498  ;;  %765 = vadd.xlane.f32.xlu1 %v5431_v28  ;;  %587 = vadd.xlane.f32.xlu0 %v5439_v44  ;;  %v7017_v7 = vcvt.s32.f32 %v5357_v61  ;;  %v5578_v45 = vmax.f32 %v1351_v11, %v5562_v6  ;;  %v1794_v43 = vadd.f32 %v1793_v42, %v5523_v18  ;;  %v2377_v15 = vsel %vm616_vm0, %v2360_v53, 0.0 }
 0x13f   : > { %v5580_v34 = vpop.eup %3500  ;;  %v1920_v10 = vpop.xlane.xlu1 %1919  ;;  %v1909_v54 = vmul.f32 %v3499_v55, %v5387_v38  ;;  %v1733_v28 = vmul.f32 %v3499_v55, %v5320_v21  ;;  %v2026_v44 = vadd.f32 %v2025_v41, %v2024_v31  ;;  %v1850_v61 = vadd.f32 %v1849_v14, %v5528_v0 }
 0x140   : > { %v2946_v46 = vadd.f32 -64.0, %v7017_v7  ;;  %v1744_v24 = vpop.xlane.xlu0 %1743  ;;  %v2322_v35 = vadd.f32 %v2321_v49, %v2320_v39  ;;  %v5590_v11 = vadd.f32 %v2145_v13, %v2144_v63  ;;  %v2201_v20 = vsel %vm616_vm0, %v2184_v40, 0.0 }
 0x141   : > { %v3503_v23 = vpop.eup %3502  ;;  %v2009_v18 = vmul.f32 %v1920_v10, %v5366_v51  ;;  %v5595_v33 = vadd.f32 %v5407_v8, %v1909_v54  ;;  %v5598_v38 = vadd.f32 %v5411_v52, %v1733_v28  ;;  %v2378_v21 = vadd.f32 %v2377_v15, %v2376_v19 }
 0x142   : > { %1117 = vadd.xlane.f32.xlu1 %v5465_v1  ;;  %941 = vadd.xlane.f32.xlu0 %v5468_v30  ;;  %v1670_v0 = vadd.f32 %v5580_v34, %v5567_v17  ;;  %v5604_v31 = vmul.f32 0.015625, %v2946_v46  ;;  %v1383_v63 = vmax.f32 %v5578_v45, %v5587_v9  ;;  %v1971_v39 = vsel %vm616_vm0, %v1920_v10, 0.0 }
 0x143   : > { %v1833_v8 = vmul.f32 %v1744_v24, %v5366_v51  ;;  %v2272_v41 = vpop.xlane.xlu1 %2271  ;;  %v2261_v42 = vmul.f32 %v3499_v55, %v5474_v4  ;;  %v2085_v1 = vmul.f32 %v3499_v55, %v5397_v5  ;;  %v5614_v30 = vadd.f32 %v2201_v20, %v2200_v58 }
 0x144   : > { %v2096_v52 = vpop.xlane.xlu0 %2095  ;;  %v5612_v53 = vpop.eup %3504  ;;  %v1795_v14 = vsel %vm616_vm0, %v1744_v24, 0.0  ;;  %v738_v49 = vmul.f32 %v3503_v23, %v5257_v37  ;;  %v560_v13 = vmul.f32 %v3503_v23, %v5245_v16  ;;  %v2027_v19 = vsel %vm616_vm0, %v2009_v18, 0.0 }
 0x145   : > { %v5619_v40 = vpop.eup %3506  ;;  %v2361_v7 = vmul.f32 %v2272_v41, %v5366_v51  ;;  %v5624_v4 = vadd.f32 %v5443_v22, %v2261_v42  ;;  %v5627_v5 = vadd.f32 %v5447_v26, %v2085_v1  ;;  %v5631_v55 = vadd.f32 %v1971_v39, %v1970_v3  ;;  %v7018_v39 = vld [vmem:[#allocation12_spill] sm:$0xff] }
 0x146   : > { %v5629_v58 = vpop.eup %3508  ;;  %1937 = vadd.xlane.f32.xlu1 %v1909_v54  ;;  %1761 = vadd.xlane.f32.xlu0 %v1733_v28  ;;  %v5634_v16 = vadd.f32 %v5451_v50, %v738_v49  ;;  %v5637_v37 = vadd.f32 %v5462_v36, %v560_v13  ;;  %v5640_v46 = vadd.s32 48, %v7003_v62  ;;  %v5644_v26 = vadd.f32 %v1795_v14, %v1794_v43  ;;  %v5657_v43 = vld [vmem:[%s3970_s27 + $0x270] sm:$0xff] }
 0x147   : > { %v5642_v22 = vpop.eup %3510  ;;  %v1851_v45 = vsel %vm616_vm0, %v1833_v8, 0.0  ;;  %v750_v3 = vpop.xlane.xlu1 %749  ;;  %v1090_v10 = vmul.f32 %v3503_v23, %v5433_v29  ;;  %v914_v24 = vmul.f32 %v3503_v23, %v5422_v47  ;;  %v5651_v54 = vadd.f32 %v2027_v19, %v2026_v44 }
 0x148   : > { %v572_v15 = vpop.xlane.xlu0 %571  ;;  %v5649_v50 = vpop.eup %3512  ;;  %v2323_v36 = vsel %vm616_vm0, %v2272_v41, 0.0  ;;  %v2147_v28 = vsel %vm616_vm0, %v2096_v52, 0.0  ;;  %v2185_v20 = vmul.f32 %v2096_v52, %v5366_v51  ;;  %v2379_v18 = vsel %vm616_vm0, %v2361_v7, 0.0 }
 0x149   : > { %v838_v8 = vmul.f32 %v750_v3, %v7018_v39  ;;  %v5662_v29 = vadd.f32 %v5487_v27, %v1090_v10  ;;  %v5665_v47 = vadd.f32 %v5491_v48, %v914_v24  ;;  %v661_v44 = vmul.f32 %v572_v15, %v7018_v39 }
 0x14a   : > { %2289 = vadd.xlane.f32.xlu1 %v2261_v42  ;;  %2113 = vadd.xlane.f32.xlu0 %v2085_v1  ;;  %v1686_v23 = vadd.f32 %v1670_v0, %v5554_v12  ;;  %v481_v51 = vadd.f32 %v5629_v58, %v5619_v40  ;;  %v5672_v52 = vadd.f32 %v1851_v45, %v1850_v61  ;;  %v2203_v0 = vsel %vm616_vm0, %v2185_v20, 0.0 }
 0x14b   : > { %v5674_v14 = vadd.f32 %v2323_v36, %v2322_v35  ;;  %v1102_v27 = vpop.xlane.xlu1 %1101  ;;  %v497_v48 = vadd.f32 %v5649_v50, %v5642_v22  ;;  %v5679_v7 = vmax.f32 %v1383_v63, %v5657_v43  ;;  %v5681_v42 = vadd.f32 %v2379_v18, %v2378_v21 }
 0x14c   : > { %v926_v19 = vpop.xlane.xlu0 %925  ;;  %v5684_v12 = vadd.f32 %v2147_v28, %v5590_v11  ;;  %v801_v61 = vsel %vm616_vm0, %v750_v3, 0.0  ;;  %v857_v35 = vsel %vm616_vm0, %v838_v8, 0.0  ;;  %v624_v1 = vsel %vm616_vm0, %v572_v15, 0.0 }
 0x14d   : > { %v1702_v45 = vadd.f32 %v5612_v53, %v1686_v23  ;;  %v513_v36 = vadd.f32 %v497_v48, %v481_v51  ;;  %v680_v41 = vsel %vm616_vm0, %v661_v44, 0.0  ;;  %v1190_v63 = vmul.f32 %v1102_v27, %v7018_v39 }
 0x14e   : > { %767 = vadd.xlane.f32.xlu1 %v738_v49  ;;  %589 = vadd.xlane.f32.xlu0 %v560_v13  ;;  %v1415_v11 = vsub.f32 %v5542_v60, %v5679_v7  ;;  %v1463_v21 = vsub.f32 %v5545_v25, %v5679_v7  ;;  %v1153_v3 = vsel %vm616_vm0, %v1102_v27, 0.0  ;;  %v1014_v28 = vmul.f32 %v926_v19, %v7018_v39  ;;  %v7019_v25 = vld [vmem:[#allocation15_spill] sm:$0xff] }
 0x14f   : > { %v1922_v15 = vpop.xlane.xlu1 %1921  ;;  %3514 = vrcp.f32 %v1702_v45  ;;  %v529_v18 = vadd.f32 1.105171, %v513_v36  ;;  %v2204_v8 = vadd.f32 %v2203_v0, %v5614_v30  ;;  %v802_v44 = vadd.f32 %v801_v61, %v5416_v59  ;;  %v7020_v30 = vld [vmem:[#allocation14_spill] sm:$0xff] }
 0x150   : > { %v1746_v20 = vpop.xlane.xlu0 %1745  ;;  %v625_v49 = vadd.f32 %v624_v1, %v5418_v57  ;;  %v977_v13 = vsel %vm616_vm0, %v926_v19, 0.0  ;;  %v5704_v60 = vadd.f32 %v857_v35, %v5477_v56  ;;  %v5707_v23 = vadd.f32 %v680_v41, %v7019_v25  ;;  %v7021_v1 = vld [vmem:[#allocation16_spill] sm:$0xff] }
 0x151   : > { %3516 = vrcp.f32 %v529_v18  ;;  %v1445_v51 = vmul.f32 1.442695, %v1415_v11  ;;  %v5710_v27 = vadd.f32 %v1153_v3, %v5495_v32  ;;  %v1209_v48 = vsel %vm616_vm0, %v1190_v63, 0.0  ;;  %v7022_v11 = vld [vmem:[#allocation17_spill] sm:$0xff] }
 0x152   : > { %1119 = vadd.xlane.f32.xlu1 %v1090_v10  ;;  %943 = vadd.xlane.f32.xlu0 %v914_v24  ;;  %v1493_v59 = vmul.f32 1.442695, %v1463_v21  ;;  %v1511_v57 = vsub.f32 %v5562_v6, %v5679_v7  ;;  %v5716_v19 = vadd.f32 %v977_v13, %v7020_v30  ;;  %v1033_v56 = vsel %vm616_vm0, %v1014_v28, 0.0 }
 0x153   : > { %v2010_v41 = vmul.f32 %v1922_v15, %v7018_v39  ;;  %v2274_v0 = vpop.xlane.xlu1 %2273  ;;  %v1559_v32 = vsub.f32 %v5587_v9, %v5679_v7  ;;  %v1973_v35 = vsel %vm616_vm0, %v1922_v15, 0.0  ;;  %v1797_v10 = vsel %vm616_vm0, %v1746_v20, 0.0 }
 0x154   : > { %v2098_v61 = vpop.xlane.xlu0 %2097  ;;  %v1834_v24 = vmul.f32 %v1746_v20, %v7018_v39  ;;  %v2362_v6 = vmul.f32 %v2274_v0, %v7018_v39  ;;  %v5727_v45 = vadd.f32 %v1209_v48, %v7021_v1  ;;  %3518 = vpow2.f32 %v1445_v51 }
 0x155   : > { %v2186_v36 = vmul.f32 %v2098_v61, %v7018_v39  ;;  %v1541_v63 = vmul.f32 1.442695, %v1511_v57  ;;  %v5731_v21 = vadd.f32 %v1033_v56, %v7022_v11  ;;  %3520 = vpow2.f32 %v1493_v59 }
 0x156   : > { %v1589_v9 = vmul.f32 1.442695, %v1559_v32  ;;  %v1607_v3 = vsub.f32 %v5657_v43, %v5679_v7  ;;  %v5736_v28 = vadd.f32 %v1973_v35, %v5631_v55  ;;  %v2029_v15 = vsel %vm616_vm0, %v2010_v41, 0.0 }
 0x157   : > { %v5740_v20 = vadd.f32 %v1797_v10, %v5644_v26  ;;  %v752_v18 = vpop.xlane.xlu1 %751  ;;  %3522 = vpow2.f32 %v1541_v63  ;;  %v1853_v13 = vsel %vm616_vm0, %v1834_v24, 0.0  ;;  %v2325_v25 = vsel %vm616_vm0, %v2274_v0, 0.0  ;;  %v287_v63 = vld [vmem:[%s3962_s19 + $0x78] sm:$0xff] }
 0x158   : > { %v574_v39 = vpop.xlane.xlu0 %573  ;;  %v2381_v51 = vsel %vm616_vm0, %v2362_v6, 0.0  ;;  %v2149_v48 = vsel %vm616_vm0, %v2098_v61, 0.0  ;;  %v2205_v43 = vsel %vm616_vm0, %v2186_v36, 0.0  ;;  %v803_v55 = vsel %vm616_vm0, %v752_v18, 0.0 }
 0x159   : > { %3524 = vpow2.f32 %v1589_v9  ;;  %v1637_v7 = vmul.f32 1.442695, %v1607_v3  ;;  %v5749_v26 = vadd.f32 %v2029_v15, %v5651_v54  ;;  %v839_v59 = vmul.f32 %v752_v18, %v5604_v31  ;;  %v2973_v15 = vld [vmem:[%s3962_s19 + $0xf8] sm:$0xff] }
 0x15a   : > { %v626_v57 = vsel %vm616_vm0, %v574_v39, 0.0  ;;  %v662_v30 = vmul.f32 %v574_v39, %v5604_v31  ;;  %v5755_v56 = vadd.f32 %v1853_v13, %v5672_v52  ;;  %v5758_v41 = vadd.f32 %v2325_v25, %v5674_v14 }
 0x15b   : > { %v1104_v0 = vpop.xlane.xlu1 %1103  ;;  %3526 = vpow2.f32 %v1637_v7  ;;  %v7023_v32 = vcvt.s32.f32 %v5640_v46  ;;  %v5763_v10 = vadd.f32 %v2381_v51, %v5681_v42  ;;  %v5766_v24 = vadd.f32 %v2149_v48, %v5684_v12 }
 0x15c   : > { %v928_v61 = vpop.xlane.xlu0 %927  ;;  %v3515_v35 = vpop.eup %3514  ;;  %v5768_v6 = vadd.f32 %v2205_v43, %v2204_v8  ;;  %v5770_v52 = vadd.f32 %v803_v55, %v802_v44  ;;  %v5774_v36 = vadd.f32 %v626_v57, %v625_v49  ;;  %v859_v42 = vsel %vm616_vm0, %v839_v59, 0.0 }
 0x15d   : > { %v2947_v54 = vadd.f32 -64.0, %v7023_v32  ;;  %v1910_v14 = vmul.f32 %v3515_v35, %v5567_v17  ;;  %v1734_v1 = vmul.f32 %v3515_v35, %v5521_v2  ;;  %v2262_v46 = vmul.f32 %v3515_v35, %v5612_v53 }
 0x15e   : > { %v3517_v11 = vpop.eup %3516  ;;  %v682_v12 = vsel %vm616_vm0, %v662_v30, 0.0  ;;  %v2086_v8 = vmul.f32 %v3515_v35, %v5580_v34  ;;  %v1191_v44 = vmul.f32 %v1104_v0, %v5604_v31  ;;  %v1015_v18 = vmul.f32 %v928_v61, %v5604_v31 }
 0x15f   : > { %v5783_v9 = vadd.f32 %v5595_v33, %v1910_v14  ;;  %1939 = vadd.xlane.f32.xlu1 %v1910_v14  ;;  %v5786_v2 = vadd.f32 %v5598_v38, %v1734_v1  ;;  %1763 = vadd.xlane.f32.xlu0 %v1734_v1  ;;  %v5789_v17 = vadd.f32 %v5624_v4, %v2262_v46  ;;  %v1924_v53 = vpop.xlane.xlu1 %1923  ;;  %v5791_v3 = vmul.f32 0.015625, %v2947_v54 }
 0x160   : > { %v1748_v49 = vpop.xlane.xlu0 %1747  ;;  %v5795_v34 = vadd.f32 %v5627_v5, %v2086_v8  ;;  %v739_v33 = vmul.f32 %v3517_v11, %v5629_v58  ;;  %v369_v39 = vmul.f32 1.442695, %v287_v63  ;;  %v5800_v38 = vadd.f32 %v859_v42, %v5704_v60 }
 0x161   : > { %v5803_v13 = vadd.f32 %v682_v12, %v5707_v23  ;;  %v1155_v4 = vsel %vm616_vm0, %v1104_v0, 0.0  ;;  %v561_v25 = vmul.f32 %v3517_v11, %v5619_v40  ;;  %v3519_v51 = vpop.eup %3518  ;;  %v979_v48 = vsel %vm616_vm0, %v928_v61, 0.0 }
 0x162   : > { %v5809_v5 = vadd.f32 %v5634_v16, %v739_v33  ;;  %v2011_v43 = vmul.f32 %v1924_v53, %v5604_v31  ;;  %v401_v58 = vmul.f32 1.442695, %v2973_v15  ;;  %v5812_v55 = vpop.eup %3520  ;;  %v1211_v60 = vsel %vm616_vm0, %v1191_v44, 0.0  ;;  %v3005_v44 = vld [vmem:[%s3962_s19 + $0x1f8] sm:$0xff] }
 0x163   : > { %2291 = vadd.xlane.f32.xlu1 %v2262_v46  ;;  %2115 = vadd.xlane.f32.xlu0 %v2086_v8  ;;  %v5816_v23 = vadd.f32 %v5637_v37, %v561_v25  ;;  %v1091_v40 = vmul.f32 %v3517_v11, %v5649_v50  ;;  %v915_v7 = vmul.f32 %v3517_v11, %v5642_v22  ;;  %v2276_v59 = vpop.xlane.xlu1 %2275  ;;  %v1035_v0 = vsel %vm616_vm0, %v1015_v18, 0.0  ;;  %v2989_v11 = vld [vmem:[%s3962_s19 + $0x178] sm:$0xff] }
 0x164   : > { %v2100_v57 = vpop.xlane.xlu0 %2099  ;;  %v5820_v16 = vpop.eup %3522  ;;  %v5823_v30 = vadd.f32 %v1155_v4, %v5710_v27  ;;  %v1975_v61 = vsel %vm616_vm0, %v1924_v53, 0.0  ;;  %v1835_v32 = vmul.f32 %v1748_v49, %v5604_v31  ;;  %v1799_v37 = vsel %vm616_vm0, %v1748_v49, 0.0 }
 0x165   : > { %v5830_v54 = vadd.f32 %v5662_v29, %v1091_v40  ;;  %v5833_v22 = vadd.f32 %v5665_v47, %v915_v7  ;;  %v2363_v50 = vmul.f32 %v2276_v59, %v5604_v31  ;;  %v5839_v27 = vadd.f32 %v1211_v60, %v5727_v45 }
 0x166   : > { %v5836_v35 = vpop.eup %3524  ;;  %v5842_v14 = vadd.f32 %v979_v48, %v5716_v19  ;;  %v1655_v1 = vadd.f32 %v5812_v55, %v3519_v51  ;;  %3528 = vpow2.f32 %v369_v39  ;;  %v5846_v29 = vadd.f32 %v1035_v0, %v5731_v21 }
 0x167   : > { %769 = vadd.xlane.f32.xlu1 %v739_v33  ;;  %591 = vadd.xlane.f32.xlu0 %v561_v25  ;;  %v5849_v47 = vadd.f32 %v1975_v61, %v5736_v28  ;;  %v2031_v46 = vsel %vm616_vm0, %v2011_v43, 0.0  ;;  %v1671_v45 = vadd.f32 %v5836_v35, %v5820_v16  ;;  %v754_v63 = vpop.xlane.xlu1 %753  ;;  %v5858_v12 = vadd.f32 %v1799_v37, %v5740_v20 }
 0x168   : > { %v576_v19 = vpop.xlane.xlu0 %575  ;;  %v5855_v42 = vpop.eup %3526  ;;  %v1855_v21 = vsel %vm616_vm0, %v1835_v32, 0.0  ;;  %v2327_v8 = vsel %vm616_vm0, %v2276_v59, 0.0  ;;  %3530 = vpow2.f32 %v401_v58  ;;  %v2383_v28 = vsel %vm616_vm0, %v2363_v50, 0.0  ;;  %v5883_v59 = vld [vmem:[%s3970_s27 + $0x78] sm:$0xff] }
 0x169   : > { %v2151_v53 = vsel %vm616_vm0, %v2100_v57, 0.0  ;;  %v2187_v49 = vmul.f32 %v2100_v57, %v5604_v31  ;;  %v1687_v15 = vadd.f32 %v1671_v45, %v1655_v1  ;;  %v5867_v18 = vadd.f32 %v2031_v46, %v5749_v26  ;;  %v5896_v50 = vld [vmem:[%s3970_s27 + $0x178] sm:$0xff] }
 0x16a   : > { %v840_v20 = vmul.f32 %v754_v63, %v5791_v3  ;;  %v663_v33 = vmul.f32 %v576_v19, %v5791_v3  ;;  %v433_v39 = vmul.f32 1.442695, %v2989_v11  ;;  %v5872_v4 = vadd.f32 %v1855_v21, %v5755_v56 }
 0x16b   : > { %1121 = vadd.xlane.f32.xlu1 %v1091_v40  ;;  %945 = vadd.xlane.f32.xlu0 %v915_v7  ;;  %v1703_v25 = vadd.f32 %v5855_v42, %v1687_v15  ;;  %v1106_v51 = vpop.xlane.xlu1 %1105  ;;  %v465_v48 = vmul.f32 1.442695, %v3005_v44  ;;  %v210_v26 = vadd.s32 56, %v7003_v62  ;;  %v2328_v43 = vadd.f32 %v2327_v8, %v5758_v41  ;;  %v5886_v40 = vld [vmem:[%s3970_s27 + $0xf8] sm:$0xff] }
 0x16c   : > { %v930_v31 = vpop.xlane.xlu0 %929  ;;  %v5878_v58 = vadd.f32 %v2383_v28, %v5763_v10  ;;  %v2152_v60 = vadd.f32 %v2151_v53, %v5766_v24  ;;  %v1192_v56 = vmul.f32 %v1106_v51, %v5791_v3  ;;  %v2207_v7 = vsel %vm616_vm0, %v2187_v49, 0.0 }
 0x16d   : > { %3532 = vrcp.f32 %v1703_v25  ;;  %v805_v57 = vsel %vm616_vm0, %v754_v63, 0.0  ;;  %v628_v0 = vsel %vm616_vm0, %v576_v19, 0.0  ;;  %v861_v41 = vsel %vm616_vm0, %v840_v20, 0.0 }
 0x16e   : > { %v684_v10 = vsel %vm616_vm0, %v663_v33, 0.0  ;;  %v1157_v24 = vsel %vm616_vm0, %v1106_v51, 0.0  ;;  %3534 = vpow2.f32 %v433_v39  ;;  %v1016_v61 = vmul.f32 %v930_v31, %v5791_v3 }
 0x16f   : > { %3536 = vpow2.f32 %v465_v48  ;;  %v1926_v32 = vpop.xlane.xlu1 %1925  ;;  %v1352_v1 = vmax.f32 %v5883_v59, %v5886_v40  ;;  %v226_v46 = vcvt.s32.f32 %v210_v26  ;;  %v5901_v45 = vadd.f32 %v2207_v7, %v5768_v6 }
 0x170   : > { %v1750_v37 = vpop.xlane.xlu0 %1749  ;;  %v1213_v63 = vsel %vm616_vm0, %v1192_v56, 0.0  ;;  %v981_v19 = vsel %vm616_vm0, %v930_v31, 0.0  ;;  %v2012_v11 = vmul.f32 %v1926_v32, %v5791_v3  ;;  %v5907_v21 = vadd.f32 %v805_v57, %v5770_v52  ;;  %v3069_v57 = vld [vmem:[%s3970_s27 + $0x278] sm:$0xff] }
 0x171   : > { %v5910_v8 = vadd.f32 %v861_v41, %v5800_v38  ;;  %v5913_v44 = vadd.f32 %v628_v0, %v5774_v36  ;;  %v1836_v28 = vmul.f32 %v1750_v37, %v5791_v3  ;;  %v5917_v6 = vadd.f32 %v684_v10, %v5803_v13 }
 0x172   : > { %v5920_v53 = vadd.f32 %v1157_v24, %v5823_v30  ;;  %v1368_v49 = vmax.f32 %v1352_v1, %v5896_v50  ;;  %v2948_v15 = vadd.f32 -64.0, %v226_v46  ;;  %v5926_v52 = vadd.f32 %v1213_v63, %v5839_v27  ;;  %v3053_v30 = vld [vmem:[%s3970_s27 + $0x1f8] sm:$0xff] }
 0x173   : > { %v5923_v20 = vpop.eup %3528  ;;  %v5929_v36 = vadd.f32 %v981_v19, %v5842_v14  ;;  %v1037_v38 = vsel %vm616_vm0, %v1016_v61, 0.0  ;;  %v1977_v13 = vsel %vm616_vm0, %v1926_v32, 0.0  ;;  %v2278_v33 = vpop.xlane.xlu1 %2277  ;;  %v2033_v25 = vsel %vm616_vm0, %v2012_v11, 0.0 }
 0x174   : > { %v2102_v39 = vpop.xlane.xlu0 %2101  ;;  %v1801_v51 = vsel %vm616_vm0, %v1750_v37, 0.0  ;;  %v1857_v31 = vsel %vm616_vm0, %v1836_v28, 0.0  ;;  %v5938_v27 = vadd.s32 64, %v7003_v62  ;;  %v2329_v14 = vsel %vm616_vm0, %v2278_v33, 0.0 }
 0x175   : > { %v5940_v48 = vpop.eup %3530  ;;  %v2364_v26 = vmul.f32 %v2278_v33, %v5791_v3  ;;  %v2153_v56 = vsel %vm616_vm0, %v2102_v39, 0.0  ;;  %v2188_v7 = vmul.f32 %v2102_v39, %v5791_v3  ;;  %v5948_v0 = vadd.f32 %v1037_v38, %v5846_v29 }
 0x176   : > { %v5951_v41 = vadd.f32 %v1977_v13, %v5849_v47  ;;  %v1384_v10 = vmax.f32 %v1368_v49, %v3053_v30  ;;  %v5953_v24 = vmul.f32 0.015625, %v2948_v15  ;;  %v5956_v61 = vadd.f32 %v2033_v25, %v5867_v18 }
 0x177   : > { %v5959_v32 = vadd.f32 %v1801_v51, %v5858_v12  ;;  %v5962_v37 = vadd.f32 %v1857_v31, %v5872_v4  ;;  %v756_v3 = vpop.xlane.xlu1 %755  ;;  %v5965_v29 = vadd.s32 72, %v7003_v62  ;;  %v482_v47 = vadd.f32 %v5940_v48, %v5923_v20 }
 0x178   : > { %v578_v1 = vpop.xlane.xlu0 %577  ;;  %v5969_v46 = vadd.f32 %v2329_v14, %v2328_v43  ;;  %v5971_v63 = vadd.f32 %v2153_v56, %v2152_v60  ;;  %v1400_v18 = vmax.f32 %v1384_v10, %v3069_v57  ;;  %v2385_v19 = vsel %vm616_vm0, %v2364_v26, 0.0 }
 0x179   : > { %v2209_v12 = vsel %vm616_vm0, %v2188_v7, 0.0  ;;  %v841_v4 = vmul.f32 %v756_v3, %v5953_v24  ;;  %v227_v11 = vcvt.s32.f32 %v5938_v27  ;;  %v664_v56 = vmul.f32 %v578_v1, %v5953_v24 }
 0x17a   : > { %v3533_v28 = vpop.eup %3532  ;;  %v1416_v49 = vsub.f32 %v5883_v59, %v1400_v18  ;;  %v1464_v15 = vsub.f32 %v5886_v40, %v1400_v18  ;;  %v1512_v38 = vsub.f32 %v5896_v50, %v1400_v18  ;;  %v1560_v43 = vsub.f32 %v3053_v30, %v1400_v18 }
 0x17b   : > { %v5980_v13 = vpop.eup %3534  ;;  %v1911_v60 = vmul.f32 %v3533_v28, %v5820_v16  ;;  %v1735_v33 = vmul.f32 %v3533_v28, %v5812_v55  ;;  %v2263_v39 = vmul.f32 %v3533_v28, %v5855_v42  ;;  %v2087_v25 = vmul.f32 %v3533_v28, %v5836_v35  ;;  %v1108_v51 = vpop.xlane.xlu1 %1107 }
 0x17c   : > { %v932_v31 = vpop.xlane.xlu0 %931  ;;  %v5986_v27 = vpop.eup %3536  ;;  %v1447_v59 = vmul.f32 1.442695, %v1416_v49  ;;  %v1495_v14 = vmul.f32 1.442695, %v1464_v15  ;;  %v1543_v40 = vmul.f32 1.442695, %v1512_v38  ;;  %v1608_v26 = vsub.f32 %v3069_v57, %v1400_v18 }
 0x17d   : > { %v5989_v50 = vadd.f32 %v5783_v9, %v1911_v60  ;;  %1941 = vadd.xlane.f32.xlu1 %v1911_v60  ;;  %v5992_v16 = vadd.f32 %v5786_v2, %v1735_v33  ;;  %1765 = vadd.xlane.f32.xlu0 %v1735_v33  ;;  %v5995_v55 = vadd.f32 %v5789_v17, %v2263_v39  ;;  %v1591_v35 = vmul.f32 1.442695, %v1560_v43 }
 0x17e   : > { %v5998_v42 = vadd.f32 %v5795_v34, %v2087_v25  ;;  %v498_v30 = vadd.f32 %v5986_v27, %v5980_v13  ;;  %3538 = vpow2.f32 %v1447_v59  ;;  %v6004_v9 = vadd.f32 %v2385_v19, %v5878_v58 }
 0x17f   : > { %3540 = vpow2.f32 %v1495_v14  ;;  %v1639_v2 = vmul.f32 1.442695, %v1608_v26  ;;  %v1928_v7 = vpop.xlane.xlu1 %1927  ;;  %v228_v17 = vcvt.s32.f32 %v5965_v29  ;;  %v6008_v18 = vadd.f32 %v2209_v12, %v5901_v45 }
 0x180   : > { %v1752_v57 = vpop.xlane.xlu0 %1751  ;;  %v514_v10 = vadd.f32 %v498_v30, %v482_v47  ;;  %3542 = vpow2.f32 %v1543_v40  ;;  %v6011_v34 = vadd.s32 80, %v7003_v62  ;;  %v807_v58 = vsel %vm616_vm0, %v756_v3, 0.0 }
 0x181   : > { %2293 = vadd.xlane.f32.xlu1 %v2263_v39  ;;  %2117 = vadd.xlane.f32.xlu0 %v2087_v25  ;;  %3544 = vpow2.f32 %v1591_v35  ;;  %v630_v19 = vsel %vm616_vm0, %v578_v1, 0.0  ;;  %v1193_v28 = vmul.f32 %v1108_v51, %v5953_v24  ;;  %v863_v15 = vsel %vm616_vm0, %v841_v4, 0.0 }
 0x182   : > { %v530_v49 = vadd.f32 1.105171, %v514_v10  ;;  %v686_v47 = vsel %vm616_vm0, %v664_v56, 0.0  ;;  %v2949_v45 = vadd.f32 -64.0, %v227_v11  ;;  %3546 = vpow2.f32 %v1639_v2 }
 0x183   : > { %v1159_v12 = vsel %vm616_vm0, %v1108_v51, 0.0  ;;  %v1017_v38 = vmul.f32 %v932_v31, %v5953_v24  ;;  %v2013_v43 = vmul.f32 %v1928_v7, %v5953_v24  ;;  %v2280_v60 = vpop.xlane.xlu1 %2279  ;;  %v1215_v3 = vsel %vm616_vm0, %v1193_v28, 0.0 }
 0x184   : > { %v2104_v33 = vpop.xlane.xlu0 %2103  ;;  %3548 = vrcp.f32 %v530_v49  ;;  %v983_v1 = vsel %vm616_vm0, %v932_v31, 0.0  ;;  %v1979_v39 = vsel %vm616_vm0, %v1928_v7, 0.0  ;;  %v808_v4 = vadd.f32 %v807_v58, %v5907_v21 }
 0x185   : > { %v631_v11 = vadd.f32 %v630_v19, %v5913_v44  ;;  %v1039_v25 = vsel %vm616_vm0, %v1017_v38, 0.0  ;;  %v1803_v51 = vsel %vm616_vm0, %v1752_v57, 0.0  ;;  %v864_v59 = vadd.f32 %v863_v15, %v5910_v8 }
 0x186   : > { %v687_v14 = vadd.f32 %v686_v47, %v5917_v6  ;;  %v2035_v40 = vsel %vm616_vm0, %v2013_v43, 0.0  ;;  %v1837_v26 = vmul.f32 %v1752_v57, %v5953_v24  ;;  %v1160_v31 = vadd.f32 %v1159_v12, %v5920_v53 }
 0x187   : > { %v1216_v35 = vadd.f32 %v1215_v3, %v5926_v52  ;;  %v984_v21 = vadd.f32 %v983_v1, %v5929_v36  ;;  %v1980_v44 = vadd.f32 %v1979_v39, %v5951_v41  ;;  %v758_v30 = vpop.xlane.xlu1 %757  ;;  %v1040_v2 = vadd.f32 %v1039_v25, %v5948_v0 }
 0x188   : > { %v580_v56 = vpop.xlane.xlu0 %579  ;;  %v1804_v8 = vadd.f32 %v1803_v51, %v5959_v32  ;;  %v2331_v6 = vsel %vm616_vm0, %v2280_v60, 0.0  ;;  %v6039_v7 = vmul.f32 0.015625, %v2949_v45  ;;  %v6042_v57 = vadd.f32 %v2035_v40, %v5956_v61 }
 0x189   : > { %v2365_v53 = vmul.f32 %v2280_v60, %v5953_v24  ;;  %v809_v52 = vsel %vm616_vm0, %v758_v30, 0.0  ;;  %v632_v36 = vsel %vm616_vm0, %v580_v56, 0.0  ;;  %v1859_v41 = vsel %vm616_vm0, %v1837_v26, 0.0 }
 0x18a   : > { %v6048_v10 = vadd.f32 %v809_v52, %v808_v4  ;;  %v842_v0 = vmul.f32 %v758_v30, %v6039_v7  ;;  %v6051_v32 = vadd.f32 %v632_v36, %v631_v11  ;;  %v2332_v19 = vadd.f32 %v2331_v6, %v5969_v46 }
 0x18b   : > { %v3539_v58 = vpop.eup %3538  ;;  %v2155_v61 = vsel %vm616_vm0, %v2104_v33, 0.0  ;;  %v2189_v28 = vmul.f32 %v2104_v33, %v5953_v24  ;;  %v665_v49 = vmul.f32 %v580_v56, %v6039_v7  ;;  %v1110_v15 = vpop.xlane.xlu1 %1109  ;;  %v2387_v26 = vsel %vm616_vm0, %v2365_v53, 0.0 }
 0x18c   : > { %v934_v47 = vpop.xlane.xlu0 %933  ;;  %v6057_v45 = vpop.eup %3540  ;;  %v865_v12 = vsel %vm616_vm0, %v842_v0, 0.0  ;;  %v1161_v38 = vsel %vm616_vm0, %v1110_v15, 0.0  ;;  %v1194_v43 = vmul.f32 %v1110_v15, %v6039_v7 }
 0x18d   : > { %v985_v60 = vsel %vm616_vm0, %v934_v47, 0.0  ;;  %v6063_v3 = vpop.eup %3542  ;;  %v1656_v46 = vadd.f32 %v6057_v45, %v3539_v58  ;;  %v6066_v1 = vadd.f32 %v865_v12, %v864_v59  ;;  %v688_v24 = vsel %vm616_vm0, %v665_v49, 0.0 }
 0x18e   : > { %v6069_v33 = vadd.f32 %v1161_v38, %v1160_v31  ;;  %v6071_v39 = vpop.eup %3544  ;;  %v6073_v4 = vadd.f32 %v688_v24, %v687_v14  ;;  %v1217_v11 = vsel %vm616_vm0, %v1194_v43, 0.0  ;;  %v6076_v25 = vadd.f32 %v985_v60, %v984_v21 }
 0x18f   : > { %v1018_v51 = vmul.f32 %v934_v47, %v6039_v7  ;;  %v1672_v40 = vadd.f32 %v6071_v39, %v6063_v3  ;;  %v1860_v59 = vadd.f32 %v1859_v41, %v5962_v37  ;;  %v6083_v30 = vadd.f32 %v1217_v11, %v1216_v35  ;;  %v1930_v31 = vpop.xlane.xlu1 %1929  ;;  %v6085_v6 = vpop.eup %3546 }
 0x190   : > { %v1754_v56 = vpop.xlane.xlu0 %1753  ;;  %v1981_v21 = vsel %vm616_vm0, %v1930_v31, 0.0  ;;  %v2014_v52 = vmul.f32 %v1930_v31, %v6039_v7  ;;  %v2950_v47 = vadd.f32 -64.0, %v228_v17 }
 0x191   : > { %v1041_v14 = vsel %vm616_vm0, %v1018_v51, 0.0  ;;  %v1805_v36 = vsel %vm616_vm0, %v1754_v56, 0.0  ;;  %v3549_v0 = vpop.eup %3548  ;;  %v1688_v58 = vadd.f32 %v1672_v40, %v1656_v46  ;;  %v6093_v37 = vadd.f32 %v1981_v21, %v1980_v44 }
 0x192   : > { %v6091_v49 = vadd.f32 %v1041_v14, %v1040_v2  ;;  %v6095_v35 = vadd.f32 %v1805_v36, %v1804_v8  ;;  %v740_v53 = vmul.f32 %v3549_v0, %v5940_v48  ;;  %v562_v41 = vmul.f32 %v3549_v0, %v5923_v20 }
 0x193   : > { %v1092_v15 = vmul.f32 %v3549_v0, %v5986_v27  ;;  %v916_v12 = vmul.f32 %v3549_v0, %v5980_v13  ;;  %v1704_v38 = vadd.f32 %v6085_v6, %v1688_v58  ;;  %v2037_v2 = vsel %vm616_vm0, %v2014_v52, 0.0  ;;  %v2282_v43 = vpop.xlane.xlu1 %2281 }
 0x194   : > { %v1838_v44 = vmul.f32 %v1754_v56, %v6039_v7  ;;  %v2106_v8 = vpop.xlane.xlu0 %2105  ;;  %771 = vadd.xlane.f32.xlu1 %v740_v53  ;;  %v6107_v48 = vadd.f32 %v5809_v5, %v740_v53  ;;  %593 = vadd.xlane.f32.xlu0 %v562_v41  ;;  %v6110_v20 = vadd.f32 %v5816_v23, %v562_v41  ;;  %v2333_v13 = vsel %vm616_vm0, %v2282_v43, 0.0 }
 0x195   : > { %v6113_v29 = vadd.f32 %v5830_v54, %v1092_v15  ;;  %v6117_v27 = vadd.f32 %v5833_v22, %v916_v12  ;;  %3550 = vrcp.f32 %v1704_v38  ;;  %v2038_v17 = vadd.f32 %v2037_v2, %v6042_v57 }
 0x196   : > { %v1861_v60 = vsel %vm616_vm0, %v1838_v44, 0.0  ;;  %v2156_v5 = vadd.f32 %v2155_v61, %v5971_v63  ;;  %v2211_v46 = vsel %vm616_vm0, %v2189_v28, 0.0  ;;  %v6125_v23 = vmul.f32 0.015625, %v2950_v47 }
 0x197   : > { %v6123_v24 = vadd.f32 %v1861_v60, %v1860_v59  ;;  %v6127_v54 = vadd.f32 %v2333_v13, %v2332_v19  ;;  %v2366_v11 = vmul.f32 %v2282_v43, %v6039_v7  ;;  %v2157_v22 = vsel %vm616_vm0, %v2106_v8, 0.0  ;;  %v760_v51 = vpop.xlane.xlu1 %759 }
 0x198   : > { %v582_v40 = vpop.xlane.xlu0 %581  ;;  %v229_v57 = vcvt.s32.f32 %v6011_v34  ;;  %1123 = vadd.xlane.f32.xlu1 %v1092_v15  ;;  %947 = vadd.xlane.f32.xlu0 %v916_v12  ;;  %v2388_v63 = vadd.f32 %v2387_v26, %v6004_v9  ;;  %v811_v61 = vsel %vm616_vm0, %v760_v51, 0.0  ;;  %v2212_v28 = vadd.f32 %v2211_v46, %v6008_v18 }
 0x199   : > { %v2389_v59 = vsel %vm616_vm0, %v2366_v11, 0.0  ;;  %v2158_v19 = vadd.f32 %v2157_v22, %v2156_v5  ;;  %v2190_v31 = vmul.f32 %v2106_v8, %v6039_v7  ;;  %v6138_v14 = vadd.f32 %v811_v61, %v6048_v10 }
 0x19a   : > { %v2390_v56 = vadd.f32 %v2389_v59, %v2388_v63  ;;  %v843_v21 = vmul.f32 %v760_v51, %v6125_v23  ;;  %v634_v34 = vsel %vm616_vm0, %v582_v40, 0.0  ;;  %v666_v18 = vmul.f32 %v582_v40, %v6125_v23 }
 0x19b   : > { %v2213_v52 = vsel %vm616_vm0, %v2190_v31, 0.0  ;;  %v6144_v9 = vadd.f32 %v634_v34, %v6051_v32  ;;  %v1112_v26 = vpop.xlane.xlu1 %1111  ;;  %v2951_v0 = vadd.f32 -64.0, %v229_v57 }
 0x19c   : > { %v936_v36 = vpop.xlane.xlu0 %935  ;;  %v2214_v58 = vadd.f32 %v2213_v52, %v2212_v28  ;;  %v867_v7 = vsel %vm616_vm0, %v843_v21, 0.0  ;;  %v1163_v10 = vsel %vm616_vm0, %v1112_v26, 0.0  ;;  %v1195_v53 = vmul.f32 %v1112_v26, %v6125_v23 }
 0x19d   : > { %v6151_v41 = vadd.f32 %v867_v7, %v6066_v1  ;;  %v690_v15 = vsel %vm616_vm0, %v666_v18, 0.0  ;;  %v6155_v32 = vadd.f32 %v1163_v10, %v6069_v33  ;;  %v987_v47 = vsel %vm616_vm0, %v936_v36, 0.0 }
 0x19e   : > { %v6159_v12 = vadd.f32 %v690_v15, %v6073_v4  ;;  %v1219_v38 = vsel %vm616_vm0, %v1195_v53, 0.0  ;;  %v988_v2 = vadd.f32 %v987_v47, %v6076_v25  ;;  %v1019_v44 = vmul.f32 %v936_v36, %v6125_v23 }
 0x19f   : > { %v6165_v43 = vadd.f32 %v1219_v38, %v6083_v30  ;;  %v1932_v1 = vpop.xlane.xlu1 %1931  ;;  %v6182_v51 = vmul.f32 0.015625, %v2951_v0 }
 0x1a0   : > { %v1756_v8 = vpop.xlane.xlu0 %1755  ;;  %v1043_v13 = vsel %vm616_vm0, %v1019_v44, 0.0  ;;  %v1983_v33 = vsel %vm616_vm0, %v1932_v1, 0.0  ;;  %v2015_v60 = vmul.f32 %v1932_v1, %v6125_v23 }
 0x1a1   : > { %v1807_v4 = vsel %vm616_vm0, %v1756_v8, 0.0  ;;  %v6172_v5 = vadd.f32 %v1043_v13, %v6091_v49  ;;  %v6175_v25 = vadd.f32 %v1983_v33, %v6093_v37  ;;  %v1839_v30 = vmul.f32 %v1756_v8, %v6125_v23 }
 0x1a2   : > { %v6178_v46 = vadd.f32 %v1807_v4, %v6095_v35  ;;  %v3551_v11 = vpop.eup %3550  ;;  %v2039_v22 = vsel %vm616_vm0, %v2015_v60, 0.0  ;;  %v214_v33 = vadd.s32 88, %v7003_v62 }
 0x1a3   : > { %v1912_v40 = vmul.f32 %v3551_v11, %v6063_v3  ;;  %v1736_v57 = vmul.f32 %v3551_v11, %v6057_v45  ;;  %v2264_v49 = vmul.f32 %v3551_v11, %v6085_v6  ;;  %v2088_v63 = vmul.f32 %v3551_v11, %v6071_v39  ;;  %v2284_v37 = vpop.xlane.xlu1 %2283 }
 0x1a4   : > { %v2108_v61 = vpop.xlane.xlu0 %2107  ;;  %v2040_v28 = vadd.f32 %v2039_v22, %v2038_v17  ;;  %v1863_v35 = vsel %vm616_vm0, %v1839_v30, 0.0  ;;  %v2335_v59 = vsel %vm616_vm0, %v2284_v37, 0.0  ;;  %v2367_v31 = vmul.f32 %v2284_v37, %v6125_v23 }
 0x1a5   : > { %v6192_v21 = vadd.f32 %v5989_v50, %v1912_v40  ;;  %1943 = vadd.xlane.f32.xlu1 %v1912_v40  ;;  %v6195_v3 = vadd.f32 %v5992_v16, %v1736_v57  ;;  %1767 = vadd.xlane.f32.xlu0 %v1736_v57  ;;  %v6198_v45 = vadd.f32 %v5995_v55, %v2264_v49  ;;  %v2159_v39 = vsel %vm616_vm0, %v2108_v61, 0.0 }
 0x1a6   : > { %v6202_v6 = vadd.f32 %v5998_v42, %v2088_v63  ;;  %v1864_v17 = vadd.f32 %v1863_v35, %v6123_v24  ;;  %v2336_v34 = vadd.f32 %v2335_v59, %v6127_v54  ;;  %v2391_v50 = vsel %vm616_vm0, %v2367_v31, 0.0 }
 0x1a7   : > { %v2392_v52 = vadd.f32 %v2391_v50, %v2390_v56  ;;  %v762_v18 = vpop.xlane.xlu1 %761  ;;  %v2160_v16 = vadd.f32 %v2159_v39, %v2158_v19  ;;  %v2191_v36 = vmul.f32 %v2108_v61, %v6125_v23 }
 0x1a8   : > { %v584_v26 = vpop.xlane.xlu0 %583  ;;  %v813_v55 = vsel %vm616_vm0, %v762_v18, 0.0  ;;  %v844_v54 = vmul.f32 %v762_v18, %v6182_v51 }
 0x1a9   : > { %2295 = vadd.xlane.f32.xlu1 %v2264_v49  ;;  %2119 = vadd.xlane.f32.xlu0 %v2088_v63  ;;  %v636_v0 = vsel %vm616_vm0, %v584_v26, 0.0  ;;  %v2215_v42 = vsel %vm616_vm0, %v2191_v36, 0.0  ;;  %v6212_v24 = vadd.f32 %v813_v55, %v6138_v14  ;;  %v667_v19 = vmul.f32 %v584_v26, %v6182_v51 }
 0x1aa   : > { %v2216_v7 = vadd.f32 %v2215_v42, %v2214_v58  ;;  %v6216_v56 = vadd.f32 %v636_v0, %v6144_v9  ;;  %v869_v53 = vsel %vm616_vm0, %v844_v54, 0.0  ;;  %v230_v49 = vcvt.s32.f32 %v214_v33 }
 0x1ab   : > { %v1114_v23 = vpop.xlane.xlu1 %1113  ;;  %v6224_v14 = vadd.f32 %v869_v53, %v6151_v41  ;;  %v692_v58 = vsel %vm616_vm0, %v667_v19, 0.0 }
 0x1ac   : > { %v938_v10 = vpop.xlane.xlu0 %937  ;;  %v1165_v15 = vsel %vm616_vm0, %v1114_v23, 0.0  ;;  %v1196_v47 = vmul.f32 %v1114_v23, %v6182_v51  ;;  %v6229_v1 = vadd.f32 %v692_v58, %v6159_v12  ;;  %v2952_v26 = vadd.f32 -64.0, %v230_v49 }
 0x1ad   : > { %v989_v38 = vsel %vm616_vm0, %v938_v10, 0.0  ;;  %v1166_v9 = vadd.f32 %v1165_v15, %v6155_v32  ;;  %v1020_v13 = vmul.f32 %v938_v10, %v6182_v51 }
 0x1ae   : > { %v990_v44 = vadd.f32 %v989_v38, %v988_v2  ;;  %v1221_v8 = vsel %vm616_vm0, %v1196_v47, 0.0  ;;  %v6255_v42 = vmul.f32 0.015625, %v2952_v26 }
 0x1af   : > { %v1222_v60 = vadd.f32 %v1221_v8, %v6165_v43  ;;  %v1934_v4 = vpop.xlane.xlu1 %1933  ;;  %v1045_v41 = vsel %vm616_vm0, %v1020_v13, 0.0 }
 0x1b0   : > { %v1758_v30 = vpop.xlane.xlu0 %1757  ;;  %v1985_v11 = vsel %vm616_vm0, %v1934_v4, 0.0  ;;  %v2016_v32 = vmul.f32 %v1934_v4, %v6182_v51  ;;  %v1046_v12 = vadd.f32 %v1045_v41, %v6172_v5 }
 0x1b1   : > { %v1809_v2 = vsel %vm616_vm0, %v1758_v30, 0.0  ;;  %v1986_v22 = vadd.f32 %v1985_v11, %v6175_v25  ;;  %v1840_v57 = vmul.f32 %v1758_v30, %v6182_v51 }
 0x1b2   : > { %v1810_v40 = vadd.f32 %v1809_v2, %v6178_v46  ;;  %v2041_v43 = vsel %vm616_vm0, %v2016_v32, 0.0 }
 0x1b3   : > { %v2042_v63 = vadd.f32 %v2041_v43, %v2040_v28  ;;  %v1865_v37 = vsel %vm616_vm0, %v1840_v57, 0.0  ;;  %v2286_v61 = vpop.xlane.xlu1 %2285 }
 0x1b4   : > { %v2110_v35 = vpop.xlane.xlu0 %2109  ;;  %v1866_v59 = vadd.f32 %v1865_v37, %v1864_v17  ;;  %v2337_v31 = vsel %vm616_vm0, %v2286_v61, 0.0  ;;  %v2368_v39 = vmul.f32 %v2286_v61, %v6182_v51 }
 0x1b5   : > { %v2161_v5 = vsel %vm616_vm0, %v2110_v35, 0.0  ;;  %v2338_v25 = vadd.f32 %v2337_v31, %v2336_v34  ;;  %v2192_v46 = vmul.f32 %v2110_v35, %v6182_v51 }
 0x1b6   : > { %v2162_v50 = vadd.f32 %v2161_v5, %v2160_v16  ;;  %v2393_v18 = vsel %vm616_vm0, %v2368_v39, 0.0 }
 0x1b7   : > { %v2394_v36 = vadd.f32 %v2393_v18, %v2392_v52  ;;  %v2217_v28 = vsel %vm616_vm0, %v2192_v46, 0.0  ;;  %v6251_v55 = vpop.xlane.xlu1 %763 }
 0x1b8   : > { %v6253_v0 = vpop.xlane.xlu0 %585  ;;  %v2218_v17 = vadd.f32 %v2217_v28, %v2216_v7 }
 0x1bb   : > { %v1116_v54 = vpop.xlane.xlu1 %1115 }
 0x1bc   : > { %v940_v19 = vpop.xlane.xlu0 %939  ;;  %v1167_v34 = vsel %vm616_vm0, %v1116_v54, 0.0  ;;  %v1197_v16 = vmul.f32 %v1116_v54, %v6255_v42 }
 0x1bd   : > { %v991_v51 = vsel %vm616_vm0, %v940_v19, 0.0  ;;  %v6260_v23 = vadd.f32 %v1167_v34, %v1166_v9  ;;  %v1021_v10 = vmul.f32 %v940_v19, %v6255_v42 }
 0x1be   : > { %v6262_v52 = vadd.f32 %v991_v51, %v990_v44  ;;  %v1223_v53 = vsel %vm616_vm0, %v1197_v16, 0.0 }
 0x1bf   : > { %v6266_v15 = vadd.f32 %v1223_v53, %v1222_v60  ;;  %v1047_v7 = vsel %vm616_vm0, %v1021_v10, 0.0  ;;  %v1936_v47 = vpop.xlane.xlu1 %1935 }
 0x1c0   : > { %v1760_v38 = vpop.xlane.xlu0 %1759  ;;  %v6269_v58 = vadd.f32 %v1047_v7, %v1046_v12  ;;  %v1987_v8 = vsel %vm616_vm0, %v1936_v47, 0.0  ;;  %v2017_v13 = vmul.f32 %v1936_v47, %v6255_v42 }
 0x1c1   : > { %v1811_v9 = vsel %vm616_vm0, %v1760_v38, 0.0  ;;  %v6274_v44 = vadd.f32 %v1987_v8, %v1986_v22  ;;  %v1841_v4 = vmul.f32 %v1760_v38, %v6255_v42  ;;  %v3560_v8 = vld [vmem:[%s3962_s19] sm:$0xff] }
 0x1c2   : > { %v6276_v33 = vadd.f32 %v1811_v9, %v1810_v40  ;;  %v2043_v60 = vsel %vm616_vm0, %v2017_v13, 0.0  ;;  %v3561_v13 = vld [vmem:[%s3962_s19 + $0x8] sm:$0xff] }
 0x1c3   : > { %v6280_v30 = vadd.f32 %v2043_v60, %v2042_v63  ;;  %v1867_v41 = vsel %vm616_vm0, %v1841_v4, 0.0  ;;  %v2288_v11 = vpop.xlane.xlu1 %2287  ;;  %v215_v63 = vadd.s32 96, %v7003_v62  ;;  %v2425_v9 = vmax.f32 %v3560_v8, %v3561_v13  ;;  %v3562_v4 = vld [vmem:[%s3962_s19 + $0x180] sm:$0xff]  ;;  %v3563_v60 = vld [vmem:[%s3962_s19 + $0x188] sm:$0xff] }
 0x1c4   : > { %v2112_v32 = vpop.xlane.xlu0 %2111  ;;  %v6283_v2 = vadd.f32 %v1867_v41, %v1866_v59  ;;  %v2339_v12 = vsel %vm616_vm0, %v2288_v11, 0.0  ;;  %v2369_v57 = vmul.f32 %v2288_v11, %v6255_v42  ;;  %v2573_v41 = vmax.f32 %v3562_v4, %v3563_v60  ;;  %v3575_v60 = vld [vmem:[%s3962_s19 + $0x28] sm:$0xff] }
 0x1c5   : > { %7024 = vst [vmem:[#allocation13_spill] sm:$0xff] %v6280_v30  ;;  %v2163_v22 = vsel %vm616_vm0, %v2112_v32, 0.0  ;;  %v2340_v40 = vadd.f32 %v2339_v12, %v2338_v25  ;;  %v2193_v49 = vmul.f32 %v2112_v32, %v6255_v42  ;;  %v231_v5 = vcvt.s32.f32 %v215_v63  ;;  %v3564_v12 = vld [vmem:[%s3970_s27 + $0x88] sm:$0xff]  ;;  %v3568_v63 = vld [vmem:[%s3970_s27 + $0x90] sm:$0xff] }
 0x1c6   : > { %v2164_v43 = vadd.f32 %v2163_v22, %v2162_v50  ;;  %v2395_v37 = vsel %vm616_vm0, %v2369_v57, 0.0  ;;  %v3565_v57 = vld [vmem:[%s3970_s27 + $0x80] sm:$0xff] }
 0x1c7   : > { %v2396_v61 = vadd.f32 %v2395_v37, %v2394_v36  ;;  %v2219_v35 = vsel %vm616_vm0, %v2193_v49, 0.0  ;;  %v6292_v31 = vpop.xlane.xlu1 %765  ;;  %v2953_v25 = vadd.f32 -64.0, %v231_v5  ;;  %v2453_v22 = vmax.f32 %v3565_v57, %v3564_v12  ;;  %v3567_v49 = vld [vmem:[%s3962_s19 + $0x190] sm:$0xff]  ;;  %v3569_v5 = vld [vmem:[%s3962_s19 + $0x18] sm:$0xff]  ;;  %v3576_v12 = vld [vmem:[%s3962_s19 + $0x1a8] sm:$0xff] }
 0x1c8   : > { %v6294_v59 = vpop.xlane.xlu0 %587  ;;  %v2220_v39 = vadd.f32 %v2219_v35, %v2218_v17  ;;  %v2574_v37 = vmax.f32 %v3567_v49, %v2573_v41 }
 0x1c9   : > { %v6304_v36 = vmul.f32 0.015625, %v2953_v25 }
 0x1cb   : > { %v6296_v46 = vpop.xlane.xlu1 %1117 }
 0x1cc   : > { %v6298_v18 = vpop.xlane.xlu0 %941 }
 0x1cf   : > { %v6300_v50 = vpop.xlane.xlu1 %1937 }
 0x1d0   : > { %v6302_v26 = vpop.xlane.xlu0 %1761 }
 0x1d3   : > { %v2290_v28 = vpop.xlane.xlu1 %2289 }
 0x1d4   : > { %v2114_v54 = vpop.xlane.xlu0 %2113  ;;  %v2341_v17 = vsel %vm616_vm0, %v2290_v28, 0.0  ;;  %v2370_v19 = vmul.f32 %v2290_v28, %v6304_v36  ;;  %v3570_v28 = vld [vmem:[%s3962_s19 + $0x198] sm:$0xff] }
 0x1d5   : > { %v2165_v34 = vsel %vm616_vm0, %v2114_v54, 0.0  ;;  %v6309_v16 = vadd.f32 %v2341_v17, %v2340_v40  ;;  %v2194_v10 = vmul.f32 %v2114_v54, %v6304_v36  ;;  %v3566_v40 = vld [vmem:[%s3962_s19 + $0x10] sm:$0xff]  ;;  %v2575_v54 = vmax.f32 %v3570_v28, %v2574_v37  ;;  %v3571_v17 = vld [vmem:[%s3970_s27 + $0x98] sm:$0xff] }
 0x1d6   : > { %v6311_v51 = vadd.f32 %v2165_v34, %v2164_v43  ;;  %v2397_v53 = vsel %vm616_vm0, %v2370_v19, 0.0  ;;  %v2426_v43 = vmax.f32 %v3566_v40, %v2425_v9  ;;  %v3572_v34 = vld [vmem:[%s3962_s19 + $0x20] sm:$0xff]  ;;  %v3580_v28 = vld [vmem:[%s3970_s27 + $0xb0] sm:$0xff] }
 0x1d7   : > { %7025 = vst [vmem:[#allocation18_spill] sm:$0xff] %v6309_v16  ;;  %v6315_v7 = vadd.f32 %v2397_v53, %v2396_v61  ;;  %v2221_v47 = vsel %vm616_vm0, %v2194_v10, 0.0  ;;  %v6324_v11 = vpop.xlane.xlu1 %767  ;;  %v2454_v61 = vmax.f32 %v3568_v63, %v2453_v22  ;;  %v3573_v53 = vld [vmem:[%s3962_s19 + $0x1a0] sm:$0xff]  ;;  %v3577_v22 = vld [vmem:[%s3970_s27 + $0xa8] sm:$0xff]  ;;  %v3578_v63 = vld [vmem:[%s3962_s19 + $0x30] sm:$0xff] }
 0x1d8   : > { %7026 = vst [vmem:[#allocation19_spill] sm:$0xff] %v6311_v51  ;;  %v6318_v38 = vadd.f32 %v2221_v47, %v2220_v39  ;;  %v6326_v32 = vpop.xlane.xlu0 %589  ;;  %v2427_v25 = vmax.f32 %v3569_v5, %v2426_v43  ;;  %v2576_v47 = vmax.f32 %v3573_v53, %v2575_v54  ;;  %v3574_v9 = vld [vmem:[%s3970_s27 + $0xa0] sm:$0xff]  ;;  %v610_v43 = vrot.slane %v6110_v20, 4  ;;  %v3579_v5 = vld [vmem:[%s3962_s19 + $0x1b0] sm:$0xff]  ;;  %v6391_v16 = vld [vmem:[%s3962_s19 + $0x1c8] sm:$0xff] }
 0x1d9   : > { %7027 = vst [vmem:[#allocation12_spill] sm:$0xff] %v6315_v7  ;;  %v2455_v19 = vmax.f32 %v3571_v17, %v2454_v61  ;;  %7034 = vst [vmem:[#allocation21_spill] sm:$0xff] %v6391_v16 }
 0x1da   : > { %7028 = vst [vmem:[#allocation15_spill] sm:$0xff] %v6318_v38  ;;  %v2428_v10 = vmax.f32 %v3572_v34, %v2427_v25  ;;  %v2577_v57 = vmax.f32 %v3576_v12, %v2576_v47  ;;  %v611_v17 = vadd.f32 %v610_v43, %v6110_v20  ;;  %v216_v47 = vadd.s32 104, %v7003_v62  ;;  %v6397_v38 = vld [vmem:[%s3970_s27 + $0xc8] sm:$0xff] }
 0x1db   : > { %v6333_v35 = vpop.xlane.xlu1 %1119  ;;  %v2456_v4 = vmax.f32 %v3574_v9, %v2455_v19  ;;  %v3581_v19 = vld [vmem:[%s3962_s19 + $0x38] sm:$0xff]  ;;  %v7031_v12 = vlaneseq  ;;  %v217_v43 = vadd.s32 112, %v7003_v62 }
 0x1dc   : > { %v6335_v39 = vpop.xlane.xlu0 %943  ;;  %v2429_v41 = vmax.f32 %v3575_v60, %v2428_v10  ;;  %v2578_v25 = vmax.f32 %v3579_v5, %v2577_v57  ;;  %v3582_v10 = vld [vmem:[%s3962_s19 + $0x1b8] sm:$0xff]  ;;  %v788_v5 = vrot.slane %v6107_v48, 4 }
 0x1dd   : > { %v2457_v40 = vmax.f32 %v3577_v22, %v2456_v4  ;;  %v3583_v60 = vld [vmem:[%s3970_s27 + $0xb8] sm:$0xff]  ;;  %v6368_v57 = vand.u32 127, %v7031_v12  ;;  %v612_v22 = vrot.slane %v611_v17, 2 }
 0x1de   : > { %v2430_v61 = vmax.f32 %v3578_v63, %v2429_v41  ;;  %v2579_v53 = vmax.f32 %v3582_v10, %v2578_v25  ;;  %v3585_v63 = vld [vmem:[%s3962_s19 + $0x1c0] sm:$0xff]  ;;  %v232_v25 = vcvt.s32.f32 %v216_v47  ;;  %v1960_v47 = vrot.slane %v6192_v21, 4 }
 0x1df   : > { %v2458_v54 = vmax.f32 %v3580_v28, %v2457_v40  ;;  %7032 = vst [vmem:[#allocation17_spill] sm:$0xff] %v6368_v57  ;;  %v3584_v40 = vld [vmem:[%s3962_s19 + $0x40] sm:$0xff]  ;;  %v269_v10 = vcvt.s32.f32 %v6368_v57 }
 0x1e0   : > { %v2431_v34 = vmax.f32 %v3581_v19, %v2430_v61  ;;  %v6373_v61 = vmax.f32 %v3585_v63, %v2579_v53  ;;  %v3586_v28 = vld [vmem:[%s3970_s27 + $0xc0] sm:$0xff]  ;;  %v218_v53 = vadd.s32 120, %v7003_v62  ;;  %v3587_v63 = vld [vmem:[%s3962_s19 + $0x48] sm:$0xff]  ;;  %v2954_v57 = vadd.f32 -64.0, %v232_v25 }
 0x1e1   : > { %v2459_v41 = vmax.f32 %v3583_v60, %v2458_v54  ;;  %v964_v54 = vrot.slane %v6117_v27, 4  ;;  %v613_v60 = vadd.f32 %v612_v22, %v611_v17  ;;  %v789_v22 = vadd.f32 %v788_v5, %v6107_v48  ;;  %v3590_v17 = vld [vmem:[%s3962_s19 + $0x50] sm:$0xff] }
 0x1e2   : > { %v2432_v20 = vmax.f32 %v3584_v40, %v2431_v34  ;;  %7033 = vst [vmem:[#allocation20_spill] sm:$0xff] %v6373_v61  ;;  %v1140_v34 = vrot.slane %v6113_v29, 4  ;;  %v234_v30 = vcvt.s32.f32 %v218_v53  ;;  %v6409_v48 = vadd.f32 %v1960_v47, %v6192_v21 }
 0x1e3   : > { %v6377_v19 = vmax.f32 %v3586_v28, %v2459_v41  ;;  %v1784_v41 = vrot.slane %v6195_v3, 4  ;;  %v233_v28 = vcvt.s32.f32 %v217_v43  ;;  %v2312_v43 = vrot.slane %v6198_v45, 4 }
 0x1e4   : > { %v2433_v7 = vmax.f32 %v3587_v63, %v2432_v20  ;;  %v965_v20 = vadd.f32 %v964_v54, %v6117_v27  ;;  %v2957_v63 = vadd.f32 -64.0, %v269_v10  ;;  %v1141_v51 = vadd.f32 %v1140_v34, %v6113_v29 }
 0x1e5   : > { %v1785_v5 = vadd.f32 %v1784_v41, %v6195_v3  ;;  %v2955_v25 = vadd.f32 -64.0, %v233_v28  ;;  %v845_v27 = vmul.f32 %v6251_v55, %v6255_v42  ;;  %v668_v29 = vmul.f32 %v6253_v0, %v6255_v42 }
 0x1e6   : > { %v6406_v61 = vmax.f32 %v3590_v17, %v2433_v7  ;;  %v6416_v54 = vmul.f32 0.015625, %v2954_v57  ;;  %v790_v7 = vrot.slane %v789_v22, 2  ;;  %v815_v21 = vsel %vm616_vm0, %v6251_v55, 0.0 }
 0x1e7   : > { %v6424_v53 = vmul.f32 0.015625, %v2957_v63  ;;  %v966_v47 = vrot.slane %v965_v20, 2  ;;  %v6427_v41 = vadd.f32 %v2312_v43, %v6198_v45  ;;  %v2956_v42 = vadd.f32 -64.0, %v234_v30 }
 0x1e8   : > { %v6342_v8 = vpop.xlane.xlu1 %1939  ;;  %v6344_v13 = vpop.xlane.xlu0 %1763  ;;  %7035 = vst [vmem:[#allocation22_spill] sm:$0xff] %v6406_v61  ;;  %v1142_v57 = vrot.slane %v1141_v51, 2  ;;  %v638_v17 = vsel %vm616_vm0, %v6253_v0, 0.0  ;;  %v669_v62 = vmul.f32 %v6294_v59, %v6304_v36  ;;  %v6436_v61 = vmul.f32 0.015625, %v2955_v25 }
 0x1e9   : > { %v816_v55 = vadd.f32 %v815_v21, %v6212_v24  ;;  %v694_v45 = vsel %vm616_vm0, %v668_v29, 0.0  ;;  %v670_v30 = vmul.f32 %v6326_v32, %v6416_v54  ;;  %v639_v63 = vadd.f32 %v638_v17, %v6216_v56 }
 0x1ea   : > { %v6451_v24 = vmul.f32 0.015625, %v2956_v42  ;;  %v1786_v29 = vrot.slane %v1785_v5, 2  ;;  %v695_v56 = vadd.f32 %v694_v45, %v6229_v1  ;;  %v846_v21 = vmul.f32 %v6292_v31, %v6304_v36 }
 0x1eb   : > { %v817_v1 = vsel %vm616_vm0, %v6292_v31, 0.0  ;;  %v847_v45 = vmul.f32 %v6324_v11, %v6416_v54 }
 0x1ec   : > { %v6351_v49 = vpop.xlane.xlu1 %2291  ;;  %v6353_v37 = vpop.xlane.xlu0 %2115 }
 0x1ed   : > { %7029 = vst [vmem:[#allocation14_spill] sm:$0xff] %v6351_v49  ;;  %7030 = vst [vmem:[#allocation16_spill] sm:$0xff] %v6353_v37  ;;  %v614_v49 = vrot.slane %v613_v60, 1  ;;  %v2136_v37 = vrot.slane %v6202_v6, 4 }
 0x1ef   : > { %v615_v3 = vadd.f32 %v614_v49, %v613_v60  ;;  %v6430_v28 = vadd.f32 %v2136_v37, %v6202_v6  ;;  %v871_v49 = vsel %vm616_vm0, %v845_v27, 0.0  ;;  %v791_v60 = vadd.f32 %v790_v7, %v789_v22 }
 0x1f0   : > { %v6362_v9 = vpop.xlane.xlu1 %769  ;;  %v6364_v4 = vpop.xlane.xlu0 %591  ;;  %v640_v6 = vsel %vm616_vm0, %v6294_v59, 0.0  ;;  %v967_v37 = vadd.f32 %v966_v47, %v965_v20  ;;  %v1143_v27 = vadd.f32 %v1142_v57, %v1141_v51  ;;  %v872_v22 = vadd.f32 %v871_v49, %v6224_v14 }
 0x1f1   : > { %v713_v0 = vmul.f32 %v615_v3, %v6424_v53  ;;  %v696_v59 = vsel %vm616_vm0, %v669_v62, 0.0  ;;  %v642_v7 = vsel %vm616_vm0, %v6326_v32, 0.0  ;;  %v671_v20 = vmul.f32 %v6364_v4, %v6436_v61 }
 0x1f2   : > { %v641_v3 = vadd.f32 %v640_v6, %v639_v63  ;;  %v792_v47 = vrot.slane %v791_v60, 1  ;;  %v698_v51 = vsel %vm616_vm0, %v670_v30, 0.0  ;;  %v644_v14 = vsel %vm616_vm0, %v6364_v4, 0.0 }
 0x1f3   : > { %v715_v62 = vsel %vm714_vm1, %v713_v0, 0.0  ;;  %v968_v42 = vrot.slane %v967_v37, 1  ;;  %v697_v57 = vadd.f32 %v696_v59, %v695_v56  ;;  %v1144_v17 = vrot.slane %v1143_v27, 1 }
 0x1f4   : > { %v6382_v12 = vpop.xlane.xlu1 %1121  ;;  %v6384_v40 = vpop.xlane.xlu0 %945  ;;  %v643_v32 = vadd.f32 %v642_v7, %v641_v3  ;;  %v6466_v49 = vadd.f32 %v1786_v29, %v1785_v5  ;;  %v700_v6 = vsel %vm616_vm0, %v671_v20, 0.0  ;;  %v1962_v30 = vrot.slane %v6409_v48, 2 }
 0x1f5   : > { %v873_v4 = vsel %vm616_vm0, %v846_v21, 0.0  ;;  %v699_v63 = vadd.f32 %v698_v51, %v697_v57  ;;  %v793_v7 = vadd.f32 %v792_v47, %v791_v60  ;;  %v819_v5 = vsel %vm616_vm0, %v6324_v11, 0.0 }
 0x1f6   : > { %v645_v0 = vadd.f32 %v644_v14, %v643_v32  ;;  %v848_v31 = vmul.f32 %v6362_v9, %v6436_v61  ;;  %v818_v20 = vadd.f32 %v817_v1, %v816_v55  ;;  %v1022_v3 = vmul.f32 %v6298_v18, %v6304_v36 }
 0x1f7   : > { %v701_v21 = vadd.f32 %v700_v6, %v699_v63  ;;  %v875_v14 = vsel %vm616_vm0, %v847_v45, 0.0  ;;  %v821_v60 = vsel %vm616_vm0, %v6362_v9, 0.0  ;;  %v874_v57 = vadd.f32 %v873_v4, %v872_v22 }
 0x1f8   : > { %v820_v32 = vadd.f32 %v819_v5, %v818_v20  ;;  %v993_v55 = vsel %vm616_vm0, %v6298_v18, 0.0  ;;  %v1023_v1 = vmul.f32 %v6335_v39, %v6416_v54  ;;  %v877_v45 = vsel %vm616_vm0, %v848_v31, 0.0 }
 0x1f9   : > { %v876_v9 = vadd.f32 %v875_v14, %v874_v57  ;;  %v890_v22 = vmul.f32 %v793_v7, %v6424_v53  ;;  %v1145_v4 = vadd.f32 %v1144_v17, %v1143_v27  ;;  %v1049_v5 = vsel %vm616_vm0, %v1022_v3, 0.0 }
 0x1fa   : > { %v822_v63 = vadd.f32 %v821_v60, %v820_v32  ;;  %v1024_v18 = vmul.f32 %v6384_v40, %v6436_v61  ;;  %v994_v31 = vadd.f32 %v993_v55, %v6262_v52  ;;  %v1198_v27 = vmul.f32 %v6296_v46, %v6304_v36 }
 0x1fb   : > { %v1051_v17 = vsel %vm616_vm0, %v1023_v1, 0.0  ;;  %v891_v3 = vsel %vm714_vm1, %v890_v22, 0.0  ;;  %v1200_v32 = vmul.f32 %v6382_v12, %v6436_v61 }
 0x1fc   : > { %v1225_v57 = vsel %vm616_vm0, %v1198_v27, 0.0 }
 0x206   : > { %v6418_v10 = vpop.xlane.xlu1 %1941  ;;  %v6420_v34 = vpop.xlane.xlu0 %1765 }
 0x207   : > { %v1844_v27 = vmul.f32 %v6420_v34, %v6436_v61 }
 0x20a   : > { %v6447_v43 = vpop.xlane.xlu1 %2293  ;;  %v6449_v25 = vpop.xlane.xlu0 %2117 }
 0x20b   : > { %7036 = vst [vmem:[#allocation23_spill] sm:$0xff] %v6447_v43 }
 0x21d   : > { %v772_v43 = vpop.xlane.xlu1 %771  ;;  %v594_v59 = vpop.xlane.xlu0 %593 }
 0x21e   : > { %v646_v29 = vsel %vm616_vm0, %v594_v59, 0.0  ;;  %v672_v56 = vmul.f32 %v594_v59, %v6451_v24  ;;  %v849_v11 = vmul.f32 %v772_v43, %v6451_v24  ;;  %v969_v59 = vadd.f32 %v968_v42, %v967_v37 }
 0x21f   : > { %v647_v51 = vadd.f32 %v646_v29, %v645_v0  ;;  %v823_v6 = vsel %vm616_vm0, %v772_v43, 0.0  ;;  %v995_v37 = vsel %vm616_vm0, %v6335_v39, 0.0  ;;  %v878_v43 = vadd.f32 %v877_v45, %v876_v9 }
 0x220   : > { %v702_v47 = vsel %vm616_vm0, %v672_v56, 0.0  ;;  %v879_v42 = vsel %vm616_vm0, %v849_v11, 0.0  ;;  %v824_v29 = vadd.f32 %v823_v6, %v822_v63  ;;  %v997_v39 = vsel %vm616_vm0, %v6384_v40, 0.0 }
 0x221   : > { %648 = vadd.xlane.f32.xlu0 %v647_v51  ;;  %v703_v16 = vadd.f32 %v702_v47, %v701_v21  ;;  %v948_v0 = vpop.xlane.xlu0 %947  ;;  %v1050_v56 = vadd.f32 %v1049_v5, %v6269_v58  ;;  %v996_v20 = vadd.f32 %v995_v37, %v994_v31  ;;  %v880_v52 = vadd.f32 %v879_v42, %v878_v43  ;;  %v1124_v11 = vpop.xlane.xlu1 %1123 }
 0x222   : > { %v1025_v7 = vmul.f32 %v948_v0, %v6451_v24  ;;  %v1199_v21 = vmul.f32 %v6333_v35, %v6416_v54  ;;  %v1053_v51 = vsel %vm616_vm0, %v1024_v18, 0.0  ;;  %v999_v14 = vsel %vm616_vm0, %v948_v0, 0.0 }
 0x223   : > { %704 = vadd.xlane.f32.xlu1 %v703_v16  ;;  %v1788_v16 = vrot.slane %v6466_v49, 1  ;;  %v1052_v40 = vadd.f32 %v1051_v17, %v1050_v56  ;;  %v998_v60 = vadd.f32 %v997_v39, %v996_v20  ;;  %v1066_v58 = vmul.f32 %v969_v59, %v6424_v53 }
 0x224   : > { %v6519_v47 = vadd.f32 %v1962_v30, %v6409_v48  ;;  %v1055_v55 = vsel %vm616_vm0, %v1025_v7, 0.0  ;;  %v1242_v59 = vmul.f32 %v1145_v4, %v6424_v53  ;;  %v1842_v48 = vmul.f32 %v6302_v26, %v6304_v36 }
 0x225   : > { %716 = vadd.xlane.f32.xlu0 %v715_v62  ;;  %v1169_v62 = vsel %vm616_vm0, %v6296_v46, 0.0  ;;  %v1171_v46 = vsel %vm616_vm0, %v6333_v35, 0.0  ;;  %v1054_v45 = vadd.f32 %v1053_v51, %v1052_v40  ;;  %v1000_v6 = vadd.f32 %v999_v14, %v998_v60 }
 0x226   : > { %v1170_v1 = vadd.f32 %v1169_v62, %v6260_v23  ;;  %v1227_v30 = vsel %vm616_vm0, %v1199_v21, 0.0  ;;  %v1173_v35 = vsel %vm616_vm0, %v6382_v12, 0.0  ;;  %v1201_v9 = vmul.f32 %v1124_v11, %v6451_v24 }
 0x227   : > { %825 = vadd.xlane.f32.xlu1 %v824_v29  ;;  %v1226_v63 = vadd.f32 %v1225_v57, %v6266_v15  ;;  %v1056_v23 = vadd.f32 %v1055_v55, %v1054_v45  ;;  %v1067_v22 = vsel %vm714_vm1, %v1066_v58, 0.0  ;;  %v1813_v4 = vsel %vm616_vm0, %v6302_v26, 0.0 }
 0x228   : > { %v1172_v0 = vadd.f32 %v1171_v46, %v1170_v1  ;;  %v1843_v5 = vmul.f32 %v6344_v13, %v6416_v54  ;;  %v1229_v37 = vsel %vm616_vm0, %v1200_v32, 0.0  ;;  %v1175_v18 = vsel %vm616_vm0, %v1124_v11, 0.0 }
 0x229   : > { %881 = vadd.xlane.f32.xlu0 %v880_v52  ;;  %v1228_v12 = vadd.f32 %v1227_v30, %v1226_v63  ;;  %v1789_v15 = vadd.f32 %v1788_v16, %v6466_v49  ;;  %v1964_v43 = vrot.slane %v6519_v47, 1  ;;  %v1869_v29 = vsel %vm616_vm0, %v1842_v48, 0.0  ;;  %v7037_v30 = vld [vmem:[#allocation13_spill] sm:$0xff] }
 0x22a   : > { %v1174_v42 = vadd.f32 %v1173_v35, %v1172_v0  ;;  %v1815_v26 = vsel %vm616_vm0, %v6344_v13, 0.0  ;;  %v1231_v17 = vsel %vm616_vm0, %v1201_v9, 0.0  ;;  %v1814_v39 = vadd.f32 %v1813_v4, %v6276_v33  ;;  %v7038_v0 = vld [vmem:[#allocation16_spill] sm:$0xff]  ;;  %v6589_v4 = vld [vmem:[%s3970_s27 + $0xd0] sm:$0xff] }
 0x22b   : > { %892 = vadd.xlane.f32.xlu1 %v891_v3  ;;  %v1230_v7 = vadd.f32 %v1229_v37, %v1228_v12  ;;  %v2138_v20 = vrot.slane %v6430_v28, 2  ;;  %v2018_v49 = vmul.f32 %v6300_v50, %v6304_v36  ;;  %v1871_v16 = vsel %vm616_vm0, %v1843_v5, 0.0 }
 0x22c   : > { %v1176_v56 = vadd.f32 %v1175_v18, %v1174_v42  ;;  %v1817_v13 = vsel %vm616_vm0, %v6420_v34, 0.0  ;;  %v1870_v3 = vadd.f32 %v1869_v29, %v6283_v2  ;;  %v1816_v62 = vadd.f32 %v1815_v26, %v1814_v39 }
 0x22d   : > { %1001 = vadd.xlane.f32.xlu0 %v1000_v6  ;;  %v1232_v33 = vadd.f32 %v1231_v17, %v1230_v7  ;;  %v1243_v21 = vsel %vm714_vm1, %v1242_v59, 0.0  ;;  %v1989_v51 = vsel %vm616_vm0, %v6300_v50, 0.0  ;;  %v2019_v36 = vmul.f32 %v6342_v8, %v6416_v54  ;;  %v6607_v7 = vld [vmem:[%s3962_s19 + $0x58] sm:$0xff] }
 0x22e   : > { %v1768_v31 = vpop.xlane.xlu0 %1767  ;;  %v1873_v14 = vsel %vm616_vm0, %v1844_v27, 0.0  ;;  %v1872_v34 = vadd.f32 %v1871_v16, %v1870_v3  ;;  %v1818_v60 = vadd.f32 %v1817_v13, %v1816_v62  ;;  %v1944_v11 = vpop.xlane.xlu1 %1943  ;;  %v1886_v2 = vmul.f32 %v1789_v15, %v6424_v53  ;;  %v7041_v27 = vld [vmem:[#allocation20_spill] sm:$0xff] }
 0x22f   : > { %1057 = vadd.xlane.f32.xlu1 %v1056_v23  ;;  %v1845_v52 = vmul.f32 %v1768_v31, %v6451_v24  ;;  %v1819_v40 = vsel %vm616_vm0, %v1768_v31, 0.0  ;;  %v2139_v58 = vadd.f32 %v2138_v20, %v6430_v28  ;;  %v2045_v57 = vsel %vm616_vm0, %v2018_v49, 0.0  ;;  %v6616_v62 = vld [vmem:[%s3970_s27 + $0xd8] sm:$0xff] }
 0x230   : > { %v1991_v50 = vsel %vm616_vm0, %v6342_v8, 0.0  ;;  %v2020_v46 = vmul.f32 %v6418_v10, %v6436_v61  ;;  %v1990_v55 = vadd.f32 %v1989_v51, %v6274_v44  ;;  %v1874_v1 = vadd.f32 %v1873_v14, %v1872_v34 }
 0x231   : > { %1068 = vadd.xlane.f32.xlu0 %v1067_v22  ;;  %v1875_v32 = vsel %vm616_vm0, %v1845_v52, 0.0  ;;  %v1820_v45 = vadd.f32 %v1819_v40, %v1818_v60  ;;  %v1965_v6 = vadd.f32 %v1964_v43, %v6519_v47  ;;  %v2047_v28 = vsel %vm616_vm0, %v2019_v36, 0.0  ;;  %v7045_v40 = vld [vmem:[#allocation14_spill] sm:$0xff] }
 0x232   : > { %v1993_v59 = vsel %vm616_vm0, %v6418_v10, 0.0  ;;  %v2021_v8 = vmul.f32 %v1944_v11, %v6451_v24  ;;  %v2314_v48 = vrot.slane %v6427_v41, 2  ;;  %v2046_v35 = vadd.f32 %v2045_v57, %v7037_v30  ;;  %v2120_v42 = vpop.xlane.xlu0 %2119  ;;  %v7046_v57 = vld [vmem:[#allocation15_spill] sm:$0xff] }
 0x233   : > { %1177 = vadd.xlane.f32.xlu1 %v1176_v56  ;;  %v1992_v9 = vadd.f32 %v1991_v50, %v1990_v55  ;;  %v1876_v44 = vadd.f32 %v1875_v32, %v1874_v1  ;;  %v1887_v63 = vsel %vm714_vm1, %v1886_v2, 0.0  ;;  %v2195_v47 = vmul.f32 %v7038_v0, %v6416_v54  ;;  %v7043_v56 = vld [vmem:[#allocation22_spill] sm:$0xff]  ;;  %v6626_v2 = vld [vmem:[%s3962_s19 + $0x60] sm:$0xff]  ;;  %v2296_v32 = vpop.xlane.xlu1 %2295 }
 0x234   : > { %v2049_v23 = vsel %vm616_vm0, %v2020_v46, 0.0  ;;  %v1995_v10 = vsel %vm616_vm0, %v1944_v11, 0.0  ;;  %v2140_v22 = vrot.slane %v2139_v58, 1  ;;  %v7039_v5 = vmax.f32 %v6397_v38, %v6377_v19  ;;  %v3592_v38 = vld [vmem:[%s3962_s19 + $0x1d0] sm:$0xff]  ;;  %v7040_v19 = vld [vmem:[#allocation21_spill] sm:$0xff] }
 0x235   : > { %1233 = vadd.xlane.f32.xlu0 %v1232_v33  ;;  %v2048_v18 = vadd.f32 %v2047_v28, %v2046_v35  ;;  %v1994_v12 = vadd.f32 %v1993_v59, %v1992_v9  ;;  %v2062_v31 = vmul.f32 %v1965_v6, %v6424_v53  ;;  %v2167_v15 = vsel %vm616_vm0, %v7038_v0, 0.0  ;;  %v3596_v28 = vld [vmem:[%s3962_s19 + $0x1d8] sm:$0xff]  ;;  %v6646_v0 = vld [vmem:[%s3962_s19 + $0x68] sm:$0xff] }
 0x236   : > { %v2462_v37 = vmax.f32 %v6589_v4, %v7039_v5  ;;  %v2196_v43 = vmul.f32 %v6449_v25, %v6436_v61  ;;  %v2051_v29 = vsel %vm616_vm0, %v2021_v8, 0.0  ;;  %v2315_v26 = vadd.f32 %v2314_v48, %v6427_v41  ;;  %v6638_v8 = vld [vmem:[%s3970_s27 + $0xe0] sm:$0xff] }
 0x237   : > { %1244 = vadd.xlane.f32.xlu1 %v1243_v21  ;;  %v7042_v17 = vmax.f32 %v7040_v19, %v7041_v27  ;;  %v2435_v20 = vmax.f32 %v6607_v7, %v7043_v56  ;;  %v2050_v49 = vadd.f32 %v2049_v23, %v2048_v18  ;;  %v1996_v16 = vadd.f32 %v1995_v10, %v1994_v12  ;;  %v7044_v21 = vld [vmem:[#allocation19_spill] sm:$0xff]  ;;  %v7048_v23 = vld [vmem:[#allocation18_spill] sm:$0xff]  ;;  %v3599_v12 = vld [vmem:[%s3962_s19 + $0x1e0] sm:$0xff] }
 0x238   : > { %v2223_v13 = vsel %vm616_vm0, %v2195_v47, 0.0  ;;  %v2169_v52 = vsel %vm616_vm0, %v6449_v25, 0.0  ;;  %v2197_v41 = vmul.f32 %v2120_v42, %v6451_v24  ;;  %v2141_v3 = vadd.f32 %v2140_v22, %v2139_v58  ;;  %v6662_v19 = vld [vmem:[%s3962_s19 + $0x70] sm:$0xff]  ;;  %v3602_v56 = vld [vmem:[%s3962_s19 + $0x1e8] sm:$0xff] }
 0x239   : > { %1821 = vadd.xlane.f32.xlu0 %v1820_v45  ;;  %v2582_v39 = vmax.f32 %v3592_v38, %v7042_v17  ;;  %v2463_v33 = vmax.f32 %v6616_v62, %v2462_v37  ;;  %v2168_v51 = vadd.f32 %v2167_v15, %v7044_v21  ;;  %v2052_v36 = vadd.f32 %v2051_v29, %v2050_v49  ;;  %v7049_v15 = vld [vmem:[#allocation12_spill] sm:$0xff]  ;;  %v6667_v49 = vld [vmem:[%s3970_s27 + $0xf0] sm:$0xff] }
 0x23a   : > { %v2063_v14 = vsel %vm714_vm1, %v2062_v31, 0.0  ;;  %v2371_v34 = vmul.f32 %v7045_v40, %v6416_v54  ;;  %v2225_v25 = vsel %vm616_vm0, %v2196_v43, 0.0  ;;  %v2171_v60 = vsel %vm616_vm0, %v2120_v42, 0.0  ;;  %v7047_v54 = vld [vmem:[#allocation23_spill] sm:$0xff]  ;;  %v6655_v42 = vld [vmem:[%s3970_s27 + $0xe8] sm:$0xff]  ;;  %v6677_v21 = vld [vmem:[%s3970_s27 + $0xf8] sm:$0xff] }
 0x23b   : > { %1877 = vadd.xlane.f32.xlu1 %v1876_v44  ;;  %v2316_v11 = vrot.slane %v2315_v26, 1  ;;  %v2436_v58 = vmax.f32 %v6626_v2, %v2435_v20  ;;  %v2224_v50 = vadd.f32 %v2223_v13, %v7046_v57  ;;  %v2170_v46 = vadd.f32 %v2169_v52, %v2168_v51  ;;  %v6672_v52 = vld [vmem:[%s3962_s19 + $0x78] sm:$0xff] }
 0x23c   : > { %v2343_v55 = vsel %vm616_vm0, %v7045_v40, 0.0  ;;  %v2372_v1 = vmul.f32 %v7047_v54, %v6436_v61  ;;  %v2227_v45 = vsel %vm616_vm0, %v2197_v41, 0.0  ;;  %v2238_v6 = vmul.f32 %v2141_v3, %v6424_v53  ;;  %v3605_v3 = vld [vmem:[%s3962_s19 + $0x1f0] sm:$0xff] }
 0x23d   : > { %1888 = vadd.xlane.f32.xlu0 %v1887_v63  ;;  %v2583_v59 = vmax.f32 %v3596_v28, %v2582_v39  ;;  %v2464_v48 = vmax.f32 %v6638_v8, %v2463_v33  ;;  %v2226_v30 = vadd.f32 %v2225_v25, %v2224_v50  ;;  %v2172_v35 = vadd.f32 %v2171_v60, %v2170_v46 }
 0x23e   : > { %v2399_v9 = vsel %vm616_vm0, %v2371_v34, 0.0  ;;  %v2345_v61 = vsel %vm616_vm0, %v7047_v54, 0.0  ;;  %v2373_v44 = vmul.f32 %v2296_v32, %v6451_v24  ;;  %v2317_v63 = vadd.f32 %v2316_v11, %v2315_v26 }
 0x23f   : > { %1997 = vadd.xlane.f32.xlu1 %v1996_v16  ;;  %v2437_v47 = vmax.f32 %v6646_v0, %v2436_v58  ;;  %v2344_v10 = vadd.f32 %v2343_v55, %v7048_v23  ;;  %v2228_v22 = vadd.f32 %v2227_v45, %v2226_v30  ;;  %v2401_v5 = vsel %vm616_vm0, %v2372_v1, 0.0 }
 0x240   : > { %v2347_v37 = vsel %vm616_vm0, %v2296_v32, 0.0  ;;  %v2239_v18 = vsel %vm714_vm1, %v2238_v6, 0.0  ;;  %v2584_v24 = vmax.f32 %v3599_v12, %v2583_v59  ;;  %v2465_v31 = vmax.f32 %v6655_v42, %v2464_v48 }
 0x241   : > { %2053 = vadd.xlane.f32.xlu0 %v2052_v36  ;;  %v2400_v43 = vadd.f32 %v2399_v9, %v7049_v15  ;;  %v2346_v29 = vadd.f32 %v2345_v61, %v2344_v10  ;;  %v2403_v26 = vsel %vm616_vm0, %v2373_v44, 0.0  ;;  %v2414_v38 = vmul.f32 %v2317_v63, %v6424_v53  ;;  %v3607_v36 = vld [vmem:[%s3962_s19 + $0x1f8] sm:$0xff] }
 0x242   : > { %v2438_v27 = vmax.f32 %v6662_v19, %v2437_v47  ;;  %v2585_v20 = vmax.f32 %v3602_v56, %v2584_v24  ;;  %v2466_v16 = vmax.f32 %v6667_v49, %v2465_v31 }
 0x243   : > { %2064 = vadd.xlane.f32.xlu1 %v2063_v14  ;;  %v2402_v17 = vadd.f32 %v2401_v5, %v2400_v43  ;;  %v2348_v39 = vadd.f32 %v2347_v37, %v2346_v29  ;;  %v2415_v53 = vsel %vm714_vm1, %v2414_v38, 0.0 }
 0x244   : > { %v2439_v41 = vmax.f32 %v6672_v52, %v2438_v27  ;;  %v2586_v33 = vmax.f32 %v3605_v3, %v2585_v20  ;;  %v2467_v51 = vmax.f32 %v6677_v21, %v2466_v16 }
 0x245   : > { %2173 = vadd.xlane.f32.xlu0 %v2172_v35  ;;  %v2404_v13 = vadd.f32 %v2403_v26, %v2402_v17 }
 0x246   : > { %v2587_v14 = vmax.f32 %v3607_v36, %v2586_v33 }
 0x247   : > { %2229 = vadd.xlane.f32.xlu1 %v2228_v22 }
 0x249   : > { %2240 = vadd.xlane.f32.xlu0 %v2239_v18 }
 0x24b   : > { %2349 = vadd.xlane.f32.xlu1 %v2348_v39 }
 0x24d   : > { %2405 = vadd.xlane.f32.xlu0 %v2404_v13 }
 0x24f   : > { %2416 = vadd.xlane.f32.xlu1 %v2415_v53 }
 0x251   : > { %2440 = vmax.xlane.f32.xlu0 %v2439_v41 }
 0x253   : > { %2468 = vmax.xlane.f32.xlu1 %v2467_v51 }
 0x257   : > { %2588 = vmax.xlane.f32.xlu1 %v2587_v14 }
 0x2aa   : > { %v649_v40 = vpop.xlane.xlu0 %648 }
 0x2ab   : > { %v650_v34 = vrot.slane %v649_v40, 4 }
 0x2ac   : > { %v705_v25 = vpop.xlane.xlu1 %704 }
 0x2ad   : > { %v651_v60 = vadd.f32 %v650_v34, %v649_v40  ;;  %v706_v11 = vrot.slane %v705_v25, 4 }
 0x2ae   : > { %v717_v58 = vpop.xlane.xlu0 %716 }
 0x2af   : > { %v652_v57 = vrot.slane %v651_v60, 2  ;;  %v707_v50 = vadd.f32 %v706_v11, %v705_v25  ;;  %v718_v46 = vrot.slane %v717_v58, 4 }
 0x2b0   : > { %v826_v32 = vpop.xlane.xlu1 %825 }
 0x2b1   : > { %v708_v55 = vrot.slane %v707_v50, 2  ;;  %v719_v54 = vadd.f32 %v718_v46, %v717_v58  ;;  %v827_v1 = vrot.slane %v826_v32, 4  ;;  %v653_v45 = vadd.f32 %v652_v57, %v651_v60 }
 0x2b2   : > { %v882_v6 = vpop.xlane.xlu0 %881 }
 0x2b3   : > { %v720_v28 = vrot.slane %v719_v54, 2  ;;  %v828_v59 = vadd.f32 %v827_v1, %v826_v32  ;;  %v883_v48 = vrot.slane %v882_v6, 4  ;;  %v654_v30 = vrot.slane %v653_v45, 1 }
 0x2b4   : > { %v893_v35 = vpop.xlane.xlu1 %892  ;;  %v709_v9 = vadd.f32 %v708_v55, %v707_v50 }
 0x2b5   : > { %v829_v61 = vrot.slane %v828_v59, 2  ;;  %v884_v44 = vadd.f32 %v883_v48, %v882_v6  ;;  %v894_v63 = vrot.slane %v893_v35, 4  ;;  %v655_v47 = vadd.f32 %v654_v30, %v653_v45 }
 0x2b6   : > { %v1002_v23 = vpop.xlane.xlu0 %1001  ;;  %v710_v10 = vrot.slane %v709_v9, 1  ;;  %v721_v22 = vadd.f32 %v720_v28, %v719_v54 }
 0x2b7   : > { %v885_v5 = vrot.slane %v884_v44, 2  ;;  %v895_v37 = vadd.f32 %v894_v63, %v893_v35  ;;  %v1003_v18 = vrot.slane %v1002_v23, 4  ;;  %3078 = vpush %v655_v47  ;;  %v830_v12 = vadd.f32 %v829_v61, %v828_v59 }
 0x2b8   : > { %v1058_v24 = vpop.xlane.xlu1 %1057  ;;  %v711_v31 = vadd.f32 %v710_v10, %v709_v9  ;;  %v722_v15 = vrot.slane %v721_v22, 1 }
 0x2b9   : > { %v896_v43 = vrot.slane %v895_v37, 2  ;;  %v1004_v29 = vadd.f32 %v1003_v18, %v1002_v23  ;;  %v1059_v26 = vrot.slane %v1058_v24, 4  ;;  %v831_v38 = vrot.slane %v830_v12, 1 }
 0x2ba   : > { %3080 = vpush %v711_v31  ;;  %v1069_v27 = vpop.xlane.xlu0 %1068  ;;  %v723_v17 = vadd.f32 %v722_v15, %v721_v22  ;;  %v886_v39 = vadd.f32 %v885_v5, %v884_v44 }
 0x2bb   : > { %v1005_v56 = vrot.slane %v1004_v29, 2  ;;  %v1060_v20 = vadd.f32 %v1059_v26, %v1058_v24  ;;  %v1070_v16 = vrot.slane %v1069_v27, 4  ;;  %v832_v13 = vadd.f32 %v831_v38, %v830_v12 }
 0x2bc   : > { %3082 = vpush %v723_v17  ;;  %v1178_v53 = vpop.xlane.xlu1 %1177  ;;  %v887_v41 = vrot.slane %v886_v39, 1  ;;  %v897_v3 = vadd.f32 %v896_v43, %v895_v37 }
 0x2bd   : > { %v1061_v33 = vrot.slane %v1060_v20, 2  ;;  %v1071_v51 = vadd.f32 %v1070_v16, %v1069_v27  ;;  %v1179_v36 = vrot.slane %v1178_v53, 4  ;;  %3084 = vpush %v832_v13  ;;  %v1006_v14 = vadd.f32 %v1005_v56, %v1004_v29 }
 0x2be   : > { %v1234_v40 = vpop.xlane.xlu0 %1233  ;;  %v888_v34 = vadd.f32 %v887_v41, %v886_v39  ;;  %v898_v25 = vrot.slane %v897_v3, 1 }
 0x2bf   : > { %v1072_v60 = vrot.slane %v1071_v51, 2  ;;  %v1180_v11 = vadd.f32 %v1179_v36, %v1178_v53  ;;  %v1235_v58 = vrot.slane %v1234_v40, 4  ;;  %v1007_v57 = vrot.slane %v1006_v14, 1 }
 0x2c0   : > { %3086 = vpush %v888_v34  ;;  %v1245_v50 = vpop.xlane.xlu1 %1244  ;;  %v899_v46 = vadd.f32 %v898_v25, %v897_v3  ;;  %v1062_v32 = vadd.f32 %v1061_v33, %v1060_v20 }
 0x2c1   : > { %v1181_v55 = vrot.slane %v1180_v11, 2  ;;  %v1236_v54 = vadd.f32 %v1235_v58, %v1234_v40  ;;  %v1246_v1 = vrot.slane %v1245_v50, 4  ;;  %v1008_v45 = vadd.f32 %v1007_v57, %v1006_v14 }
 0x2c2   : > { %3088 = vpush %v899_v46  ;;  %v1822_v6 = vpop.xlane.xlu0 %1821  ;;  %v1063_v28 = vrot.slane %v1062_v32, 1  ;;  %v1073_v59 = vadd.f32 %v1072_v60, %v1071_v51 }
 0x2c3   : > { %v1237_v48 = vrot.slane %v1236_v54, 2  ;;  %v1247_v30 = vadd.f32 %v1246_v1, %v1245_v50  ;;  %v1823_v35 = vrot.slane %v1822_v6, 4  ;;  %3090 = vpush %v1008_v45  ;;  %v1182_v9 = vadd.f32 %v1181_v55, %v1180_v11 }
 0x2c4   : > { %v1878_v61 = vpop.xlane.xlu1 %1877  ;;  %v1064_v44 = vadd.f32 %v1063_v28, %v1062_v32  ;;  %v1074_v63 = vrot.slane %v1073_v59, 1 }
 0x2c5   : > { %v1248_v47 = vrot.slane %v1247_v30, 2  ;;  %v1824_v23 = vadd.f32 %v1823_v35, %v1822_v6  ;;  %v1879_v10 = vrot.slane %v1878_v61, 4  ;;  %v1183_v22 = vrot.slane %v1182_v9, 1 }
 0x2c6   : > { %3092 = vpush %v1064_v44  ;;  %v1889_v5 = vpop.xlane.xlu0 %1888  ;;  %v1075_v37 = vadd.f32 %v1074_v63, %v1073_v59  ;;  %v1238_v18 = vadd.f32 %v1237_v48, %v1236_v54 }
 0x2c7   : > { %v1825_v12 = vrot.slane %v1824_v23, 2  ;;  %v1880_v24 = vadd.f32 %v1879_v10, %v1878_v61  ;;  %v1890_v31 = vrot.slane %v1889_v5, 4  ;;  %v1184_v15 = vadd.f32 %v1183_v22, %v1182_v9 }
 0x2c8   : > { %3094 = vpush %v1075_v37  ;;  %v1998_v43 = vpop.xlane.xlu1 %1997  ;;  %v1239_v29 = vrot.slane %v1238_v18, 1  ;;  %v1249_v26 = vadd.f32 %v1248_v47, %v1247_v30 }
 0x2c9   : > { %v1881_v38 = vrot.slane %v1880_v24, 2  ;;  %v1891_v27 = vadd.f32 %v1890_v31, %v1889_v5  ;;  %v1999_v17 = vrot.slane %v1998_v43, 4  ;;  %3096 = vpush %v1184_v15  ;;  %v1826_v39 = vadd.f32 %v1825_v12, %v1824_v23 }
 0x2ca   : > { %v2054_v56 = vpop.xlane.xlu0 %2053  ;;  %v1240_v20 = vadd.f32 %v1239_v29, %v1238_v18  ;;  %v1250_v16 = vrot.slane %v1249_v26, 1 }
 0x2cb   : > { %v1892_v13 = vrot.slane %v1891_v27, 2  ;;  %v2000_v53 = vadd.f32 %v1999_v17, %v1998_v43  ;;  %v2055_v41 = vrot.slane %v2054_v56, 4  ;;  %v1827_v3 = vrot.slane %v1826_v39, 1 }
 0x2cc   : > { %3098 = vpush %v1240_v20  ;;  %v2065_v33 = vpop.xlane.xlu1 %2064  ;;  %v1251_v51 = vadd.f32 %v1250_v16, %v1249_v26  ;;  %v1882_v36 = vadd.f32 %v1881_v38, %v1880_v24 }
 0x2cd   : > { %v2001_v14 = vrot.slane %v2000_v53, 2  ;;  %v2056_v40 = vadd.f32 %v2055_v41, %v2054_v56  ;;  %v2066_v34 = vrot.slane %v2065_v33, 4  ;;  %v1828_v25 = vadd.f32 %v1827_v3, %v1826_v39 }
 0x2ce   : > { %3100 = vpush %v1251_v51  ;;  %v2174_v60 = vpop.xlane.xlu0 %2173  ;;  %v1883_v11 = vrot.slane %v1882_v36, 1  ;;  %v1893_v58 = vadd.f32 %v1892_v13, %v1891_v27 }
 0x2cf   : > { %v2057_v57 = vrot.slane %v2056_v40, 2  ;;  %v2067_v50 = vadd.f32 %v2066_v34, %v2065_v33  ;;  %v2175_v46 = vrot.slane %v2174_v60, 4  ;;  %3102 = vpush %v1828_v25  ;;  %v2002_v32 = vadd.f32 %v2001_v14, %v2000_v53 }
 0x2d0   : > { %v2230_v55 = vpop.xlane.xlu1 %2229  ;;  %v1884_v54 = vadd.f32 %v1883_v11, %v1882_v36  ;;  %v1894_v1 = vrot.slane %v1893_v58, 1 }
 0x2d1   : > { %v2068_v45 = vrot.slane %v2067_v50, 2  ;;  %v2176_v6 = vadd.f32 %v2175_v46, %v2174_v60  ;;  %v2231_v28 = vrot.slane %v2230_v55, 4  ;;  %v2003_v59 = vrot.slane %v2002_v32, 1 }
 0x2d2   : > { %3104 = vpush %v1884_v54  ;;  %v2241_v48 = vpop.xlane.xlu0 %2240  ;;  %v1895_v30 = vadd.f32 %v1894_v1, %v1893_v58  ;;  %v2058_v35 = vadd.f32 %v2057_v57, %v2056_v40 }
 0x2d3   : > { %v2177_v9 = vrot.slane %v2176_v6, 2  ;;  %v2232_v61 = vadd.f32 %v2231_v28, %v2230_v55  ;;  %v2242_v44 = vrot.slane %v2241_v48, 4  ;;  %v2004_v63 = vadd.f32 %v2003_v59, %v2002_v32  ;;  %v7050_v59 = vld [vmem:[#allocation17_spill] sm:$0xff] }
 0x2d4   : > { %3106 = vpush %v1895_v30  ;;  %v2350_v47 = vpop.xlane.xlu1 %2349  ;;  %v2059_v23 = vrot.slane %v2058_v35, 1  ;;  %v2069_v10 = vadd.f32 %v2068_v45, %v2067_v50  ;;  %vm2721_vm2 = vcmp.eq.s32.totalorder %v7050_v59, 0  ;;  %vm2725_vm3 = vcmp.eq.s32.totalorder %v7050_v59, 1 }
 0x2d5   : > { %v2233_v22 = vrot.slane %v2232_v61, 2  ;;  %v2243_v5 = vadd.f32 %v2242_v44, %v2241_v48  ;;  %v2351_v37 = vrot.slane %v2350_v47, 4  ;;  %3108 = vpush %v2004_v63  ;;  %v2178_v18 = vadd.f32 %v2177_v9, %v2176_v6 }
 0x2d6   : > { %v2406_v12 = vpop.xlane.xlu0 %2405  ;;  %v2060_v24 = vadd.f32 %v2059_v23, %v2058_v35  ;;  %v2070_v31 = vrot.slane %v2069_v10, 1  ;;  %vm2729_vm4 = vcmp.eq.s32.totalorder %v7050_v59, 2  ;;  %vm2733_vm5 = vcmp.eq.s32.totalorder %v7050_v59, 3 }
 0x2d7   : > { %v2244_v15 = vrot.slane %v2243_v5, 2  ;;  %v2352_v43 = vadd.f32 %v2351_v37, %v2350_v47  ;;  %v2407_v29 = vrot.slane %v2406_v12, 4  ;;  %v2179_v26 = vrot.slane %v2178_v18, 1 }
 0x2d8   : > { %3110 = vpush %v2060_v24  ;;  %v2417_v38 = vpop.xlane.xlu1 %2416  ;;  %v2071_v27 = vadd.f32 %v2070_v31, %v2069_v10  ;;  %v2234_v17 = vadd.f32 %v2233_v22, %v2232_v61  ;;  %vm2737_vm6 = vcmp.eq.s32.totalorder %v7050_v59, 4  ;;  %vm2741_vm7 = vcmp.eq.s32.totalorder %v7050_v59, 5 }
 0x2d9   : > { %v2353_v39 = vrot.slane %v2352_v43, 2  ;;  %v2408_v56 = vadd.f32 %v2407_v29, %v2406_v12  ;;  %v2418_v20 = vrot.slane %v2417_v38, 4  ;;  %v2180_v16 = vadd.f32 %v2179_v26, %v2178_v18 }
 0x2da   : > { %3112 = vpush %v2071_v27  ;;  %v2441_v13 = vpop.xlane.xlu0 %2440  ;;  %v2235_v53 = vrot.slane %v2234_v17, 1  ;;  %v2245_v41 = vadd.f32 %v2244_v15, %v2243_v5  ;;  %vm2745_vm8 = vcmp.eq.s32.totalorder %v7050_v59, 6  ;;  %vm2749_vm9 = vcmp.eq.s32.totalorder %v7050_v59, 7 }
 0x2db   : > { %v2409_v3 = vrot.slane %v2408_v56, 2  ;;  %v2419_v33 = vadd.f32 %v2418_v20, %v2417_v38  ;;  %v2442_v51 = vrot.slane %v2441_v13, 4  ;;  %3114 = vpush %v2180_v16  ;;  %v2354_v36 = vadd.f32 %v2353_v39, %v2352_v43 }
 0x2dc   : > { %v2236_v14 = vadd.f32 %v2235_v53, %v2234_v17  ;;  %v2246_v40 = vrot.slane %v2245_v41, 1  ;;  %vm2753_vm10 = vcmp.eq.s32.totalorder %v7050_v59, 8  ;;  %vm2757_vm11 = vcmp.eq.s32.totalorder %v7050_v59, 9 }
 0x2dd   : > { %v2420_v34 = vrot.slane %v2419_v33, 2  ;;  %v2443_v25 = vmax.f32 %v2441_v13, %v2442_v51  ;;  %v2355_v60 = vrot.slane %v2354_v36, 1  ;;  %v2410_v11 = vadd.f32 %v2409_v3, %v2408_v56 }
 0x2de   : > { %3116 = vpush %v2236_v14  ;;  %v2247_v58 = vadd.f32 %v2246_v40, %v2245_v41  ;;  %vm2761_vm12 = vcmp.eq.s32.totalorder %v7050_v59, 10  ;;  %vm2765_vm13 = vcmp.eq.s32.totalorder %v7050_v59, 11  ;;  %vm2769_vm14 = vcmp.eq.s32.totalorder %v7050_v59, 12 }
 0x2df   : > { %v2444_v57 = vrot.slane %v2443_v25, 2  ;;  %v2356_v50 = vadd.f32 %v2355_v60, %v2354_v36  ;;  %v2411_v46 = vrot.slane %v2410_v11, 1  ;;  %v2421_v32 = vadd.f32 %v2420_v34, %v2419_v33 }
 0x2e0   : > { %3118 = vpush %v2247_v58  ;;  %vm2773_vm15 = vcmp.eq.s32.totalorder %v7050_v59, 13  ;;  %vm2777_vm0 = vcmp.eq.s32.totalorder %v7050_v59, 14  ;;  %vm2781_vm1 = vcmp.eq.s32.totalorder %v7050_v59, 15 }
 0x2e1   : > { %3120 = vpush %v2356_v50  ;;  %v2412_v55 = vadd.f32 %v2411_v46, %v2410_v11  ;;  %v2422_v54 = vrot.slane %v2421_v32, 1  ;;  %v2445_v1 = vmax.f32 %v2443_v25, %v2444_v57 }
 0x2e3   : > { %3122 = vpush %v2412_v55  ;;  %v2423_v45 = vadd.f32 %v2422_v54, %v2421_v32  ;;  %v2446_v6 = vrot.slane %v2445_v1, 1 }
 0x2e5   : > { %3124 = vpush %v2423_v45  ;;  %v2447_v28 = vmax.f32 %v2445_v1, %v2446_v6 }
 0x2e7   : > { %3126 = vpush %v2447_v28 }
 0x2e8   : > { %s3079_s20 = spop %3078 }
 0x2e9   : > { %v2722_v48 = vstv %s3079_s20 }
 0x2ea   : > { %v2723_v35 = vsel %vm2721_vm2, %v2722_v48, 0.0  ;;  %vm2785_vm2 = vcmp.eq.s32.totalorder %v7050_v59, 16 }
 0x2eb   : > { %s3081_s5 = spop %3080 }
 0x2ec   : > { %v2726_v30 = vstv %s3081_s5 }
 0x2ed   : > { %v2727_v9 = vsel %vm2725_vm3, %v2726_v30, 0.0  ;;  %s3083_s14 = spop %3082  ;;  %vm2789_vm3 = vcmp.eq.s32.totalorder %v7050_v59, 17 }
 0x2ee   : > { %v2728_v61 = vadd.f32 %v2727_v9, %v2723_v35  ;;  %v2730_v44 = vstv %s3083_s14  ;;  %s3085_s17 = spop %3084 }
 0x2ef   : > { %v2731_v63 = vsel %vm2729_vm4, %v2730_v44, 0.0  ;;  %v2734_v47 = vstv %s3085_s17  ;;  %vm2793_vm4 = vcmp.eq.s32.totalorder %v7050_v59, 18 }
 0x2f0   : > { %v2732_v23 = vadd.f32 %v2731_v63, %v2728_v61  ;;  %v2735_v10 = vsel %vm2733_vm5, %v2734_v47, 0.0  ;;  %vm2797_vm5 = vcmp.eq.s32.totalorder %v7050_v59, 19  ;;  %v2469_v63 = vpop.xlane.xlu1 %2468 }
 0x2f1   : > { %s3087_s28 = spop %3086 }
 0x2f2   : > { %v2736_v22 = vadd.f32 %v2735_v10, %v2732_v23  ;;  %v2738_v5 = vstv %s3087_s28 }
 0x2f3   : > { %v2739_v37 = vsel %vm2737_vm6, %v2738_v5, 0.0  ;;  %s3089_s24 = spop %3088  ;;  %vm2801_vm6 = vcmp.eq.s32.totalorder %v7050_v59, 20 }
 0x2f4   : > { %v2740_v18 = vadd.f32 %v2739_v37, %v2736_v22  ;;  %v2742_v12 = vstv %s3089_s24  ;;  %s3091_s25 = spop %3090 }
 0x2f5   : > { %v2743_v24 = vsel %vm2741_vm7, %v2742_v12, 0.0  ;;  %v2746_v31 = vstv %s3091_s25  ;;  %vm2805_vm7 = vcmp.eq.s32.totalorder %v7050_v59, 21 }
 0x2f6   : > { %v2744_v15 = vadd.f32 %v2743_v24, %v2740_v18  ;;  %v2747_v43 = vsel %vm2745_vm8, %v2746_v31, 0.0  ;;  %vm2809_vm8 = vcmp.eq.s32.totalorder %v7050_v59, 22  ;;  %v2470_v18 = vrot.slane %v2469_v63, 4 }
 0x2f7   : > { %s3093_s6 = spop %3092 }
 0x2f8   : > { %v2748_v29 = vadd.f32 %v2747_v43, %v2744_v15  ;;  %v2750_v26 = vstv %s3093_s6 }
 0x2f9   : > { %v2751_v38 = vsel %vm2749_vm9, %v2750_v26, 0.0  ;;  %s3095_s23 = spop %3094  ;;  %vm2813_vm9 = vcmp.eq.s32.totalorder %v7050_v59, 23 }
 0x2fa   : > { %v2752_v27 = vadd.f32 %v2751_v38, %v2748_v29  ;;  %v2754_v17 = vstv %s3095_s23  ;;  %s3097_s29 = spop %3096  ;;  %v2471_v29 = vmax.f32 %v2469_v63, %v2470_v18 }
 0x2fb   : > { %v2755_v39 = vsel %vm2753_vm10, %v2754_v17, 0.0  ;;  %v2758_v56 = vstv %s3097_s29  ;;  %s3791_s29 = smov 1e-05   ;;  %vm2817_vm10 = vcmp.eq.s32.totalorder %v7050_v59, 24 }
 0x2fc   : > { %v2756_v20 = vadd.f32 %v2755_v39, %v2752_v27  ;;  %v2759_v16 = vsel %vm2757_vm11, %v2758_v56, 0.0  ;;  %v2472_v17 = vrot.slane %v2471_v29, 2 }
 0x2fd   : > { %s3099_s7 = spop %3098 }
 0x2fe   : > { %v2760_v13 = vadd.f32 %v2759_v16, %v2756_v20  ;;  %v2762_v53 = vstv %s3099_s7  ;;  %v2473_v39 = vmax.f32 %v2471_v29, %v2472_v17 }
 0x2ff   : > { %v2763_v41 = vsel %vm2761_vm12, %v2762_v53, 0.0  ;;  %s3101_s8 = spop %3100 }
 0x300   : > { %v2764_v3 = vadd.f32 %v2763_v41, %v2760_v13  ;;  %v2766_v33 = vstv %s3101_s8  ;;  %s3103_s30 = spop %3102  ;;  %v2474_v56 = vrot.slane %v2473_v39, 1  ;;  %v6710_v41 = vld [vmem:[%s3970_s27 + $0x208] sm:$0xff] }
 0x301   : > { %v2767_v51 = vsel %vm2765_vm13, %v2766_v33, 0.0  ;;  %v2770_v36 = vstv %s3103_s30 }
 0x302   : > { %v2768_v14 = vadd.f32 %v2767_v51, %v2764_v3  ;;  %v2771_v40 = vsel %vm2769_vm14, %v2770_v36, 0.0  ;;  %v2475_v16 = vmax.f32 %v2473_v39, %v2474_v56  ;;  %v6713_v3 = vld [vmem:[%s3970_s27 + $0x200] sm:$0xff]  ;;  %v6718_v51 = vld [vmem:[%s3970_s27 + $0x210] sm:$0xff]  ;;  %v3627_v39 = vld [vmem:[%s3962_s19 + $0x28] sm:$0xff] }
 0x303   : > { %s3105_s4 = spop %3104  ;;  %v2601_v33 = vmax.f32 %v6713_v3, %v6710_v41 }
 0x304   : > { %v2772_v34 = vadd.f32 %v2771_v40, %v2768_v14  ;;  %v2774_v25 = vstv %s3105_s4  ;;  %v6722_v14 = vld [vmem:[%s3970_s27 + $0x218] sm:$0xff] }
 0x305   : > { %v2775_v60 = vsel %vm2773_vm15, %v2774_v25, 0.0  ;;  %s3107_s3 = spop %3106  ;;  %v2602_v36 = vmax.f32 %v6718_v51, %v2601_v33 }
 0x306   : > { %v2776_v11 = vadd.f32 %v2775_v60, %v2772_v34  ;;  %v2778_v58 = vstv %s3107_s3  ;;  %s3109_s26 = spop %3108  ;;  %v6726_v34 = vld [vmem:[%s3970_s27 + $0x220] sm:$0xff] }
 0x307   : > { %v2779_v57 = vsel %vm2777_vm0, %v2778_v58, 0.0  ;;  %v2782_v50 = vstv %s3109_s26  ;;  %v2603_v40 = vmax.f32 %v6722_v14, %v2602_v36  ;;  %v3613_v58 = vld [vmem:[%s3970_s27 + $0x80] sm:$0xff] }
 0x308   : > { %v2780_v46 = vadd.f32 %v2779_v57, %v2776_v11  ;;  %v2783_v32 = vsel %vm2781_vm1, %v2782_v50, 0.0  ;;  %v3614_v50 = vld [vmem:[%s3970_s27 + $0x88] sm:$0xff]  ;;  %v6772_v36 = vld [vmem:[%s3970_s27 + $0x240] sm:$0xff] }
 0x309   : > { %s3111_s20 = spop %3110  ;;  %v2604_v25 = vmax.f32 %v6726_v34, %v2603_v40 }
 0x30a   : > { %v2784_v55 = vadd.f32 %v2783_v32, %v2780_v46  ;;  %v2786_v54 = vstv %s3111_s20  ;;  %v6738_v32 = vld [vmem:[%s3970_s27 + $0x228] sm:$0xff] }
 0x30b   : > { %v2787_v1 = vsel %vm2785_vm2, %v2786_v54, 0.0  ;;  %s3113_s5 = spop %3112  ;;  %v3616_v54 = vld [vmem:[%s3962_s19] sm:$0xff] }
 0x30c   : > { %v2788_v45 = vadd.f32 %v2787_v1, %v2784_v55  ;;  %v2790_v6 = vstv %s3113_s5  ;;  %s3115_s14 = spop %3114  ;;  %v2605_v55 = vmax.f32 %v6738_v32, %v2604_v25  ;;  %v3630_v25 = vld [vmem:[%s3962_s19 + $0x30] sm:$0xff] }
 0x30d   : > { %v2791_v28 = vsel %vm2789_vm3, %v2790_v6, 0.0  ;;  %v2794_v48 = vstv %s3115_s14 }
 0x30e   : > { %v2792_v30 = vadd.f32 %v2791_v28, %v2788_v45  ;;  %v2795_v35 = vsel %vm2793_vm4, %v2794_v48, 0.0  ;;  %v3617_v45 = vld [vmem:[%s3962_s19 + $0x8] sm:$0xff]  ;;  %v3618_v28 = vld [vmem:[%s3970_s27 + $0x90] sm:$0xff] }
 0x30f   : > { %s3117_s17 = spop %3116 }
 0x310   : > { %v2796_v9 = vadd.f32 %v2795_v35, %v2792_v30  ;;  %v2798_v61 = vstv %s3117_s17 }
 0x311   : > { %v2799_v44 = vsel %vm2797_vm5, %v2798_v61, 0.0  ;;  %s3119_s28 = spop %3118 }
 0x312   : > { %v2800_v47 = vadd.f32 %v2799_v44, %v2796_v9  ;;  %v2802_v23 = vstv %s3119_s28  ;;  %s3121_s24 = spop %3120  ;;  %v6748_v9 = vld [vmem:[%s3970_s27 + $0x230] sm:$0xff] }
 0x313   : > { %v2803_v10 = vsel %vm2801_vm6, %v2802_v23, 0.0  ;;  %v2806_v22 = vstv %s3121_s24  ;;  %v2606_v61 = vmax.f32 %v6748_v9, %v2605_v55  ;;  %v3620_v44 = vld [vmem:[%s3962_s19 + $0x10] sm:$0xff] }
 0x314   : > { %v2804_v5 = vadd.f32 %v2803_v10, %v2800_v47  ;;  %v2807_v37 = vsel %vm2805_vm7, %v2806_v22, 0.0  ;;  %s3123_s25 = spop %3122  ;;  %v3621_v47 = vld [vmem:[%s3970_s27 + $0x98] sm:$0xff] }
 0x315   : > { %v2810_v12 = vstv %s3123_s25  ;;  %v3622_v10 = vld [vmem:[%s3962_s19 + $0x18] sm:$0xff] }
 0x316   : > { %v2808_v24 = vadd.f32 %v2807_v37, %v2804_v5  ;;  %v2811_v31 = vsel %vm2809_vm8, %v2810_v12, 0.0  ;;  %s3125_s6 = spop %3124  ;;  %v3623_v5 = vld [vmem:[%s3970_s27 + $0xa0] sm:$0xff] }
 0x317   : > { %v2814_v15 = vstv %s3125_s6 }
 0x318   : > { %v2812_v43 = vadd.f32 %v2811_v31, %v2808_v24  ;;  %v2815_v26 = vsel %vm2813_vm9, %v2814_v15, 0.0  ;;  %s3127_s23 = spop %3126  ;;  %v6760_v31 = vld [vmem:[%s3970_s27 + $0x238] sm:$0xff] }
 0x319   : > { %s2449_s7 = smax.f32 %s3791_s29, %s3127_s23  ;;  %v2607_v15 = vmax.f32 %v6760_v31, %v2606_v61  ;;  %v6784_v61 = vld [vmem:[%s3970_s27 + $0x248] sm:$0xff] }
 0x31a   : > { %v6706_v38 = vadd.f32 %v2815_v26, %v2812_v43  ;;  %v2450_v27 = vstv %s2449_s7  ;;  %v3625_v43 = vld [vmem:[%s3962_s19 + $0x20] sm:$0xff]  ;;  %v3626_v26 = vld [vmem:[%s3970_s27 + $0xa8] sm:$0xff] }
 0x31b   : > { %3552 = vrcp.f32 %v2450_v27  ;;  %v2608_v40 = vmax.f32 %v6772_v36, %v2607_v15 }
 0x328   : > { %v3553_v20 = vpop.eup %3552 }
 0x329   : > { %3128 = vpush %v3553_v20  ;;  %v3628_v20 = vld [vmem:[%s3970_s27 + $0xb0] sm:$0xff] }
 0x32a   : > { %3130 = vpush %v2475_v16 }
 0x35a   : > { %s3129_s8 = spop %3128 }
 0x35b   : > { %s3131_s30 = spop %3130  ;;  %v6729_v60 = vstv %s3129_s8 }
 0x35c   : > { %s2477_s4 = smax.f32 %s3791_s29, %s3131_s30  ;;  %v2482_v1 = vmul.f32 %v3616_v54, %v6729_v60  ;;  %v2483_v6 = vmul.f32 %v3617_v45, %v6729_v60  ;;  %v2484_v63 = vmul.f32 %v3620_v44, %v6729_v60  ;;  %v2485_v22 = vmul.f32 %v3622_v10, %v6729_v60 }
 0x35d   : > { %v2478_v13 = vstv %s2477_s4  ;;  %v2486_v29 = vmul.f32 %v3625_v43, %v6729_v60  ;;  %v2487_v56 = vmul.f32 %v3627_v39, %v6729_v60  ;;  %v2609_v44 = vmax.f32 %v6784_v61, %v2608_v40 }
 0x35e   : > { %3554 = vrcp.f32 %v2478_v13 }
 0x36b   : > { %v3555_v53 = vpop.eup %3554 }
 0x36c   : > { %3132 = vpush %v3555_v53 }
 0x39d   : > { %s3133_s3 = spop %3132 }
 0x39e   : > { %v6731_v11 = vstv %s3133_s3 }
 0x39f   : > { %v2499_v57 = vmul.f32 %v3613_v58, %v6731_v11  ;;  %v2500_v46 = vmul.f32 %v3614_v50, %v6731_v11  ;;  %v2501_v48 = vmul.f32 %v3618_v28, %v6731_v11  ;;  %v2502_v23 = vmul.f32 %v3621_v47, %v6731_v11 }
 0x3a0   : > { %v2503_v37 = vmul.f32 %v3623_v5, %v6731_v11  ;;  %v2504_v27 = vmul.f32 %v3626_v26, %v6731_v11  ;;  %v2505_v16 = vmul.f32 %v3628_v20, %v6731_v11  ;;  %v2488_v58 = vmul.f32 %v3630_v25, %v6729_v60  ;;  %v6796_v26 = vld [vmem:[%s3970_s27 + $0x250] sm:$0xff] }
 0x3a1   : > { %v2515_v30 = vsub.f32 %v2482_v1, %v2499_v57  ;;  %v2516_v35 = vsub.f32 %v2483_v6, %v2500_v46  ;;  %v2517_v18 = vsub.f32 %v2484_v63, %v2501_v48  ;;  %v2518_v17 = vsub.f32 %v2485_v22, %v2502_v23  ;;  %v3631_v57 = vld [vmem:[%s3970_s27 + $0xb8] sm:$0xff]  ;;  %v3633_v6 = vld [vmem:[%s3970_s27 + $0xc0] sm:$0xff]  ;;  %v3636_v23 = vld [vmem:[%s3970_s27 + $0xc8] sm:$0xff] }
 0x3a2   : > { %v2519_v13 = vsub.f32 %v2486_v29, %v2503_v37  ;;  %v2506_v50 = vmul.f32 %v3631_v57, %v6731_v11  ;;  %v2520_v46 = vsub.f32 %v2487_v56, %v2504_v27  ;;  %v3632_v1 = vld [vmem:[%s3962_s19 + $0x38] sm:$0xff]  ;;  %v2507_v28 = vmul.f32 %v3633_v6, %v6731_v11  ;;  %v3635_v63 = vld [vmem:[%s3962_s19 + $0x40] sm:$0xff] }
 0x3a3   : > { %v2531_v12 = vmul.f32 %v2515_v30, %v2515_v30  ;;  %v2532_v24 = vmul.f32 %v2516_v35, %v2516_v35  ;;  %v2533_v53 = vmul.f32 %v2517_v18, %v2517_v18  ;;  %v2534_v55 = vmul.f32 %v2518_v17, %v2518_v17  ;;  %v3637_v18 = vld [vmem:[%s3962_s19 + $0x48] sm:$0xff]  ;;  %v3639_v17 = vld [vmem:[%s3962_s19 + $0x50] sm:$0xff] }
 0x3a4   : > { %v2489_v45 = vmul.f32 %v3632_v1, %v6729_v60  ;;  %v2521_v48 = vsub.f32 %v2488_v58, %v2505_v16  ;;  %v2535_v30 = vmul.f32 %v2519_v13, %v2519_v13  ;;  %v2490_v47 = vmul.f32 %v3635_v63, %v6729_v60  ;;  %v6808_v58 = vld [vmem:[%s3970_s27 + $0x258] sm:$0xff] }
 0x3a5   : > { %v2547_v33 = vadd.f32 %v2532_v24, %v2531_v12  ;;  %v2508_v10 = vmul.f32 %v3636_v23, %v6731_v11  ;;  %v2536_v5 = vmul.f32 %v2520_v46, %v2520_v46  ;;  %v2491_v12 = vmul.f32 %v3637_v18, %v6729_v60  ;;  %v6830_v23 = vld [vmem:[%s3970_s27 + $0x268] sm:$0xff] }
 0x3a6   : > { %v2522_v22 = vsub.f32 %v2489_v45, %v2506_v50  ;;  %v2509_v24 = vmul.f32 %v6589_v4, %v6731_v11  ;;  %v2523_v15 = vsub.f32 %v2490_v47, %v2507_v28  ;;  %v2537_v43 = vmul.f32 %v2521_v48, %v2521_v48  ;;  %v6820_v28 = vld [vmem:[%s3970_s27 + $0x260] sm:$0xff] }
 0x3a7   : > { %v2548_v54 = vadd.f32 %v2547_v33, %v2533_v53  ;;  %v2610_v27 = vmax.f32 %v6796_v26, %v2609_v44  ;;  %v2492_v39 = vmul.f32 %v3639_v17, %v6729_v60  ;;  %v2510_v56 = vmul.f32 %v6616_v62, %v6731_v11 }
 0x3a8   : > { %v2524_v20 = vsub.f32 %v2491_v12, %v2508_v10  ;;  %v2538_v16 = vmul.f32 %v2522_v22, %v2522_v22  ;;  %v2493_v4 = vmul.f32 %v6607_v7, %v6729_v60  ;;  %v2511_v53 = vmul.f32 %v6638_v8, %v6731_v11 }
 0x3a9   : > { %v2549_v35 = vadd.f32 %v2548_v54, %v2534_v55  ;;  %v2525_v33 = vsub.f32 %v2492_v39, %v2509_v24  ;;  %v2539_v40 = vmul.f32 %v2523_v15, %v2523_v15  ;;  %v2611_v57 = vmax.f32 %v6808_v58, %v2610_v27 }
 0x3aa   : > { %v2494_v62 = vmul.f32 %v6626_v2, %v6729_v60  ;;  %v2512_v50 = vmul.f32 %v6655_v42, %v6731_v11  ;;  %v2526_v46 = vsub.f32 %v2493_v4, %v2510_v56  ;;  %v2540_v55 = vmul.f32 %v2524_v20, %v2524_v20 }
 0x3ab   : > { %v2550_v37 = vadd.f32 %v2549_v35, %v2535_v30  ;;  %v2495_v8 = vmul.f32 %v6646_v0, %v6729_v60  ;;  %v2513_v54 = vmul.f32 %v6667_v49, %v6731_v11  ;;  %v2541_v45 = vmul.f32 %v2525_v33, %v2525_v33 }
 0x3ac   : > { %v2527_v1 = vsub.f32 %v2494_v62, %v2511_v53  ;;  %v2612_v2 = vmax.f32 %v6820_v28, %v2611_v57  ;;  %v2496_v42 = vmul.f32 %v6662_v19, %v6729_v60  ;;  %v2514_v48 = vmul.f32 %v6677_v21, %v6731_v11  ;;  %v6834_v21 = vld [vmem:[%s3970_s27 + $0x270] sm:$0xff] }
 0x3ad   : > { %v2551_v29 = vadd.f32 %v2550_v37, %v2536_v5  ;;  %v2528_v30 = vsub.f32 %v2495_v8, %v2512_v50  ;;  %v2542_v0 = vmul.f32 %v2526_v46, %v2526_v46  ;;  %v2497_v49 = vmul.f32 %v6672_v52, %v6729_v60  ;;  %v6838_v60 = vld [vmem:[%s3970_s27 + $0x278] sm:$0xff] }
 0x3ae   : > { %v2529_v44 = vsub.f32 %v2496_v42, %v2513_v54  ;;  %v2543_v63 = vmul.f32 %v2527_v1, %v2527_v1  ;;  %v2613_v10 = vmax.f32 %v6830_v23, %v2612_v2 }
 0x3af   : > { %v2552_v13 = vadd.f32 %v2551_v29, %v2537_v43  ;;  %v2530_v22 = vsub.f32 %v2497_v49, %v2514_v48  ;;  %v2544_v19 = vmul.f32 %v2528_v30, %v2528_v30  ;;  %v2589_v43 = vpop.xlane.xlu1 %2588  ;;  %v3646_v49 = vld [vmem:[%s3962_s19 + $0x188] sm:$0xff] }
 0x3b0   : > { %v2545_v37 = vmul.f32 %v2529_v44, %v2529_v44  ;;  %v2614_v11 = vmax.f32 %v6834_v21, %v2613_v10  ;;  %v2590_v29 = vrot.slane %v2589_v43, 4 }
 0x3b1   : > { %v2553_v25 = vadd.f32 %v2552_v13, %v2538_v16  ;;  %v2546_v12 = vmul.f32 %v2530_v22, %v2530_v22  ;;  %v3647_v22 = vld [vmem:[%s3962_s19 + $0x190] sm:$0xff] }
 0x3b2   : > { %v2615_v15 = vmax.f32 %v6838_v60, %v2614_v11  ;;  %v2591_v27 = vmax.f32 %v2589_v43, %v2590_v29  ;;  %v3650_v43 = vld [vmem:[%s3962_s19 + $0x1a8] sm:$0xff] }
 0x3b3   : > { %v2554_v7 = vadd.f32 %v2553_v25, %v2539_v40 }
 0x3b4   : > { %v2592_v17 = vrot.slane %v2591_v27, 2 }
 0x3b5   : > { %v2555_v6 = vadd.f32 %v2554_v7, %v2540_v55 }
 0x3b6   : > { %v2593_v16 = vmax.f32 %v2591_v27, %v2592_v17 }
 0x3b7   : > { %v2556_v35 = vadd.f32 %v2555_v6, %v2541_v45 }
 0x3b8   : > { %v2594_v53 = vrot.slane %v2593_v16, 1 }
 0x3b9   : > { %v2557_v47 = vadd.f32 %v2556_v35, %v2542_v0  ;;  %v3645_v0 = vld [vmem:[%s3962_s19 + $0x180] sm:$0xff] }
 0x3ba   : > { %v2595_v25 = vmax.f32 %v2593_v16, %v2594_v53 }
 0x3bb   : > { %v2558_v5 = vadd.f32 %v2557_v47, %v2543_v63 }
 0x3bd   : > { %v2559_v18 = vadd.f32 %v2558_v5, %v2544_v19 }
 0x3bf   : > { %v2560_v24 = vadd.f32 %v2559_v18, %v2545_v37 }
 0x3c1   : > { %v2561_v52 = vadd.f32 %v2560_v24, %v2546_v12 }
 0x3c3   : > { %2562 = vadd.xlane.f32.xlu0 %v2561_v52 }
 0x3c7   : > { %2616 = vmax.xlane.f32.xlu0 %v2615_v15 }
 0x44c   : > { %v2563_v39 = vpop.xlane.xlu0 %2562 }
 0x44d   : > { %v2564_v56 = vrot.slane %v2563_v39, 4 }
 0x44f   : > { %v2565_v20 = vadd.f32 %v2564_v56, %v2563_v39  ;;  %v3651_v39 = vld [vmem:[%s3962_s19 + $0x1b0] sm:$0xff] }
 0x450   : > { %v2617_v57 = vpop.xlane.xlu0 %2616 }
 0x451   : > { %v2566_v13 = vrot.slane %v2565_v20, 2  ;;  %v2618_v62 = vrot.slane %v2617_v57, 4 }
 0x453   : > { %v2567_v4 = vadd.f32 %v2566_v13, %v2565_v20  ;;  %v2619_v50 = vmax.f32 %v2617_v57, %v2618_v62  ;;  %v3653_v57 = vld [vmem:[%s3962_s19 + $0x1c0] sm:$0xff] }
 0x455   : > { %v2568_v33 = vrot.slane %v2567_v4, 1  ;;  %v2620_v55 = vrot.slane %v2619_v50, 2 }
 0x457   : > { %v2569_v40 = vadd.f32 %v2568_v33, %v2567_v4  ;;  %v2621_v7 = vmax.f32 %v2619_v50, %v2620_v55  ;;  %v3652_v4 = vld [vmem:[%s3962_s19 + $0x1b8] sm:$0xff] }
 0x459   : > { %3134 = vpush %v2569_v40  ;;  %v2622_v8 = vrot.slane %v2621_v7, 1 }
 0x45a   : > { %3136 = vpush %v2595_v25 }
 0x45b   : > { %v2623_v1 = vmax.f32 %v2621_v7, %v2622_v8  ;;  %v3654_v7 = vld [vmem:[%s3962_s19 + $0x1c8] sm:$0xff] }
 0x48a   : > { %s6841_s27 = spop %3134 }
 0x48b   : > { %s3137_s26 = spop %3136  ;;  %s2571_s24 = smul.f32 5.0, %s6841_s27 }
 0x48c   : > { %s2597_s20 = smax.f32 %s3791_s29, %s3137_s26  ;;  %s2825_s27 = scalar_lea.sflag [#allocation4], %s3958_s16 }
 0x48d   : > { %v2598_v46 = vstv %s2597_s20 }
 0x48e   : > { %3556 = vrcp.f32 %v2598_v46 }
 0x49b   : > { %v3557_v54 = vpop.eup %3556 }
 0x49c   : > { %3138 = vpush %v3557_v54 }
 0x49d   : > { %3140 = vpush %v2623_v1 }
 0x4cd   : > { %s3139_s5 = spop %3138 }
 0x4ce   : > { %s3141_s14 = spop %3140  ;;  %v6845_v2 = vstv %s3139_s5 }
 0x4cf   : > { %s2625_s17 = smax.f32 %s3791_s29, %s3141_s14  ;;  %v2630_v35 = vmul.f32 %v3645_v0, %v6845_v2  ;;  %v2631_v44 = vmul.f32 %v3646_v49, %v6845_v2  ;;  %v2632_v19 = vmul.f32 %v3647_v22, %v6845_v2  ;;  %v2636_v56 = vmul.f32 %v3651_v39, %v6845_v2  ;;  %v3656_v49 = vld [vmem:[%s3962_s19 + $0x1d8] sm:$0xff]  ;;  %v3657_v22 = vld [vmem:[%s3962_s19 + $0x1e0] sm:$0xff]  ;;  %s3071_s29 = sshll.u32 %s3829_s13, 7 }
 0x4d0   : > { %v2626_v45 = vstv %s2625_s17  ;;  %v2637_v53 = vmul.f32 %v3652_v4, %v6845_v2  ;;  %v2638_v62 = vmul.f32 %v3653_v57, %v6845_v2  ;;  %v2639_v8 = vmul.f32 %v3654_v7, %v6845_v2  ;;  %s6922_s3 = scalar_lea.hbm %s6961_s2, %s3071_s29  ;;  %s3792_s13 = smov [#allocation7]  }
 0x4d1   : > { %3558 = vrcp.f32 %v2626_v45  ;;  %s3721_s20 = sshll.u32 %s3792_s13, 4  ;;  %s3722_s20 = int_to_ptr.vmem [resolvable:$false] %s3721_s20 }
 0x4d2   : > { %s3723_s5 = scalar_lea.vmem %s3722_s20, 256 }
 0x4de   : > { %v3559_v6 = vpop.eup %3558 }
 0x4df   : > { %3142 = vpush %v3559_v6  ;;  %v3655_v6 = vld [vmem:[%s3962_s19 + $0x1d0] sm:$0xff] }
 0x510   : > { %s3143_s28 = spop %3142 }
 0x511   : > { %v6847_v42 = vstv %s3143_s28 }
 0x512   : > { %v2647_v48 = vmul.f32 %v6713_v3, %v6847_v42  ;;  %v2648_v30 = vmul.f32 %v6710_v41, %v6847_v42  ;;  %v2649_v63 = vmul.f32 %v6718_v51, %v6847_v42  ;;  %v2650_v3 = vmul.f32 %v6722_v14, %v6847_v42  ;;  %v3648_v41 = vld [vmem:[%s3962_s19 + $0x198] sm:$0xff]  ;;  %v3649_v51 = vld [vmem:[%s3962_s19 + $0x1a0] sm:$0xff] }
 0x513   : > { %v2633_v5 = vmul.f32 %v3648_v41, %v6845_v2  ;;  %v2651_v37 = vmul.f32 %v6726_v34, %v6847_v42  ;;  %v2634_v24 = vmul.f32 %v3649_v51, %v6845_v2  ;;  %v2652_v52 = vmul.f32 %v6738_v32, %v6847_v42 }
 0x514   : > { %v2663_v47 = vsub.f32 %v2630_v35, %v2647_v48  ;;  %v2664_v10 = vsub.f32 %v2631_v44, %v2648_v30  ;;  %v2665_v18 = vsub.f32 %v2632_v19, %v2649_v63  ;;  %v2635_v14 = vmul.f32 %v3650_v43, %v6845_v2 }
 0x515   : > { %v2666_v15 = vsub.f32 %v2633_v5, %v2650_v3  ;;  %v2653_v29 = vmul.f32 %v6748_v9, %v6847_v42  ;;  %v2667_v27 = vsub.f32 %v2634_v24, %v2651_v37  ;;  %v2654_v20 = vmul.f32 %v6760_v31, %v6847_v42  ;;  %v3658_v37 = vld [vmem:[%s3962_s19 + $0x1e8] sm:$0xff]  ;;  %v3659_v24 = vld [vmem:[%s3962_s19 + $0x1f0] sm:$0xff] }
 0x516   : > { %v2679_v11 = vmul.f32 %v2663_v47, %v2663_v47  ;;  %v2680_v12 = vmul.f32 %v2664_v10, %v2664_v10  ;;  %v2681_v34 = vmul.f32 %v2665_v18, %v2665_v18  ;;  %v2668_v16 = vsub.f32 %v2635_v14, %v2652_v52 }
 0x517   : > { %v2682_v32 = vmul.f32 %v2666_v15, %v2666_v15  ;;  %v2655_v9 = vmul.f32 %v6772_v36, %v6847_v42  ;;  %v2669_v33 = vsub.f32 %v2636_v56, %v2653_v29  ;;  %v2683_v40 = vmul.f32 %v2667_v27, %v2667_v27  ;;  %v3660_v29 = vld [vmem:[%s3962_s19 + $0x1f8] sm:$0xff]  ;;  %s2940_s19 = sshll.u32 %s3958_s16, 3 }
 0x518   : > { %v2695_v17 = vadd.f32 %v2680_v12, %v2679_v11  ;;  %v2656_v31 = vmul.f32 %v6784_v61, %v6847_v42  ;;  %v2670_v50 = vsub.f32 %v2637_v53, %v2654_v20  ;;  %v2684_v46 = vmul.f32 %v2668_v16, %v2668_v16  ;;  %s201_s7 = scalar_lea.vmem [#allocation7], %s2940_s19 }
 0x519   : > { %v2657_v36 = vmul.f32 %v6796_v26, %v6847_v42  ;;  %v2671_v54 = vsub.f32 %v2638_v62, %v2655_v9  ;;  %v2685_v1 = vmul.f32 %v2669_v33, %v2669_v33  ;;  %v2640_v48 = vmul.f32 %v3655_v6, %v6845_v2  ;;  %s2838_s8 = sshll.u32 %s201_s7, 4  ;;  %s2839_s8 = int_to_ptr.vmem [resolvable:$true] %s2838_s8 }
 0x51a   : > { %v2696_v13 = vadd.f32 %v2695_v17, %v2681_v34  ;;  %v2658_v61 = vmul.f32 %v6808_v58, %v6847_v42  ;;  %v2672_v30 = vsub.f32 %v2639_v8, %v2656_v31  ;;  %v2686_v0 = vmul.f32 %v2670_v50, %v2670_v50  ;;  %v7051_v31 = vld [vmem:[#allocation11_spill] sm:$0xff]  ;;  %s3717_s26 = scalar_lea.vmem %s2839_s8, 128  ;;  %p3724_p10 = scmp.lt.s32.totalorder %s2839_s8, %s3722_s20 }
 0x51b   : > { %v2641_v44 = vmul.f32 %v3656_v49, %v6845_v2  ;;  %v2659_v26 = vmul.f32 %v6820_v28, %v6847_v42  ;;  %v2673_v63 = vsub.f32 %v2640_v48, %v2657_v36  ;;  %v2687_v47 = vmul.f32 %v2671_v54, %v2671_v54  ;;  %p3718_p13 = scmp.ne.s32.totalorder %s2839_s8, %s3717_s26  ;;  %p3725_p0 = scmp.lt.s32.totalorder %s3723_s5, %s3717_s26 }
 0x51c   : > { %v2697_v25 = vadd.f32 %v2696_v13, %v2682_v32  ;;  %v2642_v19 = vmul.f32 %v3657_v22, %v6845_v2  ;;  %v2660_v58 = vmul.f32 %v6830_v23, %v6847_v42  ;;  %v2688_v41 = vmul.f32 %v2672_v30, %v2672_v30 }
 0x51d   : > { %v2674_v3 = vsub.f32 %v2641_v44, %v2658_v61  ;;  %v2643_v18 = vmul.f32 %v3658_v37, %v6845_v2  ;;  %v2661_v28 = vmul.f32 %v6834_v21, %v6847_v42  ;;  %v2689_v12 = vmul.f32 %v2673_v63, %v2673_v63  ;;  %p3719_p12 = pnand %p3718_p13, %p7052_p1  ;;  %p3726_p2 = por %p3725_p0, %p3724_p10 }
 0x51e   : > { %v2698_v55 = vadd.f32 %v2697_v25, %v2683_v40  ;;  %v2675_v11 = vsub.f32 %v2642_v19, %v2659_v26  ;;  %v2644_v52 = vmul.f32 %v3659_v24, %v6845_v2  ;;  %v2662_v15 = vmul.f32 %v6838_v60, %v6847_v42 }
 0x51f   : > { %v2676_v23 = vsub.f32 %v2643_v18, %v2660_v58  ;;  %v2690_v43 = vmul.f32 %v2674_v3, %v2674_v3  ;;  %v2645_v27 = vmul.f32 %v3660_v29, %v6845_v2  ;;  %vm2821_vm11 = vcmp.eq.s32.totalorder %v7051_v31, 0  ;;  %p3720_p7 = pneg %p3719_p12 }
 0x520   : > { %v2699_v45 = vadd.f32 %v2698_v55, %v2684_v46  ;;  %v2677_v34 = vsub.f32 %v2644_v52, %v2661_v28  ;;  %v2691_v17 = vmul.f32 %v2675_v11, %v2675_v11 }
 0x521   : > { %v2678_v56 = vsub.f32 %v2645_v27, %v2662_v15  ;;  %v2692_v21 = vmul.f32 %v2676_v23, %v2676_v23  ;;  %p3727_p4 = pnand %p3726_p2, %p3720_p7 }
 0x522   : > { %v2700_v35 = vadd.f32 %v2699_v45, %v2685_v1  ;;  %v2693_v16 = vmul.f32 %v2677_v34, %v2677_v34 }
 0x523   : > { %v2694_v13 = vmul.f32 %v2678_v56, %v2678_v56 }
 0x524   : > { %v2701_v10 = vadd.f32 %v2700_v35, %v2686_v0 }
 0x526   : > { %v2702_v5 = vadd.f32 %v2701_v10, %v2687_v47 }
 0x528   : > { %v2703_v51 = vadd.f32 %v2702_v5, %v2688_v41 }
 0x52a   : > { %v2704_v14 = vadd.f32 %v2703_v51, %v2689_v12 }
 0x52c   : > { %v2705_v39 = vadd.f32 %v2704_v14, %v2690_v43 }
 0x52e   : > { %v2706_v20 = vadd.f32 %v2705_v39, %v2691_v17 }
 0x530   : > { %v2707_v32 = vadd.f32 %v2706_v20, %v2692_v21 }
 0x532   : > { %v2708_v4 = vadd.f32 %v2707_v32, %v2693_v16 }
 0x534   : > { %v2709_v53 = vadd.f32 %v2708_v4, %v2694_v13 }
 0x536   : > { %2710 = vadd.xlane.f32.xlu1 %v2709_v53 }
 0x5bf   : > { %v2711_v60 = vpop.xlane.xlu1 %2710 }
 0x5c0   : > { %v2712_v42 = vrot.slane %v2711_v60, 4 }
 0x5c2   : > { %v2713_v9 = vadd.f32 %v2712_v42, %v2711_v60 }
 0x5c4   : > { %v2714_v33 = vrot.slane %v2713_v9, 2 }
 0x5c6   : > { %v2715_v2 = vadd.f32 %v2714_v33, %v2713_v9 }
 0x5c8   : > { %v2716_v40 = vrot.slane %v2715_v2, 1 }
 0x5ca   : > { %v2717_v25 = vadd.f32 %v2716_v40, %v2715_v2 }
 0x5cc   : > { %3144 = vpush %v2717_v25 }
 0x5fd   : > { %s3145_s25 = spop %3144 }
 0x5fe   : > { %s2719_s6 = smul.f32 5.0, %s3145_s25 }
 0x600   : > { %s2720_s23 = sadd.f32 %s2719_s6, %s2571_s24 }
 0x602   : > { %v2818_v57 = vstv %s2720_s23 }
 0x603   : > { %v2819_v62 = vsel %vm2817_vm10, %v2818_v57, 0.0 }
 0x604   : > { %v2820_v50 = vadd.f32 %v2819_v62, %v6706_v38 }
 0x606   : > { %v2822_v46 = vsel %vm2821_vm11, %v2820_v50, 0.0 }
 0x607   : > { %2823 = vst [vmem:[%s201_s7] sm:$0xff] %v2822_v46 }
 0x608   : > { %3730 = shalt.err (!%p3727_p4)
}
 0x609   : > { %s3731_s14 = scalar_lea.hbm %s6922_s3, 128  ;;  %s3735_s28 = scalar_lea.hbm %s6961_s2, 256 }
 0x60a   : > { %p3732_p9 = scmp.ne.s32.totalorder %s6922_s3, %s3731_s14  ;;  %p3736_p5 = scmp.lt.s32.totalorder %s6922_s3, %s6961_s2 }
 0x60b   : > { %p3737_p8 = scmp.lt.s32.totalorder %s3735_s28, %s3731_s14 }
 0x60c   : > { %p3733_p11 = pnand %p3732_p9, %p7052_p1 }
 0x60d   : > { %p3738_p6 = por %p3737_p8, %p3736_p5 }
 0x60e   : > { %p3734_p3 = pneg %p3733_p11 }
 0x610   : > { %p3739_p13 = pnand %p3738_p6, %p3734_p3 }
 0x612   : > { %3742 = shalt.err (!%p3739_p13)
}
 0x613   : > { %3150 = dma.vmem_to_hbm [thread:$0]  (%p7052_p1), %s2839_s8, 128, %s6922_s3, %s2825_s27  }
 0x614 PF: > { %s2850_s25 = sand.u32 1, %s3773_s9   ;;  %p7053_p12 = scmp.ne.s32.totalorder %s6987_s22, 0 }
 0x615   : > { %p7054_p7 = scmp.ge.s32.totalorder %s3785_s12, 2  ;;  %s2851_s6 = scalar_lea.sflag [#allocation4], %s2850_s25 }
 0x617   : > { %p3160_p10 = pnand %p7054_p7, %p7053_p12 }
 0x619   : > { %p3161_p0 = pneg %p3160_p10 }
 0x61b   : > { %3768 = dma.done.wait (%p3161_p0), %s2851_s6, 128  }
 0x61c   : > { %3770 = vsyncadd (%p3161_p0), %s2851_s6, 4294967168  ;;  %p18_p2 = scmp.ge.s32.totalorder %s3833_s15, 4   ;;  %s7055_s9 = smov %s3777_s10 }
 0x61d   : > { %s7056_s10 = smov %s3781_s11  ;;  %s7057_s11 = smov %s3845_s18 }
 0x61e   : > { %s7058_s12 = smov %s3833_s15  ;;  %20 = sbr.rel (!%p18_p2) target bundleno = 7 (0x7), region = 93 }
 0x623   :  { %2856 = vsyncpa [#allocation3], 1 }
 0x624   :  { %2858 = vsyncpa [#allocation3 + $0x1], 1 }
 0x625   :  { %2859 = vsyncpa [#allocation6], 1 }
 0x626   :  { %2861 = vsyncpa [#allocation6 + $0x1], 1 }
 0x627   :  { %2862 = vsyncpa [#allocation4], 1 }
 0x628   :  { %2864 = vsyncpa [#allocation4 + $0x1], 1 }

</bundles_post_ra>
